<compile_context>
chip_gen: v7x
topology: tpu7x:2x2x1
jax: 0.10.0
libtpu: 0.0.40
codegen_flags: <defaults>
</compile_context>

<pallas_src>
import numpy as np
import jax
import jax.numpy as jnp
from jax.experimental import pallas as pl
from jax.experimental.pallas import tpu as pltpu


def _make_fused_kernel(Wp, NS, n_layers, C, halo):
    # tap order (kh, kw), kh-major; shift inside the per-sample flattened grid
    deltas = [(kh - 1) * Wp + (kw - 1) for kh in range(3) for kw in range(3)]

    def kernel(xp_ref, w_ref, b_ref, mask_ref, o_ref, ext_ref, patches_ref):
        # xp_ref      : (C, NS)      f32  zero-padded input, batch folded in lanes
        # w_ref       : (L, Cout, 9C) bf16 stacked weights, contraction = tap*C + c
        # b_ref       : (L, Cout, 1)  f32  stacked biases
        # mask_ref    : (1, NS)       f32  1.0 on interior pixels, 0.0 on pad/tail
        # o_ref       : (Cout, NS)    f32
        # ext_ref     : (C, NS+2*halo) bf16 scratch for shifted-window reads
        # patches_ref : (9C, NS)       bf16 im2col scratch
        mask = mask_ref[...]                                     # (1, NS)
        # zero only the two halo strips (interior is rewritten every layer)
        ext_ref[:, :halo] = jnp.zeros((C, halo), jnp.bfloat16)
        ext_ref[:, halo + NS:] = jnp.zeros((C, halo), jnp.bfloat16)

        x_in = xp_ref[...].astype(jnp.float32)                   # (C, NS), f32
        act = x_in
        for l in range(n_layers):
            # stage the activation (bf16) into the haloed scratch
            ext_ref[:, halo:halo + NS] = act.astype(jnp.bfloat16)
            # im2col: 9 shifted lane windows stacked along the contraction dim
            for k, d in enumerate(deltas):
                patches_ref[k * C:(k + 1) * C, :] = (
                    ext_ref[:, halo + d: halo + d + NS])
            out = jnp.dot(w_ref[l], patches_ref[...],
                          preferred_element_type=jnp.float32)    # (Cout, NS) f32
            out = out + b_ref[l]                                 # bias (f32)
            if l == n_layers - 1:
                # residual + ReLU; pad ring / tail lanes are sliced off outside
                o_ref[...] = jnp.maximum(out + x_in, 0.0).astype(o_ref.dtype)
            else:
                act = out * mask            # keep pad ring + lane tail at zero
    return kernel


def fused_conv5_forward(x_nchw, w_kern, b_kern, *, samples_per_block=None):
    """x: (N, C, H, W) f32; w_kern: (L, Cout, 9*C) f32; b_kern: (L, Cout, 1) f32."""
    N, C, H, W = x_nchw.shape
    L, Cout, K9C = w_kern.shape
    Hp, Wp = H + 2, W + 2
    S = Hp * Wp
    Sp = ((S + 127) // 128) * 128            # lane-dense per-sample width
    halo = 32                                # >= Wp + 1 = max |tap shift|
    assert halo >= Wp + 1

    NB = N if samples_per_block is None else samples_per_block
    assert N % NB == 0
    G = N // NB
    NS = NB * Sp

    # pad ring -> flatten spatial -> pad to Sp -> fold batch into the lane dim
    xp = jnp.pad(x_nchw, ((0, 0), (0, 0), (1, 1), (1, 1))).reshape(N, C, S)
    xp = jnp.pad(xp, ((0, 0), (0, 0), (0, Sp - S)))
    xp = jnp.transpose(xp, (1, 0, 2)).reshape(C, N * Sp)

    # per-sample interior mask (0 on pad ring and on the Sp-S tail lanes)
    m = np.zeros((Hp, Wp), np.float32)
    m[1:-1, 1:-1] = 1.0
    m = np.concatenate([m.reshape(-1), np.zeros(Sp - S, np.float32)])
    mask = jnp.asarray(np.tile(m, NB).reshape(1, NS))

    w_bf16 = w_kern.astype(jnp.bfloat16)     # MXU-native weights

    kernel = _make_fused_kernel(Wp, NS, L, C, halo)
    flops = 2 * L * Cout * K9C * N * Sp
    bytes_accessed = 4 * (xp.size + b_kern.size + mask.size + Cout * N * Sp) \
        + 2 * w_bf16.size

    out_p = pl.pallas_call(
        kernel,
        out_shape=jax.ShapeDtypeStruct((Cout, N * Sp), x_nchw.dtype),
        grid=(G,),
        in_specs=[
            pl.BlockSpec((C, NS), lambda g: (0, g)),
            pl.BlockSpec((L, Cout, K9C), lambda g: (0, 0, 0)),
            pl.BlockSpec((L, Cout, 1), lambda g: (0, 0, 0)),
            pl.BlockSpec((1, NS), lambda g: (0, 0)),
        ],
        out_specs=pl.BlockSpec((Cout, NS), lambda g: (0, g)),
        scratch_shapes=[
            pltpu.VMEM((C, NS + 2 * halo), jnp.bfloat16),   # haloed activation
            pltpu.VMEM((9 * C, NS), jnp.bfloat16),          # im2col patches
        ],
        compiler_params=pltpu.CompilerParams(
            dimension_semantics=("parallel",)),
        cost_estimate=pl.CostEstimate(flops=flops, transcendentals=0,
                                      bytes_accessed=bytes_accessed),
    )(xp, w_bf16, b_kern, mask)

    # unfold batch, drop tail lanes and pad ring -> (N, Cout, H, W), NCHW
    out = out_p.reshape(Cout, N, Sp)[:, :, :S].reshape(Cout, N, Hp, Wp)
    return jnp.transpose(out, (1, 0, 2, 3))[:, :, 1:-1, 1:-1]


def init_params(key, n_layers=5, cin=16, cout=16):
    """Deterministic synthetic Conv2d params (torch layout + kernel layout)."""
    bound = 1.0 / np.sqrt(cin * 9)
    ws, bs = [], []
    for _ in range(n_layers):
        key, kw, kb = jax.random.split(key, 3)
        ws.append(jax.random.uniform(kw, (cout, cin, 3, 3), jnp.float32,
                                     -bound, bound))
        bs.append(jax.random.uniform(kb, (cout,), jnp.float32, -bound, bound))
    w_torch = jnp.stack(ws)                               # (L, Cout, Cin, 3, 3)
    b_vec = jnp.stack(bs)                                 # (L, Cout)
    # kernel contraction index = (kh*3 + kw)*Cin + cin
    w_kern = jnp.transpose(w_torch, (0, 1, 3, 4, 2)).reshape(n_layers, cout,
                                                             9 * cin)
    b_kern = b_vec.reshape(n_layers, cout, 1)
    return w_torch, b_vec, w_kern, b_kern


def reference_forward(x_nchw, w_torch, b_vec):
    """Pure-JAX f32 reference (lax.conv) mirroring the PyTorch module."""
    h = x_nchw
    for l in range(w_torch.shape[0]):
        h = jax.lax.conv_general_dilated(
            h, w_torch[l], window_strides=(1, 1), padding=((1, 1), (1, 1)),
            dimension_numbers=("NCHW", "OIHW", "NCHW"))
        h = h + b_vec[l].reshape(1, -1, 1, 1)
    return jnp.maximum(h + x_nchw, 0.0)


if __name__ == "__main__":
    key = jax.random.PRNGKey(0)
    key, kx = jax.random.split(key)
    # C=16 is fixed by the module (residual needs Cout==Cin==16); small N/H/W.
    N, C, H, W = 2, 16, 16, 16
    x = jax.random.normal(kx, (N, C, H, W), jnp.float32)

    w_torch, b_vec, w_kern, b_kern = init_params(key, n_layers=5, cin=C, cout=C)

    fwd = jax.jit(fused_conv5_forward)
    out = jax.block_until_ready(fwd(x, w_kern, b_kern))

    ref = jax.block_until_ready(reference_forward(x, w_torch, b_vec))
    assert out.shape == ref.shape == (N, C, H, W)
    # tolerance accounts for bf16 staging of activations/weights (f32 accum)
    np.testing.assert_allclose(np.asarray(out), np.asarray(ref),
                               rtol=1e-2, atol=1e-2)
    print("KERNEL_OK")
</pallas_src>

<mosaic_0001>
module attributes {stable_mosaic.version = 11 : i64} {
  func.func @kernel(%arg0: i32, %arg1: memref<16x768xf32, #tpu.memory_space<vmem>>, %arg2: memref<5x16x144xbf16, #tpu.memory_space<vmem>>, %arg3: memref<5x16x1xf32, #tpu.memory_space<vmem>>, %arg4: memref<1x768xf32, #tpu.memory_space<vmem>>, %arg5: memref<16x768xf32, #tpu.memory_space<vmem>>, %arg6: memref<16x832xbf16, #tpu.memory_space<vmem>>, %arg7: memref<144x768xbf16, #tpu.memory_space<vmem>>) attributes {dimension_semantics = [#tpu.dimension_semantics<parallel>], iteration_bounds = array<i64: 1>, scalar_prefetch = 0 : i64, scratch_operands = 2 : i64, tpu.core_type = #tpu.core_type<tc>, window_params = [{transform_indices = @transform_0, window_bounds = array<i64: 16, 768>}, {pipeline_mode = #tpu.pipeline_mode<synchronous>, transform_indices = @transform_1, window_bounds = array<i64: 5, 16, 144>}, {pipeline_mode = #tpu.pipeline_mode<synchronous>, transform_indices = @transform_2, window_bounds = array<i64: 5, 16, 1>}, {pipeline_mode = #tpu.pipeline_mode<synchronous>, transform_indices = @transform_3, window_bounds = array<i64: 1, 768>}, {transform_indices = @transform_4, window_bounds = array<i64: 16, 768>}]} {
    %c0 = arith.constant 0 : index
    %c0_0 = arith.constant 0 : index
    %0 = vector.load %arg4[%c0, %c0_0] : memref<1x768xf32, #tpu.memory_space<vmem>>, vector<1x768xf32>
    %cst = arith.constant 0.000000e+00 : bf16
    %1 = vector.broadcast %cst : bf16 to vector<16x32xbf16>
    %c0_1 = arith.constant 0 : index
    %c0_2 = arith.constant 0 : index
    %2 = vector.load %arg6[%c0_1, %c0_2] : memref<16x832xbf16, #tpu.memory_space<vmem>>, vector<16x32xbf16>
    tpu.vector_store %arg6[%c0_1, %c0_2], %1 {strides = array<i32>} : memref<16x832xbf16, #tpu.memory_space<vmem>>, vector<16x32xbf16>,
    %cst_3 = arith.constant 0.000000e+00 : bf16
    %3 = vector.broadcast %cst_3 : bf16 to vector<16x32xbf16>
    %c0_4 = arith.constant 0 : index
    %c800 = arith.constant 800 : index
    %4 = vector.load %arg6[%c0_4, %c800] : memref<16x832xbf16, #tpu.memory_space<vmem>>, vector<16x32xbf16>
    tpu.vector_store %arg6[%c0_4, %c800], %3 {strides = array<i32>} : memref<16x832xbf16, #tpu.memory_space<vmem>>, vector<16x32xbf16>,
    %c0_5 = arith.constant 0 : index
    %c0_6 = arith.constant 0 : index
    %5 = vector.load %arg1[%c0_5, %c0_6] : memref<16x768xf32, #tpu.memory_space<vmem>>, vector<16x768xf32>
    %6 = arith.truncf %5 : vector<16x768xf32> to vector<16x768xbf16>
    %c0_7 = arith.constant 0 : index
    %c32 = arith.constant 32 : index
    %7 = vector.load %arg6[%c0_7, %c32] : memref<16x832xbf16, #tpu.memory_space<vmem>>, vector<16x768xbf16>
    tpu.vector_store %arg6[%c0_7, %c32], %6 {strides = array<i32>} : memref<16x832xbf16, #tpu.memory_space<vmem>>, vector<16x768xbf16>,
    %c0_8 = arith.constant 0 : index
    %c13 = arith.constant 13 : index
    %8 = vector.load %arg6[%c0_8, %c13] : memref<16x832xbf16, #tpu.memory_space<vmem>>, vector<16x768xbf16>
    %c0_9 = arith.constant 0 : index
    %c0_10 = arith.constant 0 : index
    %9 = vector.load %arg7[%c0_9, %c0_10] : memref<144x768xbf16, #tpu.memory_space<vmem>>, vector<16x768xbf16>
    tpu.vector_store %arg7[%c0_9, %c0_10], %8 {strides = array<i32>} : memref<144x768xbf16, #tpu.memory_space<vmem>>, vector<16x768xbf16>,
    %c0_11 = arith.constant 0 : index
    %c14 = arith.constant 14 : index
    %10 = vector.load %arg6[%c0_11, %c14] : memref<16x832xbf16, #tpu.memory_space<vmem>>, vector<16x768xbf16>
    %c16 = arith.constant 16 : index
    %c0_12 = arith.constant 0 : index
    %11 = vector.load %arg7[%c16, %c0_12] : memref<144x768xbf16, #tpu.memory_space<vmem>>, vector<16x768xbf16>
    tpu.vector_store %arg7[%c16, %c0_12], %10 {strides = array<i32>} : memref<144x768xbf16, #tpu.memory_space<vmem>>, vector<16x768xbf16>,
    %c0_13 = arith.constant 0 : index
    %c15 = arith.constant 15 : index
    %12 = vector.load %arg6[%c0_13, %c15] : memref<16x832xbf16, #tpu.memory_space<vmem>>, vector<16x768xbf16>
    %c32_14 = arith.constant 32 : index
    %c0_15 = arith.constant 0 : index
    %13 = vector.load %arg7[%c32_14, %c0_15] : memref<144x768xbf16, #tpu.memory_space<vmem>>, vector<16x768xbf16>
    tpu.vector_store %arg7[%c32_14, %c0_15], %12 {strides = array<i32>} : memref<144x768xbf16, #tpu.memory_space<vmem>>, vector<16x768xbf16>,
    %c0_16 = arith.constant 0 : index
    %c31 = arith.constant 31 : index
    %14 = vector.load %arg6[%c0_16, %c31] : memref<16x832xbf16, #tpu.memory_space<vmem>>, vector<16x768xbf16>
    %c48 = arith.constant 48 : index
    %c0_17 = arith.constant 0 : index
    %15 = vector.load %arg7[%c48, %c0_17] : memref<144x768xbf16, #tpu.memory_space<vmem>>, vector<16x768xbf16>
    tpu.vector_store %arg7[%c48, %c0_17], %14 {strides = array<i32>} : memref<144x768xbf16, #tpu.memory_space<vmem>>, vector<16x768xbf16>,
    %c0_18 = arith.constant 0 : index
    %c32_19 = arith.constant 32 : index
    %16 = vector.load %arg6[%c0_18, %c32_19] : memref<16x832xbf16, #tpu.memory_space<vmem>>, vector<16x768xbf16>
    %c64 = arith.constant 64 : index
    %c0_20 = arith.constant 0 : index
    %17 = vector.load %arg7[%c64, %c0_20] : memref<144x768xbf16, #tpu.memory_space<vmem>>, vector<16x768xbf16>
    tpu.vector_store %arg7[%c64, %c0_20], %16 {strides = array<i32>} : memref<144x768xbf16, #tpu.memory_space<vmem>>, vector<16x768xbf16>,
    %c0_21 = arith.constant 0 : index
    %c33 = arith.constant 33 : index
    %18 = vector.load %arg6[%c0_21, %c33] : memref<16x832xbf16, #tpu.memory_space<vmem>>, vector<16x768xbf16>
    %c80 = arith.constant 80 : index
    %c0_22 = arith.constant 0 : index
    %19 = vector.load %arg7[%c80, %c0_22] : memref<144x768xbf16, #tpu.memory_space<vmem>>, vector<16x768xbf16>
    tpu.vector_store %arg7[%c80, %c0_22], %18 {strides = array<i32>} : memref<144x768xbf16, #tpu.memory_space<vmem>>, vector<16x768xbf16>,
    %c0_23 = arith.constant 0 : index
    %c49 = arith.constant 49 : index
    %20 = vector.load %arg6[%c0_23, %c49] : memref<16x832xbf16, #tpu.memory_space<vmem>>, vector<16x768xbf16>
    %c96 = arith.constant 96 : index
    %c0_24 = arith.constant 0 : index
    %21 = vector.load %arg7[%c96, %c0_24] : memref<144x768xbf16, #tpu.memory_space<vmem>>, vector<16x768xbf16>
    tpu.vector_store %arg7[%c96, %c0_24], %20 {strides = array<i32>} : memref<144x768xbf16, #tpu.memory_space<vmem>>, vector<16x768xbf16>,
    %c0_25 = arith.constant 0 : index
    %c50 = arith.constant 50 : index
    %22 = vector.load %arg6[%c0_25, %c50] : memref<16x832xbf16, #tpu.memory_space<vmem>>, vector<16x768xbf16>
    %c112 = arith.constant 112 : index
    %c0_26 = arith.constant 0 : index
    %23 = vector.load %arg7[%c112, %c0_26] : memref<144x768xbf16, #tpu.memory_space<vmem>>, vector<16x768xbf16>
    tpu.vector_store %arg7[%c112, %c0_26], %22 {strides = array<i32>} : memref<144x768xbf16, #tpu.memory_space<vmem>>, vector<16x768xbf16>,
    %c0_27 = arith.constant 0 : index
    %c51 = arith.constant 51 : index
    %24 = vector.load %arg6[%c0_27, %c51] : memref<16x832xbf16, #tpu.memory_space<vmem>>, vector<16x768xbf16>
    %c128 = arith.constant 128 : index
    %c0_28 = arith.constant 0 : index
    %25 = vector.load %arg7[%c128, %c0_28] : memref<144x768xbf16, #tpu.memory_space<vmem>>, vector<16x768xbf16>
    tpu.vector_store %arg7[%c128, %c0_28], %24 {strides = array<i32>} : memref<144x768xbf16, #tpu.memory_space<vmem>>, vector<16x768xbf16>,
    %c0_29 = arith.constant 0 : index
    %c0_30 = arith.constant 0 : index
    %c0_31 = arith.constant 0 : index
    %26 = vector.load %arg2[%c0_29, %c0_30, %c0_31] : memref<5x16x144xbf16, #tpu.memory_space<vmem>>, vector<1x16x144xbf16>
    %27 = vector.shape_cast %26 : vector<1x16x144xbf16> to vector<16x144xbf16>
    %c0_32 = arith.constant 0 : index
    %c0_33 = arith.constant 0 : index
    %28 = vector.load %arg7[%c0_32, %c0_33] : memref<144x768xbf16, #tpu.memory_space<vmem>>, vector<144x768xbf16>
    %cst_34 = arith.constant dense<0.000000e+00> : vector<16x768xf32>
    %29 = tpu.matmul %27, %28, %cst_34 {dimension_numbers = #tpu.dot_dimension_numbers<[1], [0], [0], [1], [0, 0, 1, 1], [], []>} : vector<16x144xbf16>, vector<144x768xbf16>, vector<16x768xf32> -> vector<16x768xf32>
    %c0_35 = arith.constant 0 : index
    %c0_36 = arith.constant 0 : index
    %c0_37 = arith.constant 0 : index
    %30 = vector.load %arg3[%c0_35, %c0_36, %c0_37] : memref<5x16x1xf32, #tpu.memory_space<vmem>>, vector<1x16x1xf32>
    %31 = vector.shape_cast %30 : vector<1x16x1xf32> to vector<16x1xf32>
    %32 = vector.broadcast %31 : vector<16x1xf32> to vector<16x768xf32>
    %33 = arith.addf %29, %32 : vector<16x768xf32>
    %34 = vector.broadcast %0 : vector<1x768xf32> to vector<16x768xf32>
    %35 = arith.mulf %33, %34 : vector<16x768xf32>
    %36 = arith.truncf %35 : vector<16x768xf32> to vector<16x768xbf16>
    %c0_38 = arith.constant 0 : index
    %c32_39 = arith.constant 32 : index
    %37 = vector.load %arg6[%c0_38, %c32_39] : memref<16x832xbf16, #tpu.memory_space<vmem>>, vector<16x768xbf16>
    tpu.vector_store %arg6[%c0_38, %c32_39], %36 {strides = array<i32>} : memref<16x832xbf16, #tpu.memory_space<vmem>>, vector<16x768xbf16>,
    %c0_40 = arith.constant 0 : index
    %c13_41 = arith.constant 13 : index
    %38 = vector.load %arg6[%c0_40, %c13_41] : memref<16x832xbf16, #tpu.memory_space<vmem>>, vector<16x768xbf16>
    %c0_42 = arith.constant 0 : index
    %c0_43 = arith.constant 0 : index
    %39 = vector.load %arg7[%c0_42, %c0_43] : memref<144x768xbf16, #tpu.memory_space<vmem>>, vector<16x768xbf16>
    tpu.vector_store %arg7[%c0_42, %c0_43], %38 {strides = array<i32>} : memref<144x768xbf16, #tpu.memory_space<vmem>>, vector<16x768xbf16>,
    %c0_44 = arith.constant 0 : index
    %c14_45 = arith.constant 14 : index
    %40 = vector.load %arg6[%c0_44, %c14_45] : memref<16x832xbf16, #tpu.memory_space<vmem>>, vector<16x768xbf16>
    %c16_46 = arith.constant 16 : index
    %c0_47 = arith.constant 0 : index
    %41 = vector.load %arg7[%c16_46, %c0_47] : memref<144x768xbf16, #tpu.memory_space<vmem>>, vector<16x768xbf16>
    tpu.vector_store %arg7[%c16_46, %c0_47], %40 {strides = array<i32>} : memref<144x768xbf16, #tpu.memory_space<vmem>>, vector<16x768xbf16>,
    %c0_48 = arith.constant 0 : index
    %c15_49 = arith.constant 15 : index
    %42 = vector.load %arg6[%c0_48, %c15_49] : memref<16x832xbf16, #tpu.memory_space<vmem>>, vector<16x768xbf16>
    %c32_50 = arith.constant 32 : index
    %c0_51 = arith.constant 0 : index
    %43 = vector.load %arg7[%c32_50, %c0_51] : memref<144x768xbf16, #tpu.memory_space<vmem>>, vector<16x768xbf16>
    tpu.vector_store %arg7[%c32_50, %c0_51], %42 {strides = array<i32>} : memref<144x768xbf16, #tpu.memory_space<vmem>>, vector<16x768xbf16>,
    %c0_52 = arith.constant 0 : index
    %c31_53 = arith.constant 31 : index
    %44 = vector.load %arg6[%c0_52, %c31_53] : memref<16x832xbf16, #tpu.memory_space<vmem>>, vector<16x768xbf16>
    %c48_54 = arith.constant 48 : index
    %c0_55 = arith.constant 0 : index
    %45 = vector.load %arg7[%c48_54, %c0_55] : memref<144x768xbf16, #tpu.memory_space<vmem>>, vector<16x768xbf16>
    tpu.vector_store %arg7[%c48_54, %c0_55], %44 {strides = array<i32>} : memref<144x768xbf16, #tpu.memory_space<vmem>>, vector<16x768xbf16>,
    %c0_56 = arith.constant 0 : index
    %c32_57 = arith.constant 32 : index
    %46 = vector.load %arg6[%c0_56, %c32_57] : memref<16x832xbf16, #tpu.memory_space<vmem>>, vector<16x768xbf16>
    %c64_58 = arith.constant 64 : index
    %c0_59 = arith.constant 0 : index
    %47 = vector.load %arg7[%c64_58, %c0_59] : memref<144x768xbf16, #tpu.memory_space<vmem>>, vector<16x768xbf16>
    tpu.vector_store %arg7[%c64_58, %c0_59], %46 {strides = array<i32>} : memref<144x768xbf16, #tpu.memory_space<vmem>>, vector<16x768xbf16>,
    %c0_60 = arith.constant 0 : index
    %c33_61 = arith.constant 33 : index
    %48 = vector.load %arg6[%c0_60, %c33_61] : memref<16x832xbf16, #tpu.memory_space<vmem>>, vector<16x768xbf16>
    %c80_62 = arith.constant 80 : index
    %c0_63 = arith.constant 0 : index
    %49 = vector.load %arg7[%c80_62, %c0_63] : memref<144x768xbf16, #tpu.memory_space<vmem>>, vector<16x768xbf16>
    tpu.vector_store %arg7[%c80_62, %c0_63], %48 {strides = array<i32>} : memref<144x768xbf16, #tpu.memory_space<vmem>>, vector<16x768xbf16>,
    %c0_64 = arith.constant 0 : index
    %c49_65 = arith.constant 49 : index
    %50 = vector.load %arg6[%c0_64, %c49_65] : memref<16x832xbf16, #tpu.memory_space<vmem>>, vector<16x768xbf16>
    %c96_66 = arith.constant 96 : index
    %c0_67 = arith.constant 0 : index
    %51 = vector.load %arg7[%c96_66, %c0_67] : memref<144x768xbf16, #tpu.memory_space<vmem>>, vector<16x768xbf16>
    tpu.vector_store %arg7[%c96_66, %c0_67], %50 {strides = array<i32>} : memref<144x768xbf16, #tpu.memory_space<vmem>>, vector<16x768xbf16>,
    %c0_68 = arith.constant 0 : index
    %c50_69 = arith.constant 50 : index
    %52 = vector.load %arg6[%c0_68, %c50_69] : memref<16x832xbf16, #tpu.memory_space<vmem>>, vector<16x768xbf16>
    %c112_70 = arith.constant 112 : index
    %c0_71 = arith.constant 0 : index
    %53 = vector.load %arg7[%c112_70, %c0_71] : memref<144x768xbf16, #tpu.memory_space<vmem>>, vector<16x768xbf16>
    tpu.vector_store %arg7[%c112_70, %c0_71], %52 {strides = array<i32>} : memref<144x768xbf16, #tpu.memory_space<vmem>>, vector<16x768xbf16>,
    %c0_72 = arith.constant 0 : index
    %c51_73 = arith.constant 51 : index
    %54 = vector.load %arg6[%c0_72, %c51_73] : memref<16x832xbf16, #tpu.memory_space<vmem>>, vector<16x768xbf16>
    %c128_74 = arith.constant 128 : index
    %c0_75 = arith.constant 0 : index
    %55 = vector.load %arg7[%c128_74, %c0_75] : memref<144x768xbf16, #tpu.memory_space<vmem>>, vector<16x768xbf16>
    tpu.vector_store %arg7[%c128_74, %c0_75], %54 {strides = array<i32>} : memref<144x768xbf16, #tpu.memory_space<vmem>>, vector<16x768xbf16>,
    %c1 = arith.constant 1 : index
    %c0_76 = arith.constant 0 : index
    %c0_77 = arith.constant 0 : index
    %56 = vector.load %arg2[%c1, %c0_76, %c0_77] : memref<5x16x144xbf16, #tpu.memory_space<vmem>>, vector<1x16x144xbf16>
    %57 = vector.shape_cast %56 : vector<1x16x144xbf16> to vector<16x144xbf16>
    %c0_78 = arith.constant 0 : index
    %c0_79 = arith.constant 0 : index
    %58 = vector.load %arg7[%c0_78, %c0_79] : memref<144x768xbf16, #tpu.memory_space<vmem>>, vector<144x768xbf16>
    %cst_80 = arith.constant dense<0.000000e+00> : vector<16x768xf32>
    %59 = tpu.matmul %57, %58, %cst_80 {dimension_numbers = #tpu.dot_dimension_numbers<[1], [0], [0], [1], [0, 0, 1, 1], [], []>} : vector<16x144xbf16>, vector<144x768xbf16>, vector<16x768xf32> -> vector<16x768xf32>
    %c1_81 = arith.constant 1 : index
    %c0_82 = arith.constant 0 : index
    %c0_83 = arith.constant 0 : index
    %60 = vector.load %arg3[%c1_81, %c0_82, %c0_83] : memref<5x16x1xf32, #tpu.memory_space<vmem>>, vector<1x16x1xf32>
    %61 = vector.shape_cast %60 : vector<1x16x1xf32> to vector<16x1xf32>
    %62 = vector.broadcast %61 : vector<16x1xf32> to vector<16x768xf32>
    %63 = arith.addf %59, %62 : vector<16x768xf32>
    %64 = vector.broadcast %0 : vector<1x768xf32> to vector<16x768xf32>
    %65 = arith.mulf %63, %64 : vector<16x768xf32>
    %66 = arith.truncf %65 : vector<16x768xf32> to vector<16x768xbf16>
    %c0_84 = arith.constant 0 : index
    %c32_85 = arith.constant 32 : index
    %67 = vector.load %arg6[%c0_84, %c32_85] : memref<16x832xbf16, #tpu.memory_space<vmem>>, vector<16x768xbf16>
    tpu.vector_store %arg6[%c0_84, %c32_85], %66 {strides = array<i32>} : memref<16x832xbf16, #tpu.memory_space<vmem>>, vector<16x768xbf16>,
    %c0_86 = arith.constant 0 : index
    %c13_87 = arith.constant 13 : index
    %68 = vector.load %arg6[%c0_86, %c13_87] : memref<16x832xbf16, #tpu.memory_space<vmem>>, vector<16x768xbf16>
    %c0_88 = arith.constant 0 : index
    %c0_89 = arith.constant 0 : index
    %69 = vector.load %arg7[%c0_88, %c0_89] : memref<144x768xbf16, #tpu.memory_space<vmem>>, vector<16x768xbf16>
    tpu.vector_store %arg7[%c0_88, %c0_89], %68 {strides = array<i32>} : memref<144x768xbf16, #tpu.memory_space<vmem>>, vector<16x768xbf16>,
    %c0_90 = arith.constant 0 : index
    %c14_91 = arith.constant 14 : index
    %70 = vector.load %arg6[%c0_90, %c14_91] : memref<16x832xbf16, #tpu.memory_space<vmem>>, vector<16x768xbf16>
    %c16_92 = arith.constant 16 : index
    %c0_93 = arith.constant 0 : index
    %71 = vector.load %arg7[%c16_92, %c0_93] : memref<144x768xbf16, #tpu.memory_space<vmem>>, vector<16x768xbf16>
    tpu.vector_store %arg7[%c16_92, %c0_93], %70 {strides = array<i32>} : memref<144x768xbf16, #tpu.memory_space<vmem>>, vector<16x768xbf16>,
    %c0_94 = arith.constant 0 : index
    %c15_95 = arith.constant 15 : index
    %72 = vector.load %arg6[%c0_94, %c15_95] : memref<16x832xbf16, #tpu.memory_space<vmem>>, vector<16x768xbf16>
    %c32_96 = arith.constant 32 : index
    %c0_97 = arith.constant 0 : index
    %73 = vector.load %arg7[%c32_96, %c0_97] : memref<144x768xbf16, #tpu.memory_space<vmem>>, vector<16x768xbf16>
    tpu.vector_store %arg7[%c32_96, %c0_97], %72 {strides = array<i32>} : memref<144x768xbf16, #tpu.memory_space<vmem>>, vector<16x768xbf16>,
    %c0_98 = arith.constant 0 : index
    %c31_99 = arith.constant 31 : index
    %74 = vector.load %arg6[%c0_98, %c31_99] : memref<16x832xbf16, #tpu.memory_space<vmem>>, vector<16x768xbf16>
    %c48_100 = arith.constant 48 : index
    %c0_101 = arith.constant 0 : index
    %75 = vector.load %arg7[%c48_100, %c0_101] : memref<144x768xbf16, #tpu.memory_space<vmem>>, vector<16x768xbf16>
    tpu.vector_store %arg7[%c48_100, %c0_101], %74 {strides = array<i32>} : memref<144x768xbf16, #tpu.memory_space<vmem>>, vector<16x768xbf16>,
    %c0_102 = arith.constant 0 : index
    %c32_103 = arith.constant 32 : index
    %76 = vector.load %arg6[%c0_102, %c32_103] : memref<16x832xbf16, #tpu.memory_space<vmem>>, vector<16x768xbf16>
    %c64_104 = arith.constant 64 : index
    %c0_105 = arith.constant 0 : index
    %77 = vector.load %arg7[%c64_104, %c0_105] : memref<144x768xbf16, #tpu.memory_space<vmem>>, vector<16x768xbf16>
    tpu.vector_store %arg7[%c64_104, %c0_105], %76 {strides = array<i32>} : memref<144x768xbf16, #tpu.memory_space<vmem>>, vector<16x768xbf16>,
    %c0_106 = arith.constant 0 : index
    %c33_107 = arith.constant 33 : index
    %78 = vector.load %arg6[%c0_106, %c33_107] : memref<16x832xbf16, #tpu.memory_space<vmem>>, vector<16x768xbf16>
    %c80_108 = arith.constant 80 : index
    %c0_109 = arith.constant 0 : index
    %79 = vector.load %arg7[%c80_108, %c0_109] : memref<144x768xbf16, #tpu.memory_space<vmem>>, vector<16x768xbf16>
    tpu.vector_store %arg7[%c80_108, %c0_109], %78 {strides = array<i32>} : memref<144x768xbf16, #tpu.memory_space<vmem>>, vector<16x768xbf16>,
    %c0_110 = arith.constant 0 : index
    %c49_111 = arith.constant 49 : index
    %80 = vector.load %arg6[%c0_110, %c49_111] : memref<16x832xbf16, #tpu.memory_space<vmem>>, vector<16x768xbf16>
    %c96_112 = arith.constant 96 : index
    %c0_113 = arith.constant 0 : index
    %81 = vector.load %arg7[%c96_112, %c0_113] : memref<144x768xbf16, #tpu.memory_space<vmem>>, vector<16x768xbf16>
    tpu.vector_store %arg7[%c96_112, %c0_113], %80 {strides = array<i32>} : memref<144x768xbf16, #tpu.memory_space<vmem>>, vector<16x768xbf16>,
    %c0_114 = arith.constant 0 : index
    %c50_115 = arith.constant 50 : index
    %82 = vector.load %arg6[%c0_114, %c50_115] : memref<16x832xbf16, #tpu.memory_space<vmem>>, vector<16x768xbf16>
    %c112_116 = arith.constant 112 : index
    %c0_117 = arith.constant 0 : index
    %83 = vector.load %arg7[%c112_116, %c0_117] : memref<144x768xbf16, #tpu.memory_space<vmem>>, vector<16x768xbf16>
    tpu.vector_store %arg7[%c112_116, %c0_117], %82 {strides = array<i32>} : memref<144x768xbf16, #tpu.memory_space<vmem>>, vector<16x768xbf16>,
    %c0_118 = arith.constant 0 : index
    %c51_119 = arith.constant 51 : index
    %84 = vector.load %arg6[%c0_118, %c51_119] : memref<16x832xbf16, #tpu.memory_space<vmem>>, vector<16x768xbf16>
    %c128_120 = arith.constant 128 : index
    %c0_121 = arith.constant 0 : index
    %85 = vector.load %arg7[%c128_120, %c0_121] : memref<144x768xbf16, #tpu.memory_space<vmem>>, vector<16x768xbf16>
    tpu.vector_store %arg7[%c128_120, %c0_121], %84 {strides = array<i32>} : memref<144x768xbf16, #tpu.memory_space<vmem>>, vector<16x768xbf16>,
    %c2 = arith.constant 2 : index
    %c0_122 = arith.constant 0 : index
    %c0_123 = arith.constant 0 : index
    %86 = vector.load %arg2[%c2, %c0_122, %c0_123] : memref<5x16x144xbf16, #tpu.memory_space<vmem>>, vector<1x16x144xbf16>
    %87 = vector.shape_cast %86 : vector<1x16x144xbf16> to vector<16x144xbf16>
    %c0_124 = arith.constant 0 : index
    %c0_125 = arith.constant 0 : index
    %88 = vector.load %arg7[%c0_124, %c0_125] : memref<144x768xbf16, #tpu.memory_space<vmem>>, vector<144x768xbf16>
    %cst_126 = arith.constant dense<0.000000e+00> : vector<16x768xf32>
    %89 = tpu.matmul %87, %88, %cst_126 {dimension_numbers = #tpu.dot_dimension_numbers<[1], [0], [0], [1], [0, 0, 1, 1], [], []>} : vector<16x144xbf16>, vector<144x768xbf16>, vector<16x768xf32> -> vector<16x768xf32>
    %c2_127 = arith.constant 2 : index
    %c0_128 = arith.constant 0 : index
    %c0_129 = arith.constant 0 : index
    %90 = vector.load %arg3[%c2_127, %c0_128, %c0_129] : memref<5x16x1xf32, #tpu.memory_space<vmem>>, vector<1x16x1xf32>
    %91 = vector.shape_cast %90 : vector<1x16x1xf32> to vector<16x1xf32>
    %92 = vector.broadcast %91 : vector<16x1xf32> to vector<16x768xf32>
    %93 = arith.addf %89, %92 : vector<16x768xf32>
    %94 = vector.broadcast %0 : vector<1x768xf32> to vector<16x768xf32>
    %95 = arith.mulf %93, %94 : vector<16x768xf32>
    %96 = arith.truncf %95 : vector<16x768xf32> to vector<16x768xbf16>
    %c0_130 = arith.constant 0 : index
    %c32_131 = arith.constant 32 : index
    %97 = vector.load %arg6[%c0_130, %c32_131] : memref<16x832xbf16, #tpu.memory_space<vmem>>, vector<16x768xbf16>
    tpu.vector_store %arg6[%c0_130, %c32_131], %96 {strides = array<i32>} : memref<16x832xbf16, #tpu.memory_space<vmem>>, vector<16x768xbf16>,
    %c0_132 = arith.constant 0 : index
    %c13_133 = arith.constant 13 : index
    %98 = vector.load %arg6[%c0_132, %c13_133] : memref<16x832xbf16, #tpu.memory_space<vmem>>, vector<16x768xbf16>
    %c0_134 = arith.constant 0 : index
    %c0_135 = arith.constant 0 : index
    %99 = vector.load %arg7[%c0_134, %c0_135] : memref<144x768xbf16, #tpu.memory_space<vmem>>, vector<16x768xbf16>
    tpu.vector_store %arg7[%c0_134, %c0_135], %98 {strides = array<i32>} : memref<144x768xbf16, #tpu.memory_space<vmem>>, vector<16x768xbf16>,
    %c0_136 = arith.constant 0 : index
    %c14_137 = arith.constant 14 : index
    %100 = vector.load %arg6[%c0_136, %c14_137] : memref<16x832xbf16, #tpu.memory_space<vmem>>, vector<16x768xbf16>
    %c16_138 = arith.constant 16 : index
    %c0_139 = arith.constant 0 : index
    %101 = vector.load %arg7[%c16_138, %c0_139] : memref<144x768xbf16, #tpu.memory_space<vmem>>, vector<16x768xbf16>
    tpu.vector_store %arg7[%c16_138, %c0_139], %100 {strides = array<i32>} : memref<144x768xbf16, #tpu.memory_space<vmem>>, vector<16x768xbf16>,
    %c0_140 = arith.constant 0 : index
    %c15_141 = arith.constant 15 : index
    %102 = vector.load %arg6[%c0_140, %c15_141] : memref<16x832xbf16, #tpu.memory_space<vmem>>, vector<16x768xbf16>
    %c32_142 = arith.constant 32 : index
    %c0_143 = arith.constant 0 : index
    %103 = vector.load %arg7[%c32_142, %c0_143] : memref<144x768xbf16, #tpu.memory_space<vmem>>, vector<16x768xbf16>
    tpu.vector_store %arg7[%c32_142, %c0_143], %102 {strides = array<i32>} : memref<144x768xbf16, #tpu.memory_space<vmem>>, vector<16x768xbf16>,
    %c0_144 = arith.constant 0 : index
    %c31_145 = arith.constant 31 : index
    %104 = vector.load %arg6[%c0_144, %c31_145] : memref<16x832xbf16, #tpu.memory_space<vmem>>, vector<16x768xbf16>
    %c48_146 = arith.constant 48 : index
    %c0_147 = arith.constant 0 : index
    %105 = vector.load %arg7[%c48_146, %c0_147] : memref<144x768xbf16, #tpu.memory_space<vmem>>, vector<16x768xbf16>
    tpu.vector_store %arg7[%c48_146, %c0_147], %104 {strides = array<i32>} : memref<144x768xbf16, #tpu.memory_space<vmem>>, vector<16x768xbf16>,
    %c0_148 = arith.constant 0 : index
    %c32_149 = arith.constant 32 : index
    %106 = vector.load %arg6[%c0_148, %c32_149] : memref<16x832xbf16, #tpu.memory_space<vmem>>, vector<16x768xbf16>
    %c64_150 = arith.constant 64 : index
    %c0_151 = arith.constant 0 : index
    %107 = vector.load %arg7[%c64_150, %c0_151] : memref<144x768xbf16, #tpu.memory_space<vmem>>, vector<16x768xbf16>
    tpu.vector_store %arg7[%c64_150, %c0_151], %106 {strides = array<i32>} : memref<144x768xbf16, #tpu.memory_space<vmem>>, vector<16x768xbf16>,
    %c0_152 = arith.constant 0 : index
    %c33_153 = arith.constant 33 : index
    %108 = vector.load %arg6[%c0_152, %c33_153] : memref<16x832xbf16, #tpu.memory_space<vmem>>, vector<16x768xbf16>
    %c80_154 = arith.constant 80 : index
    %c0_155 = arith.constant 0 : index
    %109 = vector.load %arg7[%c80_154, %c0_155] : memref<144x768xbf16, #tpu.memory_space<vmem>>, vector<16x768xbf16>
    tpu.vector_store %arg7[%c80_154, %c0_155], %108 {strides = array<i32>} : memref<144x768xbf16, #tpu.memory_space<vmem>>, vector<16x768xbf16>,
    %c0_156 = arith.constant 0 : index
    %c49_157 = arith.constant 49 : index
    %110 = vector.load %arg6[%c0_156, %c49_157] : memref<16x832xbf16, #tpu.memory_space<vmem>>, vector<16x768xbf16>
    %c96_158 = arith.constant 96 : index
    %c0_159 = arith.constant 0 : index
    %111 = vector.load %arg7[%c96_158, %c0_159] : memref<144x768xbf16, #tpu.memory_space<vmem>>, vector<16x768xbf16>
    tpu.vector_store %arg7[%c96_158, %c0_159], %110 {strides = array<i32>} : memref<144x768xbf16, #tpu.memory_space<vmem>>, vector<16x768xbf16>,
    %c0_160 = arith.constant 0 : index
    %c50_161 = arith.constant 50 : index
    %112 = vector.load %arg6[%c0_160, %c50_161] : memref<16x832xbf16, #tpu.memory_space<vmem>>, vector<16x768xbf16>
    %c112_162 = arith.constant 112 : index
    %c0_163 = arith.constant 0 : index
    %113 = vector.load %arg7[%c112_162, %c0_163] : memref<144x768xbf16, #tpu.memory_space<vmem>>, vector<16x768xbf16>
    tpu.vector_store %arg7[%c112_162, %c0_163], %112 {strides = array<i32>} : memref<144x768xbf16, #tpu.memory_space<vmem>>, vector<16x768xbf16>,
    %c0_164 = arith.constant 0 : index
    %c51_165 = arith.constant 51 : index
    %114 = vector.load %arg6[%c0_164, %c51_165] : memref<16x832xbf16, #tpu.memory_space<vmem>>, vector<16x768xbf16>
    %c128_166 = arith.constant 128 : index
    %c0_167 = arith.constant 0 : index
    %115 = vector.load %arg7[%c128_166, %c0_167] : memref<144x768xbf16, #tpu.memory_space<vmem>>, vector<16x768xbf16>
    tpu.vector_store %arg7[%c128_166, %c0_167], %114 {strides = array<i32>} : memref<144x768xbf16, #tpu.memory_space<vmem>>, vector<16x768xbf16>,
    %c3 = arith.constant 3 : index
    %c0_168 = arith.constant 0 : index
    %c0_169 = arith.constant 0 : index
    %116 = vector.load %arg2[%c3, %c0_168, %c0_169] : memref<5x16x144xbf16, #tpu.memory_space<vmem>>, vector<1x16x144xbf16>
    %117 = vector.shape_cast %116 : vector<1x16x144xbf16> to vector<16x144xbf16>
    %c0_170 = arith.constant 0 : index
    %c0_171 = arith.constant 0 : index
    %118 = vector.load %arg7[%c0_170, %c0_171] : memref<144x768xbf16, #tpu.memory_space<vmem>>, vector<144x768xbf16>
    %cst_172 = arith.constant dense<0.000000e+00> : vector<16x768xf32>
    %119 = tpu.matmul %117, %118, %cst_172 {dimension_numbers = #tpu.dot_dimension_numbers<[1], [0], [0], [1], [0, 0, 1, 1], [], []>} : vector<16x144xbf16>, vector<144x768xbf16>, vector<16x768xf32> -> vector<16x768xf32>
    %c3_173 = arith.constant 3 : index
    %c0_174 = arith.constant 0 : index
    %c0_175 = arith.constant 0 : index
    %120 = vector.load %arg3[%c3_173, %c0_174, %c0_175] : memref<5x16x1xf32, #tpu.memory_space<vmem>>, vector<1x16x1xf32>
    %121 = vector.shape_cast %120 : vector<1x16x1xf32> to vector<16x1xf32>
    %122 = vector.broadcast %121 : vector<16x1xf32> to vector<16x768xf32>
    %123 = arith.addf %119, %122 : vector<16x768xf32>
    %124 = vector.broadcast %0 : vector<1x768xf32> to vector<16x768xf32>
    %125 = arith.mulf %123, %124 : vector<16x768xf32>
    %126 = arith.truncf %125 : vector<16x768xf32> to vector<16x768xbf16>
    %c0_176 = arith.constant 0 : index
    %c32_177 = arith.constant 32 : index
    %127 = vector.load %arg6[%c0_176, %c32_177] : memref<16x832xbf16, #tpu.memory_space<vmem>>, vector<16x768xbf16>
    tpu.vector_store %arg6[%c0_176, %c32_177], %126 {strides = array<i32>} : memref<16x832xbf16, #tpu.memory_space<vmem>>, vector<16x768xbf16>,
    %c0_178 = arith.constant 0 : index
    %c13_179 = arith.constant 13 : index
    %128 = vector.load %arg6[%c0_178, %c13_179] : memref<16x832xbf16, #tpu.memory_space<vmem>>, vector<16x768xbf16>
    %c0_180 = arith.constant 0 : index
    %c0_181 = arith.constant 0 : index
    %129 = vector.load %arg7[%c0_180, %c0_181] : memref<144x768xbf16, #tpu.memory_space<vmem>>, vector<16x768xbf16>
    tpu.vector_store %arg7[%c0_180, %c0_181], %128 {strides = array<i32>} : memref<144x768xbf16, #tpu.memory_space<vmem>>, vector<16x768xbf16>,
    %c0_182 = arith.constant 0 : index
    %c14_183 = arith.constant 14 : index
    %130 = vector.load %arg6[%c0_182, %c14_183] : memref<16x832xbf16, #tpu.memory_space<vmem>>, vector<16x768xbf16>
    %c16_184 = arith.constant 16 : index
    %c0_185 = arith.constant 0 : index
    %131 = vector.load %arg7[%c16_184, %c0_185] : memref<144x768xbf16, #tpu.memory_space<vmem>>, vector<16x768xbf16>
    tpu.vector_store %arg7[%c16_184, %c0_185], %130 {strides = array<i32>} : memref<144x768xbf16, #tpu.memory_space<vmem>>, vector<16x768xbf16>,
    %c0_186 = arith.constant 0 : index
    %c15_187 = arith.constant 15 : index
    %132 = vector.load %arg6[%c0_186, %c15_187] : memref<16x832xbf16, #tpu.memory_space<vmem>>, vector<16x768xbf16>
    %c32_188 = arith.constant 32 : index
    %c0_189 = arith.constant 0 : index
    %133 = vector.load %arg7[%c32_188, %c0_189] : memref<144x768xbf16, #tpu.memory_space<vmem>>, vector<16x768xbf16>
    tpu.vector_store %arg7[%c32_188, %c0_189], %132 {strides = array<i32>} : memref<144x768xbf16, #tpu.memory_space<vmem>>, vector<16x768xbf16>,
    %c0_190 = arith.constant 0 : index
    %c31_191 = arith.constant 31 : index
    %134 = vector.load %arg6[%c0_190, %c31_191] : memref<16x832xbf16, #tpu.memory_space<vmem>>, vector<16x768xbf16>
    %c48_192 = arith.constant 48 : index
    %c0_193 = arith.constant 0 : index
    %135 = vector.load %arg7[%c48_192, %c0_193] : memref<144x768xbf16, #tpu.memory_space<vmem>>, vector<16x768xbf16>
    tpu.vector_store %arg7[%c48_192, %c0_193], %134 {strides = array<i32>} : memref<144x768xbf16, #tpu.memory_space<vmem>>, vector<16x768xbf16>,
    %c0_194 = arith.constant 0 : index
    %c32_195 = arith.constant 32 : index
    %136 = vector.load %arg6[%c0_194, %c32_195] : memref<16x832xbf16, #tpu.memory_space<vmem>>, vector<16x768xbf16>
    %c64_196 = arith.constant 64 : index
    %c0_197 = arith.constant 0 : index
    %137 = vector.load %arg7[%c64_196, %c0_197] : memref<144x768xbf16, #tpu.memory_space<vmem>>, vector<16x768xbf16>
    tpu.vector_store %arg7[%c64_196, %c0_197], %136 {strides = array<i32>} : memref<144x768xbf16, #tpu.memory_space<vmem>>, vector<16x768xbf16>,
    %c0_198 = arith.constant 0 : index
    %c33_199 = arith.constant 33 : index
    %138 = vector.load %arg6[%c0_198, %c33_199] : memref<16x832xbf16, #tpu.memory_space<vmem>>, vector<16x768xbf16>
    %c80_200 = arith.constant 80 : index
    %c0_201 = arith.constant 0 : index
    %139 = vector.load %arg7[%c80_200, %c0_201] : memref<144x768xbf16, #tpu.memory_space<vmem>>, vector<16x768xbf16>
    tpu.vector_store %arg7[%c80_200, %c0_201], %138 {strides = array<i32>} : memref<144x768xbf16, #tpu.memory_space<vmem>>, vector<16x768xbf16>,
    %c0_202 = arith.constant 0 : index
    %c49_203 = arith.constant 49 : index
    %140 = vector.load %arg6[%c0_202, %c49_203] : memref<16x832xbf16, #tpu.memory_space<vmem>>, vector<16x768xbf16>
    %c96_204 = arith.constant 96 : index
    %c0_205 = arith.constant 0 : index
    %141 = vector.load %arg7[%c96_204, %c0_205] : memref<144x768xbf16, #tpu.memory_space<vmem>>, vector<16x768xbf16>
    tpu.vector_store %arg7[%c96_204, %c0_205], %140 {strides = array<i32>} : memref<144x768xbf16, #tpu.memory_space<vmem>>, vector<16x768xbf16>,
    %c0_206 = arith.constant 0 : index
    %c50_207 = arith.constant 50 : index
    %142 = vector.load %arg6[%c0_206, %c50_207] : memref<16x832xbf16, #tpu.memory_space<vmem>>, vector<16x768xbf16>
    %c112_208 = arith.constant 112 : index
    %c0_209 = arith.constant 0 : index
    %143 = vector.load %arg7[%c112_208, %c0_209] : memref<144x768xbf16, #tpu.memory_space<vmem>>, vector<16x768xbf16>
    tpu.vector_store %arg7[%c112_208, %c0_209], %142 {strides = array<i32>} : memref<144x768xbf16, #tpu.memory_space<vmem>>, vector<16x768xbf16>,
    %c0_210 = arith.constant 0 : index
    %c51_211 = arith.constant 51 : index
    %144 = vector.load %arg6[%c0_210, %c51_211] : memref<16x832xbf16, #tpu.memory_space<vmem>>, vector<16x768xbf16>
    %c128_212 = arith.constant 128 : index
    %c0_213 = arith.constant 0 : index
    %145 = vector.load %arg7[%c128_212, %c0_213] : memref<144x768xbf16, #tpu.memory_space<vmem>>, vector<16x768xbf16>
    tpu.vector_store %arg7[%c128_212, %c0_213], %144 {strides = array<i32>} : memref<144x768xbf16, #tpu.memory_space<vmem>>, vector<16x768xbf16>,
    %c4 = arith.constant 4 : index
    %c0_214 = arith.constant 0 : index
    %c0_215 = arith.constant 0 : index
    %146 = vector.load %arg2[%c4, %c0_214, %c0_215] : memref<5x16x144xbf16, #tpu.memory_space<vmem>>, vector<1x16x144xbf16>
    %147 = vector.shape_cast %146 : vector<1x16x144xbf16> to vector<16x144xbf16>
    %c0_216 = arith.constant 0 : index
    %c0_217 = arith.constant 0 : index
    %148 = vector.load %arg7[%c0_216, %c0_217] : memref<144x768xbf16, #tpu.memory_space<vmem>>, vector<144x768xbf16>
    %cst_218 = arith.constant dense<0.000000e+00> : vector<16x768xf32>
    %149 = tpu.matmul %147, %148, %cst_218 {dimension_numbers = #tpu.dot_dimension_numbers<[1], [0], [0], [1], [0, 0, 1, 1], [], []>} : vector<16x144xbf16>, vector<144x768xbf16>, vector<16x768xf32> -> vector<16x768xf32>
    %c4_219 = arith.constant 4 : index
    %c0_220 = arith.constant 0 : index
    %c0_221 = arith.constant 0 : index
    %150 = vector.load %arg3[%c4_219, %c0_220, %c0_221] : memref<5x16x1xf32, #tpu.memory_space<vmem>>, vector<1x16x1xf32>
    %151 = vector.shape_cast %150 : vector<1x16x1xf32> to vector<16x1xf32>
    %152 = vector.broadcast %151 : vector<16x1xf32> to vector<16x768xf32>
    %153 = arith.addf %149, %152 : vector<16x768xf32>
    %154 = arith.addf %153, %5 : vector<16x768xf32>
    %cst_222 = arith.constant 0.000000e+00 : f32
    %155 = vector.broadcast %cst_222 : f32 to vector<16x768xf32>
    %156 = arith.maximumf %154, %155 : vector<16x768xf32>
    %c0_223 = arith.constant 0 : index
    %c0_224 = arith.constant 0 : index
    %157 = vector.load %arg5[%c0_223, %c0_224] : memref<16x768xf32, #tpu.memory_space<vmem>>, vector<16x768xf32>
    tpu.vector_store %arg5[%c0_223, %c0_224], %156 {strides = array<i32>} : memref<16x768xf32, #tpu.memory_space<vmem>>, vector<16x768xf32>,
    return
  }
  func.func @transform_0(%arg0: i32) -> (i32, i32) {
    %c0_i32 = arith.constant 0 : i32
    %c0_i32_0 = arith.constant 0 : i32
    return %c0_i32, %arg0 : i32, i32
  }
  func.func @transform_1(%arg0: i32) -> (i32, i32, i32) {
    %c0_i32 = arith.constant 0 : i32
    %c0_i32_0 = arith.constant 0 : i32
    %c0_i32_1 = arith.constant 0 : i32
    %c0_i32_2 = arith.constant 0 : i32
    return %c0_i32, %c0_i32_0, %c0_i32_1 : i32, i32, i32
  }
  func.func @transform_2(%arg0: i32) -> (i32, i32, i32) {
    %c0_i32 = arith.constant 0 : i32
    %c0_i32_0 = arith.constant 0 : i32
    %c0_i32_1 = arith.constant 0 : i32
    %c0_i32_2 = arith.constant 0 : i32
    return %c0_i32, %c0_i32_0, %c0_i32_1 : i32, i32, i32
  }
  func.func @transform_3(%arg0: i32) -> (i32, i32) {
    %c0_i32 = arith.constant 0 : i32
    %c0_i32_0 = arith.constant 0 : i32
    %c0_i32_1 = arith.constant 0 : i32
    return %c0_i32, %c0_i32_0 : i32, i32
  }
  func.func @transform_4(%arg0: i32) -> (i32, i32) {
    %c0_i32 = arith.constant 0 : i32
    %c0_i32_0 = arith.constant 0 : i32
    return %c0_i32, %arg0 : i32, i32
  }
}

</mosaic_0001>

<bundles_post_ra>
// kernel: fused_conv5_forward.1
= control target key start
LH: loop header
LB: loop body
LE: loop exit
PB: predicated region body
PF: predicated region fallthrough
CT: control target
= control target key end

     0   :  { %vm19_vm0 = vcmask 261120   ;;  %v3585_v3 = vmov 0   ;;  %s3586_s5 = smov 32   ;;  %vm21_vm1 = vcmask 523520   ;;  %vm72_vm2 = vcmask 1047808   ;;  %s3587_s14 = smov 114   ;;  %s4807_s0 = inlined_call_operand.vmem [shape: f32[16,768], index: 0, kind: input, shape index: {}]   ;;  %s4808_s1 = inlined_call_operand.vmem [shape: bf16[5,16,144], index: 1, kind: input, shape index: {}]   ;;  %s4809_s2 = inlined_call_operand.vmem [shape: f32[5,16,1], index: 2, kind: input, shape index: {}]   ;;  %s4810_s3 = inlined_call_operand.vmem [shape: f32[1,768], index: 3, kind: input, shape index: {}]   ;;  %s4811_s4 = inlined_call_operand.vmem [shape: f32[16,768], index: 4, kind: output, shape index: {}]  }
   0x1   :  { %v23_v0 = vld [vmem:[%s4807_s0] sm:$0xff]  ;;  %v29_v1 = vld [vmem:[%s4807_s0 + $0x30] sm:$0xff]  ;;  %v24_v2 = vld [vmem:[%s4807_s0 + $0x8] sm:$0xff]  ;;  %20 = vst.msk [vmem:[#allocation2] sm:$0xff] %vm19_vm0, %v3585_v3  ;;  %3557 = vset.pattern.permute.xlu0 %v3585_v3  ;;  %3556 = vset.pattern.permute.xlu1 %v3585_v3  ;;  %s3588_s15 = smov 115   ;;  %s3589_s16 = smov 97  }
   0x2   :  { %v35_v4 = vpack.c.bf16 %v29_v1, %v23_v0  ;;  %v30_v5 = vld [vmem:[%s4807_s0 + $0x38] sm:$0xff]  ;;  %v25_v6 = vld [vmem:[%s4807_s0 + $0x10] sm:$0xff]  ;;  %v31_v7 = vld [vmem:[%s4807_s0 + $0x40] sm:$0xff]  ;;  %22 = vst.msk [vmem:[#allocation2 + $0x30] sm:$0xff] %vm21_vm1, %v3585_v3  ;;  %s3590_s17 = smov 113   ;;  %s3591_s18 = smov 95  }
   0x3   :  { %v37_v8 = vpack.c.bf16 %v31_v7, %v25_v6  ;;  %v26_v9 = vld [vmem:[%s4807_s0 + $0x18] sm:$0xff]  ;;  %v32_v10 = vld [vmem:[%s4807_s0 + $0x48] sm:$0xff]  ;;  %v36_v11 = vpack.c.bf16 %v30_v5, %v24_v2  ;;  %v27_v13 = vld [vmem:[%s4807_s0 + $0x20] sm:$0xff]  ;;  %s3592_s19 = smov 96   ;;  %s3593_s20 = smov 78   ;;  %vm580_vm3 = vcmask 130048  }
   0x4   :  { %47 = vrot.lane.b32.xlu0 %v35_v4, %s3586_s5  ;;  %v38_v12 = vpack.c.bf16 %v32_v10, %v26_v9  ;;  %v33_v14 = vld [vmem:[%s4807_s0 + $0x50] sm:$0xff]  ;;  %v28_v15 = vld [vmem:[%s4807_s0 + $0x28] sm:$0xff]  ;;  %v34_v16 = vld [vmem:[%s4807_s0 + $0x58] sm:$0xff]  ;;  %s3594_s21 = smov 79   ;;  %s3595_s22 = smov 77   ;;  %vm108_vm4 = vcmask 941056  }
   0x5   :  { %51 = vrot.lane.b32.xlu1 %v37_v8, %s3586_s5  ;;  %v39_v17 = vpack.c.bf16 %v33_v14, %v27_v13  ;;  %v40_v18 = vpack.c.bf16 %v34_v16, %v28_v15  ;;  %v3724_v31 = vld [vmem:[%s4808_s1 + $0x4] ss:$8 sps:$4 sm:$0xff]   ;;  %vm155_vm5 = vcmask 932864   ;;  %vm202_vm6 = vcmask 924672  }
   0x6   :  { %3506 = vmatprep.mubr.msk.bf16.mxu0 %vm580_vm3, %v3724_v31  ;;  %3507 = vmatprep.mubr.msk.bf16.mxu1 %vm580_vm3, %v3724_v31  ;;  %v559_v37 = vld [vmem:[%s4809_s2] sm:$0xff]  ;;  %v560_v40 = vld [vmem:[%s4809_s2 + $0x8] sm:$0xff]  ;;  %vm249_vm7 = vcmask 793600   ;;  %vm296_vm8 = vcmask 785408   ;;  %vm343_vm9 = vcmask 777216   ;;  %vm390_vm10 = vcmask 646144  }
   0x7   :  { %vm437_vm11 = vcmask 637952   ;;  %vm484_vm12 = vcmask 629760  }
   0x8   :  { %49 = vrot.lane.b32.xlu0 %v36_v11, %s3586_s5 }
   0x9   :  { %53 = vrot.lane.b32.xlu1 %v38_v12, %s3586_s5 }
   0xc   :  { %55 = vrot.lane.b32.xlu0 %v39_v17, %s3586_s5 }
   0xd   :  { %57 = vrot.lane.b32.xlu1 %v40_v18, %s3586_s5 }
  0x76   :  { %v48_v19 = vpop.permute.xlu0 %47 }
  0x77   :  { %73 = vst.msk [vmem:[#allocation2] sm:$0xff] %vm72_vm2, %v48_v19  ;;  %v52_v20 = vpop.permute.xlu1 %51 }
  0x7a   :  { %v50_v24 = vpop.permute.xlu0 %49 }
  0x7b   :  { %v3665_v21 = vpop.permute.xlu1 %53  ;;  %v61_v25 = vsel %vm19_vm0, %v50_v24, %v52_v20  ;;  %v60_v27 = vsel %vm19_vm0, %v48_v19, %v50_v24 }
  0x7c   :  { %v62_v28 = vsel %vm19_vm0, %v52_v20, %v3665_v21 }
  0x7e   :  { %v127_v22 = vld [vmem:[#allocation2] sm:$0xff]  ;;  %v56_v29 = vpop.permute.xlu0 %55 }
  0x7f   :  { %141 = vrot.lane.b32.xlu1 %v127_v22, %s3587_s14  ;;  %94 = vrot.lane.b32.xlu0 %v127_v22, %s3588_s15  ;;  %v58_v23 = vpop.permute.xlu1 %57  ;;  %v63_v32 = vsel %vm19_vm0, %v3665_v21, %v56_v29 }
  0x80   :  { %79 = vst.msk [vmem:[#allocation2 + $0x30] sm:$0xff] %vm19_vm0, %v58_v23  ;;  %v64_v30 = vsel %vm19_vm0, %v56_v29, %v58_v23 }
  0x83   :  { %235 = vrot.lane.b32.xlu1 %v127_v22, %s3589_s16  ;;  %188 = vrot.lane.b32.xlu0 %v127_v22, %s3590_s17 }
  0x87   :  { %329 = vrot.lane.b32.xlu1 %v127_v22, %s3591_s18  ;;  %282 = vrot.lane.b32.xlu0 %v127_v22, %s3592_s19  ;;  %v3679_v26 = vld [vmem:[#allocation2 + $0x30] sm:$0xff] }
  0x8b   :  { %423 = vrot.lane.b32.xlu1 %v127_v22, %s3593_s20  ;;  %376 = vrot.lane.b32.xlu0 %v127_v22, %s3594_s21 }
  0x8f   :  { %470 = vrot.lane.b32.xlu0 %v127_v22, %s3595_s22  ;;  %98 = vrot.lane.b32.xlu1 %v61_v25, %s3588_s15 }
  0x93   :  { %106 = vrot.lane.b32.xlu0 %v3679_v26, %s3588_s15  ;;  %143 = vrot.lane.b32.xlu1 %v60_v27, %s3587_s14 }
  0x97   :  { %153 = vrot.lane.b32.xlu0 %v3679_v26, %s3587_s14  ;;  %192 = vrot.lane.b32.xlu1 %v61_v25, %s3590_s17 }
  0x9b   :  { %200 = vrot.lane.b32.xlu0 %v3679_v26, %s3590_s17  ;;  %237 = vrot.lane.b32.xlu1 %v60_v27, %s3589_s16 }
  0x9f   :  { %247 = vrot.lane.b32.xlu0 %v3679_v26, %s3589_s16  ;;  %286 = vrot.lane.b32.xlu1 %v61_v25, %s3592_s19 }
  0xa3   :  { %294 = vrot.lane.b32.xlu0 %v3679_v26, %s3592_s19  ;;  %331 = vrot.lane.b32.xlu1 %v60_v27, %s3591_s18 }
  0xa7   :  { %341 = vrot.lane.b32.xlu0 %v3679_v26, %s3591_s18  ;;  %380 = vrot.lane.b32.xlu1 %v61_v25, %s3594_s21 }
  0xab   :  { %388 = vrot.lane.b32.xlu0 %v3679_v26, %s3594_s21  ;;  %425 = vrot.lane.b32.xlu1 %v60_v27, %s3593_s20 }
  0xaf   :  { %435 = vrot.lane.b32.xlu0 %v3679_v26, %s3593_s20  ;;  %474 = vrot.lane.b32.xlu1 %v61_v25, %s3595_s22 }
  0xb3   :  { %100 = vrot.lane.b32.xlu1 %v62_v28, %s3588_s15  ;;  %96 = vrot.lane.b32.xlu0 %v60_v27, %s3588_s15 }
  0xb7   :  { %145 = vrot.lane.b32.xlu0 %v61_v25, %s3587_s14  ;;  %104 = vrot.lane.b32.xlu1 %v64_v30, %s3588_s15 }
  0xbb   :  { %190 = vrot.lane.b32.xlu0 %v60_v27, %s3590_s17  ;;  %147 = vrot.lane.b32.xlu1 %v62_v28, %s3587_s14 }
  0xbf   :  { %239 = vrot.lane.b32.xlu0 %v61_v25, %s3589_s16  ;;  %151 = vrot.lane.b32.xlu1 %v64_v30, %s3587_s14 }
  0xc3   :  { %284 = vrot.lane.b32.xlu0 %v60_v27, %s3592_s19  ;;  %194 = vrot.lane.b32.xlu1 %v62_v28, %s3590_s17 }
  0xc7   :  { %333 = vrot.lane.b32.xlu0 %v61_v25, %s3591_s18  ;;  %198 = vrot.lane.b32.xlu1 %v64_v30, %s3590_s17 }
  0xcb   :  { %378 = vrot.lane.b32.xlu0 %v60_v27, %s3594_s21  ;;  %241 = vrot.lane.b32.xlu1 %v62_v28, %s3589_s16 }
  0xcf   :  { %427 = vrot.lane.b32.xlu0 %v61_v25, %s3593_s20  ;;  %245 = vrot.lane.b32.xlu1 %v64_v30, %s3589_s16 }
  0xd3   :  { %472 = vrot.lane.b32.xlu0 %v60_v27, %s3595_s22  ;;  %288 = vrot.lane.b32.xlu1 %v62_v28, %s3592_s19 }
  0xd7   :  { %292 = vrot.lane.b32.xlu1 %v64_v30, %s3592_s19  ;;  %102 = vrot.lane.b32.xlu0 %v63_v32, %s3588_s15 }
  0xdb   :  { %335 = vrot.lane.b32.xlu1 %v62_v28, %s3591_s18  ;;  %149 = vrot.lane.b32.xlu0 %v63_v32, %s3587_s14 }
  0xdf   :  { %339 = vrot.lane.b32.xlu1 %v64_v30, %s3591_s18  ;;  %196 = vrot.lane.b32.xlu0 %v63_v32, %s3590_s17 }
  0xe3   :  { %382 = vrot.lane.b32.xlu1 %v62_v28, %s3594_s21  ;;  %243 = vrot.lane.b32.xlu0 %v63_v32, %s3589_s16 }
  0xe7   :  { %386 = vrot.lane.b32.xlu1 %v64_v30, %s3594_s21  ;;  %290 = vrot.lane.b32.xlu0 %v63_v32, %s3592_s19 }
  0xeb   :  { %429 = vrot.lane.b32.xlu1 %v62_v28, %s3593_s20  ;;  %337 = vrot.lane.b32.xlu0 %v63_v32, %s3591_s18 }
  0xef   :  { %433 = vrot.lane.b32.xlu1 %v64_v30, %s3593_s20  ;;  %384 = vrot.lane.b32.xlu0 %v63_v32, %s3594_s21 }
  0xf1   :  { %v142_v33 = vpop.permute.xlu1 %141  ;;  %v95_v34 = vpop.permute.xlu0 %94 }
  0xf3   :  { %476 = vrot.lane.b32.xlu1 %v62_v28, %s3595_s22  ;;  %431 = vrot.lane.b32.xlu0 %v63_v32, %s3593_s20 }
  0xf5   :  { %v236_v35 = vpop.permute.xlu1 %235  ;;  %v189_v36 = vpop.permute.xlu0 %188 }
  0xf7   :  { %480 = vrot.lane.b32.xlu1 %v64_v30, %s3595_s22  ;;  %478 = vrot.lane.b32.xlu0 %v63_v32, %s3595_s22 }
  0xf9   :  { %v3759_v38 = vpop.permute.xlu1 %329  ;;  %v283_v39 = vpop.permute.xlu0 %282 }
  0xfb   :  { %482 = vrot.lane.b32.xlu0 %v3679_v26, %s3595_s22  ;;  %563 = vperm.xlu1 %3556, %v559_v37  }
  0xfd   :  { %v3766_v41 = vpop.permute.xlu1 %423  ;;  %v3768_v42 = vpop.permute.xlu0 %376 }
  0xff   :  { %568 = vperm.xlu0 %3557, %v560_v40  }
 0x101   :  { %v3770_v43 = vpop.permute.xlu1 %98  ;;  %v3772_v44 = vpop.permute.xlu0 %470 }
 0x105   :  { %v144_v45 = vpop.permute.xlu1 %143  ;;  %v3774_v46 = vpop.permute.xlu0 %106 }
 0x106   :  { %v156_v4 = vsel %vm155_vm5, %v142_v33, %v144_v45 }
 0x109   :  { %v3776_v47 = vpop.permute.xlu1 %192  ;;  %v3778_v48 = vpop.permute.xlu0 %153 }
 0x10d   :  { %v238_v49 = vpop.permute.xlu1 %237  ;;  %v3780_v50 = vpop.permute.xlu0 %200 }
 0x10e   :  { %v250_v12 = vsel %vm249_vm7, %v236_v35, %v238_v49 }
 0x111   :  { %v3782_v51 = vpop.permute.xlu1 %286  ;;  %v3784_v52 = vpop.permute.xlu0 %247 }
 0x115   :  { %v332_v53 = vpop.permute.xlu1 %331  ;;  %v3786_v54 = vpop.permute.xlu0 %294 }
 0x116   :  { %v344_v20 = vsel %vm343_vm9, %v3759_v38, %v332_v53 }
 0x119   :  { %v3788_v55 = vpop.permute.xlu1 %380  ;;  %v3790_v56 = vpop.permute.xlu0 %341 }
 0x11d   :  { %v426_v57 = vpop.permute.xlu1 %425  ;;  %v3792_v58 = vpop.permute.xlu0 %388 }
 0x11e   :  { %v438_v28 = vsel %vm437_vm11, %v3766_v41, %v426_v57 }
 0x121   :  { %v3794_v59 = vpop.permute.xlu1 %474  ;;  %v3796_v60 = vpop.permute.xlu0 %435 }
 0x125   :  { %v3798_v61 = vpop.permute.xlu1 %100  ;;  %v97_v62 = vpop.permute.xlu0 %96 }
 0x126   :  { %v110_v63 = vsel %vm108_vm4, %v97_v62, %v3770_v43  ;;  %v109_v0 = vsel %vm108_vm4, %v95_v34, %v97_v62  ;;  %v3846_v34 = vld [vmem:[%s4808_s1] ss:$8 sps:$4 sm:$0xff]   ;;  %v111_v40 = vsel %vm108_vm4, %v3770_v43, %v3798_v61 }
 0x127   :  { %584 = vmatprep.subr.bf16.mxu0 %v110_v63 }
 0x128   :  { %585 = vmatpush1.bf16.msra.mxu0 %v109_v0 }
 0x129   :  { %v105_v1 = vpop.permute.xlu1 %104  ;;  %v3803_v2 = vpop.permute.xlu0 %145 }
 0x12a   :  { %v157_v3 = vsel %vm155_vm5, %v144_v45, %v3803_v2  ;;  %v114_v35 = vsel %vm108_vm4, %v105_v1, %v3774_v46 }
 0x12b   :  { %586 = vmatprep.subr.bf16.mxu0 %v157_v3 }
 0x12c   :  { %587 = vmatpush1.bf16.msra.mxu0 %v156_v4 }
 0x12d   :  { %v3808_v5 = vpop.permute.xlu1 %147  ;;  %v191_v6 = vpop.permute.xlu0 %190 }
 0x12e   :  { %v204_v7 = vsel %vm202_vm6, %v191_v6, %v3776_v47  ;;  %v203_v8 = vsel %vm202_vm6, %v189_v36, %v191_v6  ;;  %v158_v43 = vsel %vm155_vm5, %v3803_v2, %v3808_v5 }
 0x12f   :  { %588 = vmatprep.subr.bf16.mxu0 %v204_v7 }
 0x130   :  { %589 = vmatpush1.bf16.msra.mxu0 %v203_v8 }
 0x131   :  { %v152_v9 = vpop.permute.xlu1 %151  ;;  %v3813_v10 = vpop.permute.xlu0 %239 }
 0x132   :  { %v251_v11 = vsel %vm249_vm7, %v238_v49, %v3813_v10  ;;  %v161_v41 = vsel %vm155_vm5, %v152_v9, %v3778_v48 }
 0x133   :  { %590 = vmatprep.subr.bf16.mxu0 %v251_v11 }
 0x134   :  { %591 = vmatpush1.bf16.msra.mxu0 %v250_v12 }
 0x135   :  { %v3818_v13 = vpop.permute.xlu1 %194  ;;  %v285_v14 = vpop.permute.xlu0 %284 }
 0x136   :  { %v298_v15 = vsel %vm296_vm8, %v285_v14, %v3782_v51  ;;  %v297_v16 = vsel %vm296_vm8, %v283_v39, %v285_v14 }
 0x137   :  { %592 = vmatprep.subr.bf16.mxu0 %v298_v15 }
 0x138   :  { %593 = vmatpush1.bf16.msra.mxu0 %v297_v16 }
 0x139   :  { %v199_v17 = vpop.permute.xlu1 %198  ;;  %v3823_v18 = vpop.permute.xlu0 %333 }
 0x13a   :  { %v345_v19 = vsel %vm343_vm9, %v332_v53, %v3823_v18  ;;  %v208_v48 = vsel %vm202_vm6, %v199_v17, %v3780_v50 }
 0x13b   :  { %594 = vmatprep.subr.bf16.mxu0 %v345_v19 }
 0x13c   :  { %595 = vmatpush1.bf16.msra.mxu0 %v344_v20 }
 0x13d   :  { %v242_v21 = vpop.permute.xlu1 %241  ;;  %v379_v22 = vpop.permute.xlu0 %378 }
 0x13e   :  { %v392_v23 = vsel %vm390_vm10, %v379_v22, %v3788_v55  ;;  %v391_v24 = vsel %vm390_vm10, %v3768_v42, %v379_v22  ;;  %v252_v2 = vsel %vm249_vm7, %v3813_v10, %v242_v21 }
 0x13f   :  { %596 = vmatprep.subr.bf16.mxu0 %v392_v23 }
 0x140   :  { %597 = vmatpush1.bf16.msra.mxu0 %v391_v24 }
 0x141   :  { %v246_v25 = vpop.permute.xlu1 %245  ;;  %v3833_v26 = vpop.permute.xlu0 %427 }
 0x142   :  { %v439_v27 = vsel %vm437_vm11, %v426_v57, %v3833_v26  ;;  %v255_v62 = vsel %vm249_vm7, %v246_v25, %v3784_v52 }
 0x143   :  { %598 = vmatprep.subr.bf16.mxu0 %v439_v27 }
 0x144   :  { %599 = vmatpush1.bf16.msra.mxu0 %v438_v28 }
 0x145   :  { %v289_v29 = vpop.permute.xlu1 %288  ;;  %v473_v30 = vpop.permute.xlu0 %472 }
 0x146   :  { %v486_v32 = vsel %vm484_vm12, %v473_v30, %v3794_v59  ;;  %v485_v33 = vsel %vm484_vm12, %v3772_v44, %v473_v30  ;;  %v299_v6 = vsel %vm296_vm8, %v3782_v51, %v289_v29 }
 0x147   :  { %600 = vmatprep.subr.bf16.mxu0 %v486_v32 }
 0x148   :  { %601 = vmatpush1.bf16.msra.mxu0 %v485_v33 }
 0x149   :  { %v293_v36 = vpop.permute.xlu1 %292  ;;  %670 = vmatprep.subr.bf16.mxu0 %v114_v35  ;;  %v103_v37 = vpop.permute.xlu0 %102 }
 0x14a   :  { %v112_v38 = vsel %vm108_vm4, %v3798_v61, %v103_v37  ;;  %v113_v39 = vsel %vm108_vm4, %v103_v37, %v105_v1  ;;  %v205_v61 = vsel %vm202_vm6, %v3776_v47, %v3818_v13  ;;  %v302_v47 = vsel %vm296_vm8, %v293_v36, %v3786_v54 }
 0x14b   :  { %617 = vmatmul.mubr.bf16.vlgmr.msra.gmra.mrb[0].mxu0 %v3846_v34  ;;  %627 = vmatprep.subr.bf16.mxu1 %v112_v38 }
 0x14c   :  { %628 = vmatpush1.bf16.msra.mxu1 %v111_v40  ;;  %671 = vmatpush1.bf16.msra.mxu0 %v113_v39 }
 0x14d   :  { %v336_v42 = vpop.permute.xlu1 %335  ;;  %672 = vmatprep.subr.bf16.mxu0 %v161_v41  ;;  %v150_v44 = vpop.permute.xlu0 %149  ;;  %3508 = vmatprep.mubr.msk.bf16.mxu0 %vm580_vm3, %v3724_v31 }
 0x14e   :  { %v159_v45 = vsel %vm155_vm5, %v3808_v5, %v150_v44  ;;  %v160_v46 = vsel %vm155_vm5, %v150_v44, %v152_v9  ;;  %v346_v11 = vsel %vm343_vm9, %v3823_v18, %v336_v42 }
 0x14f   :  { %629 = vmatprep.subr.bf16.mxu1 %v159_v45 }
 0x150   :  { %630 = vmatpush1.bf16.msra.mxu1 %v158_v43  ;;  %673 = vmatpush1.bf16.msra.mxu0 %v160_v46 }
 0x151   :  { %v340_v49 = vpop.permute.xlu1 %339  ;;  %674 = vmatprep.subr.bf16.mxu0 %v208_v48  ;;  %v197_v53 = vpop.permute.xlu0 %196 }
 0x152   :  { %v206_v31 = vsel %vm202_vm6, %v3818_v13, %v197_v53  ;;  %v207_v57 = vsel %vm202_vm6, %v197_v53, %v199_v17  ;;  %v349_v7 = vsel %vm343_vm9, %v340_v49, %v3790_v56 }
 0x153   :  { %631 = vmatprep.subr.bf16.mxu1 %v206_v31 }
 0x154   :  { %632 = vmatpush1.bf16.msra.mxu1 %v205_v61  ;;  %675 = vmatpush1.bf16.msra.mxu0 %v207_v57 }
 0x155   :  { %v383_v63 = vpop.permute.xlu1 %382  ;;  %676 = vmatprep.subr.bf16.mxu0 %v255_v62  ;;  %v244_v50 = vpop.permute.xlu0 %243 }
 0x156   :  { %v253_v0 = vsel %vm249_vm7, %v242_v21, %v244_v50  ;;  %v254_v1 = vsel %vm249_vm7, %v244_v50, %v246_v25  ;;  %v393_v15 = vsel %vm390_vm10, %v3788_v55, %v383_v63 }
 0x157   :  { %633 = vmatprep.subr.bf16.mxu1 %v253_v0 }
 0x158   :  { %634 = vmatpush1.bf16.msra.mxu1 %v252_v2  ;;  %677 = vmatpush1.bf16.msra.mxu0 %v254_v1 }
 0x159   :  { %v387_v3 = vpop.permute.xlu1 %386  ;;  %678 = vmatprep.subr.bf16.mxu0 %v302_v47  ;;  %v291_v4 = vpop.permute.xlu0 %290 }
 0x15a   :  { %v300_v52 = vsel %vm296_vm8, %v289_v29, %v291_v4  ;;  %v301_v5 = vsel %vm296_vm8, %v291_v4, %v293_v36  ;;  %v396_v51 = vsel %vm390_vm10, %v387_v3, %v3792_v58 }
 0x15b   :  { %635 = vmatprep.subr.bf16.mxu1 %v300_v52 }
 0x15c   :  { %636 = vmatpush1.bf16.msra.mxu1 %v299_v6  ;;  %679 = vmatpush1.bf16.msra.mxu0 %v301_v5 }
 0x15d   :  { %v430_v8 = vpop.permute.xlu1 %429  ;;  %680 = vmatprep.subr.bf16.mxu0 %v349_v7  ;;  %v338_v9 = vpop.permute.xlu0 %337 }
 0x15e   :  { %v347_v54 = vsel %vm343_vm9, %v336_v42, %v338_v9  ;;  %v348_v10 = vsel %vm343_vm9, %v338_v9, %v340_v49  ;;  %v440_v20 = vsel %vm437_vm11, %v3833_v26, %v430_v8  ;;  %v714_v26 = vlaneseq }
 0x15f   :  { %637 = vmatprep.subr.bf16.mxu1 %v347_v54 }
 0x160   :  { %638 = vmatpush1.bf16.msra.mxu1 %v346_v11  ;;  %681 = vmatpush1.bf16.msra.mxu0 %v348_v10  ;;  %v715_v27 = vshrl.u32 %v714_v26, 7 }
 0x161   :  { %v434_v12 = vpop.permute.xlu1 %433  ;;  %682 = vmatprep.subr.bf16.mxu0 %v396_v51  ;;  %v385_v13 = vpop.permute.xlu0 %384 }
 0x162   :  { %v394_v56 = vsel %vm390_vm10, %v383_v63, %v385_v13  ;;  %v395_v14 = vsel %vm390_vm10, %v385_v13, %v387_v3  ;;  %v443_v16 = vsel %vm437_vm11, %v434_v12, %v3796_v60  ;;  %v716_v28 = vsub.s32 0, %v715_v27 }
 0x163   :  { %639 = vmatprep.subr.bf16.mxu1 %v394_v56  ;;  %v720_v29 = vsub.s32 1, %v715_v27  ;;  %v724_v53 = vsub.s32 2, %v715_v27  ;;  %v728_v31 = vsub.s32 3, %v715_v27  ;;  %v732_v50 = vsub.s32 4, %v715_v27 }
 0x164   :  { %640 = vmatpush1.bf16.msra.mxu1 %v393_v15  ;;  %683 = vmatpush1.bf16.msra.mxu0 %v395_v14  ;;  %v736_v47 = vsub.s32 5, %v715_v27 }
 0x165   :  { %684 = vmatprep.subr.bf16.mxu0 %v443_v16  ;;  %v432_v17 = vpop.permute.xlu0 %431  ;;  %v477_v18 = vpop.permute.xlu1 %476 }
 0x166   :  { %v441_v58 = vsel %vm437_vm11, %v430_v8, %v432_v17  ;;  %v442_v19 = vsel %vm437_vm11, %v432_v17, %v434_v12  ;;  %v487_v60 = vsel %vm484_vm12, %v3794_v59, %v477_v18  ;;  %v18_v59 = vld [vmem:[%s4810_s3] sm:$0x3f] }
 0x167   :  { %641 = vmatprep.subr.bf16.mxu1 %v441_v58  ;;  %v3915_v32 = vrot.slane %v18_v59, %v716_v28  ;;  %v3917_v36 = vrot.slane %v18_v59, %v720_v29  ;;  %v3925_v62 = vrot.slane %v18_v59, %v724_v53  ;;  %v3927_v1 = vrot.slane %v18_v59, %v728_v31 }
 0x168   :  { %642 = vmatpush1.bf16.msra.mxu1 %v440_v20  ;;  %685 = vmatpush1.bf16.msra.mxu0 %v442_v19  ;;  %v3931_v9 = vrot.slane %v18_v59, %v732_v50  ;;  %v3935_v12 = vrot.slane %v18_v59, %v736_v47 }
 0x169   :  { %v479_v21 = vpop.permute.xlu0 %478  ;;  %v481_v22 = vpop.permute.xlu1 %480 }
 0x16a   :  { %v488_v55 = vsel %vm484_vm12, %v477_v18, %v479_v21  ;;  %v489_v25 = vsel %vm484_vm12, %v479_v21, %v481_v22 }
 0x16b   :  { %643 = vmatprep.subr.bf16.mxu1 %v488_v55 }
 0x16c   :  { %644 = vmatpush1.bf16.msra.mxu1 %v487_v60 }
 0x16d   :  { %v483_v23 = vpop.permute.xlu0 %482 }
 0x16e   :  { %v490_v24 = vsel %vm484_vm12, %v481_v22, %v483_v23 }
 0x16f   :  { %660 = vmatmul.mubr.bf16.vlgmr.msra.gmra.mrb[0].mxu1 %v3846_v34  ;;  %686 = vmatprep.subr.bf16.mxu0 %v490_v24 }
 0x170   :  { %687 = vmatpush1.bf16.msra.mxu0 %v489_v25 }
 0x173   :  { %703 = vmatmul.mubr.bf16.vlgmr.msra.gmra.mrb[4].mxu0 %v3846_v34 }
 0x17a   :  { %v564_v30 = vpop.permute.xlu1 %563 }
 0x17e   :  { %v569_v35 = vpop.permute.xlu0 %568 }
 0x21e   :  { %v618_v33 = vpop.f32.mrb[0].mxu0 }
 0x21f   :  { %v620_v37 = vpop.f32.mrb[1].mxu0  ;;  %v619_v38 = vadd.f32 %v618_v33, %v564_v30  ;;  %v3990_v33 = vld [vmem:[%s4808_s1 + $0x14] ss:$8 sps:$4 sm:$0xff]  }
 0x220   :  { %v622_v39 = vpop.f32.mrb[2].mxu0  ;;  %v621_v40 = vadd.f32 %v620_v37, %v564_v30  ;;  %3515 = vmatprep.mubr.msk.bf16.mxu1 %vm580_vm3, %v3990_v33  ;;  %3516 = vmatprep.mubr.msk.bf16.mxu0 %vm580_vm3, %v3990_v33 }
 0x221   :  { %v623_v34 = vadd.f32 %v622_v39, %v569_v35  ;;  %v744_v41 = vmul.f32 %v3915_v32, %v619_v38  ;;  %v624_v42 = vpop.f32.mrb[3].mxu0 }
 0x222   :  { %v625_v44 = vadd.f32 %v624_v42, %v569_v35  ;;  %v745_v45 = vmul.f32 %v3917_v36, %v621_v40 }
 0x223   :  { %v750_v46 = vmul.f32 %v3915_v32, %v623_v34 }
 0x224   :  { %v751_v43 = vmul.f32 %v3917_v36, %v625_v44  ;;  %v3512_v44 = vld [vmem:[%s4809_s2 + $0x18] sm:$0xff] }
 0x225   :  { %v756_v48 = vpack.c.bf16 %v750_v46, %v744_v41 }
 0x226   :  { %v757_v49 = vpack.c.bf16 %v751_v43, %v745_v45  ;;  %v3511_v45 = vld [vmem:[%s4809_s2 + $0x10] sm:$0xff] }
 0x227   :  { %768 = vrot.lane.b32.xlu1 %v756_v48, %s3586_s5 }
 0x22b   :  { %770 = vrot.lane.b32.xlu1 %v757_v49, %s3586_s5 }
 0x242   :  { %v661_v57 = vpop.f32.mrb[0].mxu1 }
 0x243   :  { %v662_v61 = vadd.f32 %v661_v57, %v564_v30  ;;  %v663_v63 = vpop.f32.mrb[1].mxu1 }
 0x244   :  { %v664_v0 = vadd.f32 %v663_v63, %v564_v30  ;;  %v665_v2 = vpop.f32.mrb[2].mxu1 }
 0x245   :  { %v666_v3 = vadd.f32 %v665_v2, %v569_v35  ;;  %v667_v4 = vpop.f32.mrb[3].mxu1  ;;  %v746_v6 = vmul.f32 %v3925_v62, %v662_v61 }
 0x246   :  { %v668_v52 = vadd.f32 %v667_v4, %v569_v35  ;;  %v704_v5 = vpop.f32.mrb[4].mxu0  ;;  %v747_v10 = vmul.f32 %v3927_v1, %v664_v0 }
 0x247   :  { %v752_v7 = vmul.f32 %v3925_v62, %v666_v3  ;;  %v705_v8 = vadd.f32 %v704_v5, %v564_v30  ;;  %v706_v54 = vpop.f32.mrb[5].mxu0 }
 0x248   :  { %v753_v11 = vmul.f32 %v3927_v1, %v668_v52  ;;  %v707_v51 = vadd.f32 %v706_v54, %v564_v30  ;;  %v708_v13 = vpop.f32.mrb[6].mxu0 }
 0x249   :  { %v709_v56 = vadd.f32 %v708_v13, %v569_v35  ;;  %v710_v14 = vpop.f32.mrb[7].mxu0  ;;  %v758_v15 = vpack.c.bf16 %v752_v7, %v746_v6  ;;  %v748_v18 = vmul.f32 %v3931_v9, %v705_v8 }
 0x24a   :  { %v711_v16 = vadd.f32 %v710_v14, %v569_v35  ;;  %v759_v17 = vpack.c.bf16 %v753_v11, %v747_v10  ;;  %v749_v19 = vmul.f32 %v3935_v12, %v707_v51 }
 0x24b   :  { %v754_v58 = vmul.f32 %v3931_v9, %v709_v56  ;;  %772 = vrot.lane.b32.xlu0 %v758_v15, %s3586_s5 }
 0x24c   :  { %v755_v20 = vmul.f32 %v3935_v12, %v711_v16  ;;  %774 = vrot.lane.b32.xlu1 %v759_v17, %s3586_s5 }
 0x24d   :  { %v760_v21 = vpack.c.bf16 %v754_v58, %v748_v18 }
 0x24e   :  { %v761_v55 = vpack.c.bf16 %v755_v20, %v749_v19 }
 0x24f   :  { %776 = vrot.lane.b32.xlu0 %v760_v21, %s3586_s5 }
 0x250   :  { %778 = vrot.lane.b32.xlu1 %v761_v55, %s3586_s5 }
 0x299   :  { %v769_v60 = vpop.permute.xlu1 %768 }
 0x29a   :  { %792 = vst.msk [vmem:[#allocation2] sm:$0xff] %vm72_vm2, %v769_v60 }
 0x29d   :  { %v771_v23 = vpop.permute.xlu1 %770 }
 0x29e   :  { %v780_v24 = vsel %vm19_vm0, %v769_v60, %v771_v23 }
 0x2a1   :  { %v799_v22 = vld [vmem:[#allocation2] sm:$0xff] }
 0x2a2   :  { %813 = vrot.lane.b32.xlu0 %v799_v22, %s3588_s15  ;;  %859 = vrot.lane.b32.xlu1 %v799_v22, %s3587_s14 }
 0x2a6   :  { %905 = vrot.lane.b32.xlu0 %v799_v22, %s3590_s17  ;;  %951 = vrot.lane.b32.xlu1 %v799_v22, %s3589_s16 }
 0x2aa   :  { %997 = vrot.lane.b32.xlu0 %v799_v22, %s3592_s19  ;;  %1043 = vrot.lane.b32.xlu1 %v799_v22, %s3591_s18 }
 0x2ae   :  { %1089 = vrot.lane.b32.xlu0 %v799_v22, %s3594_s21 }
 0x2b2   :  { %815 = vrot.lane.b32.xlu0 %v780_v24, %s3588_s15 }
 0x2bd   :  { %v773_v25 = vpop.permute.xlu0 %772 }
 0x2be   :  { %v781_v26 = vsel %vm19_vm0, %v771_v23, %v773_v25  ;;  %v775_v27 = vpop.permute.xlu1 %774 }
 0x2bf   :  { %817 = vrot.lane.b32.xlu1 %v781_v26, %s3588_s15  ;;  %863 = vrot.lane.b32.xlu0 %v781_v26, %s3587_s14  ;;  %v782_v28 = vsel %vm19_vm0, %v773_v25, %v775_v27 }
 0x2c1   :  { %v777_v29 = vpop.permute.xlu0 %776 }
 0x2c2   :  { %v779_v59 = vpop.permute.xlu1 %778  ;;  %v783_v30 = vsel %vm19_vm0, %v775_v27, %v777_v29 }
 0x2c3   :  { %798 = vst.msk [vmem:[#allocation2 + $0x30] sm:$0xff] %vm19_vm0, %v779_v59  ;;  %865 = vrot.lane.b32.xlu0 %v782_v28, %s3587_s14  ;;  %819 = vrot.lane.b32.xlu1 %v782_v28, %s3588_s15  ;;  %v784_v37 = vsel %vm19_vm0, %v777_v29, %v779_v59 }
 0x2c7   :  { %907 = vrot.lane.b32.xlu0 %v780_v24, %s3590_s17  ;;  %861 = vrot.lane.b32.xlu1 %v780_v24, %s3587_s14 }
 0x2ca   :  { %v805_v35 = vld [vmem:[#allocation2 + $0x30] sm:$0xff] }
 0x2cb   :  { %955 = vrot.lane.b32.xlu0 %v781_v26, %s3589_s16  ;;  %909 = vrot.lane.b32.xlu1 %v781_v26, %s3590_s17 }
 0x2cf   :  { %957 = vrot.lane.b32.xlu0 %v782_v28, %s3589_s16  ;;  %911 = vrot.lane.b32.xlu1 %v782_v28, %s3590_s17 }
 0x2d3   :  { %999 = vrot.lane.b32.xlu0 %v780_v24, %s3592_s19  ;;  %953 = vrot.lane.b32.xlu1 %v780_v24, %s3589_s16 }
 0x2d7   :  { %1047 = vrot.lane.b32.xlu0 %v781_v26, %s3591_s18  ;;  %1001 = vrot.lane.b32.xlu1 %v781_v26, %s3592_s19 }
 0x2db   :  { %1049 = vrot.lane.b32.xlu0 %v782_v28, %s3591_s18  ;;  %1003 = vrot.lane.b32.xlu1 %v782_v28, %s3592_s19 }
 0x2df   :  { %1091 = vrot.lane.b32.xlu0 %v780_v24, %s3594_s21  ;;  %1045 = vrot.lane.b32.xlu1 %v780_v24, %s3591_s18 }
 0x2e3   :  { %821 = vrot.lane.b32.xlu0 %v783_v30, %s3588_s15  ;;  %1093 = vrot.lane.b32.xlu1 %v781_v26, %s3594_s21 }
 0x2e7   :  { %1139 = vrot.lane.b32.xlu0 %v781_v26, %s3593_s20  ;;  %1095 = vrot.lane.b32.xlu1 %v782_v28, %s3594_s21 }
 0x2eb   :  { %913 = vrot.lane.b32.xlu0 %v783_v30, %s3590_s17  ;;  %867 = vrot.lane.b32.xlu1 %v783_v30, %s3587_s14 }
 0x2ef   :  { %1141 = vrot.lane.b32.xlu0 %v782_v28, %s3593_s20  ;;  %1137 = vrot.lane.b32.xlu1 %v780_v24, %s3593_s20 }
 0x2f3   :  { %1005 = vrot.lane.b32.xlu0 %v783_v30, %s3592_s19  ;;  %959 = vrot.lane.b32.xlu1 %v783_v30, %s3589_s16 }
 0x2f7   :  { %1183 = vrot.lane.b32.xlu0 %v780_v24, %s3595_s22  ;;  %1135 = vrot.lane.b32.xlu1 %v799_v22, %s3593_s20 }
 0x2fb   :  { %1097 = vrot.lane.b32.xlu0 %v783_v30, %s3594_s21  ;;  %1051 = vrot.lane.b32.xlu1 %v783_v30, %s3591_s18 }
 0x2ff   :  { %1181 = vrot.lane.b32.xlu0 %v799_v22, %s3595_s22  ;;  %1185 = vrot.lane.b32.xlu1 %v781_v26, %s3595_s22 }
 0x303   :  { %1189 = vrot.lane.b32.xlu0 %v783_v30, %s3595_s22  ;;  %1143 = vrot.lane.b32.xlu1 %v783_v30, %s3593_s20 }
 0x307   :  { %1187 = vrot.lane.b32.xlu1 %v782_v28, %s3595_s22  ;;  %825 = vrot.lane.b32.xlu0 %v805_v35, %s3588_s15 }
 0x30b   :  { %871 = vrot.lane.b32.xlu0 %v805_v35, %s3587_s14  ;;  %823 = vrot.lane.b32.xlu1 %v784_v37, %s3588_s15 }
 0x30f   :  { %917 = vrot.lane.b32.xlu0 %v805_v35, %s3590_s17  ;;  %869 = vrot.lane.b32.xlu1 %v784_v37, %s3587_s14 }
 0x313   :  { %963 = vrot.lane.b32.xlu0 %v805_v35, %s3589_s16  ;;  %915 = vrot.lane.b32.xlu1 %v784_v37, %s3590_s17 }
 0x314   :  { %v814_v38 = vpop.permute.xlu0 %813  ;;  %v860_v34 = vpop.permute.xlu1 %859 }
 0x317   :  { %1009 = vrot.lane.b32.xlu0 %v805_v35, %s3592_s19  ;;  %961 = vrot.lane.b32.xlu1 %v784_v37, %s3589_s16 }
 0x318   :  { %v906_v39 = vpop.permute.xlu0 %905  ;;  %v952_v42 = vpop.permute.xlu1 %951 }
 0x31b   :  { %1055 = vrot.lane.b32.xlu0 %v805_v35, %s3591_s18  ;;  %1007 = vrot.lane.b32.xlu1 %v784_v37, %s3592_s19 }
 0x31c   :  { %v998_v40 = vpop.permute.xlu0 %997  ;;  %v1044_v43 = vpop.permute.xlu1 %1043 }
 0x31f   :  { %1101 = vrot.lane.b32.xlu0 %v805_v35, %s3594_s21  ;;  %1053 = vrot.lane.b32.xlu1 %v784_v37, %s3591_s18 }
 0x320   :  { %v1090_v41 = vpop.permute.xlu0 %1089 }
 0x323   :  { %1147 = vrot.lane.b32.xlu0 %v805_v35, %s3593_s20  ;;  %1099 = vrot.lane.b32.xlu1 %v784_v37, %s3594_s21 }
 0x324   :  { %v816_v46 = vpop.permute.xlu0 %815 }
 0x325   :  { %v827_v31 = vsel %vm108_vm4, %v814_v38, %v816_v46 }
 0x327   :  { %1193 = vrot.lane.b32.xlu0 %v805_v35, %s3595_s22  ;;  %1145 = vrot.lane.b32.xlu1 %v784_v37, %s3593_s20 }
 0x32b   :  { %1280 = vperm.xlu0 %3557, %v3512_v44   ;;  %1191 = vrot.lane.b32.xlu1 %v784_v37, %s3595_s22 }
 0x32f   :  { %1275 = vperm.xlu1 %3556, %v3511_v45  }
 0x331   :  { %v864_v48 = vpop.permute.xlu0 %863  ;;  %v818_v49 = vpop.permute.xlu1 %817 }
 0x332   :  { %v828_v53 = vsel %vm108_vm4, %v816_v46, %v818_v49 }
 0x333   :  { %1295 = vmatprep.subr.bf16.mxu1 %v828_v53 }
 0x334   :  { %1296 = vmatpush1.bf16.msra.mxu1 %v827_v31 }
 0x335   :  { %v866_v57 = vpop.permute.xlu0 %865  ;;  %v820_v61 = vpop.permute.xlu1 %819 }
 0x336   :  { %v829_v22 = vsel %vm108_vm4, %v818_v49, %v820_v61  ;;  %v875_v28 = vsel %vm155_vm5, %v864_v48, %v866_v57 }
 0x339   :  { %v908_v63 = vpop.permute.xlu0 %907  ;;  %v862_v50 = vpop.permute.xlu1 %861 }
 0x33a   :  { %v874_v0 = vsel %vm155_vm5, %v862_v50, %v864_v48  ;;  %v873_v2 = vsel %vm155_vm5, %v860_v34, %v862_v50  ;;  %v919_v52 = vsel %vm202_vm6, %v906_v39, %v908_v63 }
 0x33b   :  { %1297 = vmatprep.subr.bf16.mxu1 %v874_v0 }
 0x33c   :  { %1298 = vmatpush1.bf16.msra.mxu1 %v873_v2  ;;  %v4086_v2 = vld [vmem:[%s4808_s1 + $0x10] ss:$8 sps:$4 sm:$0xff]  }
 0x33d   :  { %v956_v47 = vpop.permute.xlu0 %955  ;;  %v910_v3 = vpop.permute.xlu1 %909 }
 0x33e   :  { %v920_v4 = vsel %vm202_vm6, %v908_v63, %v910_v3 }
 0x33f   :  { %1299 = vmatprep.subr.bf16.mxu1 %v920_v4 }
 0x340   :  { %1300 = vmatpush1.bf16.msra.mxu1 %v919_v52 }
 0x341   :  { %v958_v5 = vpop.permute.xlu0 %957  ;;  %v912_v6 = vpop.permute.xlu1 %911 }
 0x342   :  { %v921_v37 = vsel %vm202_vm6, %v910_v3, %v912_v6  ;;  %v967_v34 = vsel %vm249_vm7, %v956_v47, %v958_v5 }
 0x345   :  { %v1000_v7 = vpop.permute.xlu0 %999  ;;  %v954_v8 = vpop.permute.xlu1 %953 }
 0x346   :  { %v966_v54 = vsel %vm249_vm7, %v954_v8, %v956_v47  ;;  %v965_v10 = vsel %vm249_vm7, %v952_v42, %v954_v8  ;;  %v1011_v56 = vsel %vm296_vm8, %v998_v40, %v1000_v7 }
 0x347   :  { %1301 = vmatprep.subr.bf16.mxu1 %v966_v54 }
 0x348   :  { %1302 = vmatpush1.bf16.msra.mxu1 %v965_v10 }
 0x349   :  { %v1048_v11 = vpop.permute.xlu0 %1047  ;;  %v1002_v51 = vpop.permute.xlu1 %1001 }
 0x34a   :  { %v1012_v13 = vsel %vm296_vm8, %v1000_v7, %v1002_v51 }
 0x34b   :  { %1303 = vmatprep.subr.bf16.mxu1 %v1012_v13 }
 0x34c   :  { %1304 = vmatpush1.bf16.msra.mxu1 %v1011_v56 }
 0x34d   :  { %v1050_v14 = vpop.permute.xlu0 %1049  ;;  %v1004_v15 = vpop.permute.xlu1 %1003 }
 0x34e   :  { %v1013_v46 = vsel %vm296_vm8, %v1002_v51, %v1004_v15  ;;  %v1059_v53 = vsel %vm343_vm9, %v1048_v11, %v1050_v14 }
 0x351   :  { %v1092_v16 = vpop.permute.xlu0 %1091  ;;  %v1046_v17 = vpop.permute.xlu1 %1045 }
 0x352   :  { %v1058_v18 = vsel %vm343_vm9, %v1046_v17, %v1048_v11  ;;  %v1057_v58 = vsel %vm343_vm9, %v1044_v43, %v1046_v17  ;;  %v1103_v60 = vsel %vm390_vm10, %v1090_v41, %v1092_v16 }
 0x353   :  { %1305 = vmatprep.subr.bf16.mxu1 %v1058_v18 }
 0x354   :  { %1306 = vmatpush1.bf16.msra.mxu1 %v1057_v58 }
 0x355   :  { %v4042_v19 = vpop.permute.xlu0 %821  ;;  %v1094_v20 = vpop.permute.xlu1 %1093 }
 0x356   :  { %v1104_v21 = vsel %vm390_vm10, %v1092_v16, %v1094_v20  ;;  %v830_v55 = vsel %vm108_vm4, %v820_v61, %v4042_v19 }
 0x357   :  { %1307 = vmatprep.subr.bf16.mxu1 %v1104_v21  ;;  %1338 = vmatprep.subr.bf16.mxu0 %v830_v55 }
 0x358   :  { %1308 = vmatpush1.bf16.msra.mxu1 %v1103_v60  ;;  %1339 = vmatpush1.bf16.msra.mxu0 %v829_v22 }
 0x359   :  { %v1140_v23 = vpop.permute.xlu0 %1139  ;;  %v1096_v24 = vpop.permute.xlu1 %1095 }
 0x35a   :  { %v1105_v0 = vsel %vm390_vm10, %v1094_v20, %v1096_v24 }
 0x35d   :  { %v4049_v25 = vpop.permute.xlu0 %913  ;;  %v4051_v26 = vpop.permute.xlu1 %867 }
 0x35e   :  { %v876_v27 = vsel %vm155_vm5, %v866_v57, %v4051_v26  ;;  %v922_v59 = vsel %vm202_vm6, %v912_v6, %v4049_v25 }
 0x35f   :  { %1340 = vmatprep.subr.bf16.mxu0 %v876_v27 }
 0x360   :  { %1341 = vmatpush1.bf16.msra.mxu0 %v875_v28 }
 0x361   :  { %v1142_v29 = vpop.permute.xlu0 %1141  ;;  %1342 = vmatprep.subr.bf16.mxu0 %v922_v59  ;;  %v1138_v30 = vpop.permute.xlu1 %1137 }
 0x362   :  { %v1150_v35 = vsel %vm437_vm11, %v1138_v30, %v1140_v23  ;;  %v1151_v52 = vsel %vm437_vm11, %v1140_v23, %v1142_v29 }
 0x363   :  { %1309 = vmatprep.subr.bf16.mxu1 %v1150_v35 }
 0x364   :  { %1343 = vmatpush1.bf16.msra.mxu0 %v921_v37 }
 0x365   :  { %v4060_v38 = vpop.permute.xlu0 %1005  ;;  %v4062_v39 = vpop.permute.xlu1 %959 }
 0x366   :  { %v968_v40 = vsel %vm249_vm7, %v958_v5, %v4062_v39  ;;  %v1014_v41 = vsel %vm296_vm8, %v1004_v15, %v4060_v38 }
 0x367   :  { %1344 = vmatprep.subr.bf16.mxu0 %v968_v40 }
 0x368   :  { %1345 = vmatpush1.bf16.msra.mxu0 %v967_v34 }
 0x369   :  { %v1184_v42 = vpop.permute.xlu0 %1183  ;;  %1346 = vmatprep.subr.bf16.mxu0 %v1014_v41  ;;  %v1136_v44 = vpop.permute.xlu1 %1135 }
 0x36a   :  { %v1149_v45 = vsel %vm437_vm11, %v1136_v44, %v1138_v30 }
 0x36b   :  { %1310 = vmatpush1.bf16.msra.mxu1 %v1149_v45 }
 0x36c   :  { %1347 = vmatpush1.bf16.msra.mxu0 %v1013_v46 }
 0x36d   :  { %v4071_v43 = vpop.permute.xlu0 %1097  ;;  %v4073_v48 = vpop.permute.xlu1 %1051 }
 0x36e   :  { %v1060_v49 = vsel %vm343_vm9, %v1050_v14, %v4073_v48  ;;  %v1106_v31 = vsel %vm390_vm10, %v1096_v24, %v4071_v43 }
 0x36f   :  { %1348 = vmatprep.subr.bf16.mxu0 %v1060_v49 }
 0x370   :  { %1349 = vmatpush1.bf16.msra.mxu0 %v1059_v53 }
 0x371   :  { %v1182_v57 = vpop.permute.xlu0 %1181  ;;  %1350 = vmatprep.subr.bf16.mxu0 %v1106_v31  ;;  %v1186_v61 = vpop.permute.xlu1 %1185 }
 0x372   :  { %v1195_v63 = vsel %vm484_vm12, %v1182_v57, %v1184_v42  ;;  %v1196_v50 = vsel %vm484_vm12, %v1184_v42, %v1186_v61 }
 0x373   :  { %1311 = vmatprep.subr.bf16.mxu1 %v1196_v50 }
 0x374   :  { %1312 = vmatpush1.bf16.msra.mxu1 %v1195_v63  ;;  %1351 = vmatpush1.bf16.msra.mxu0 %v1105_v0 }
 0x375   :  { %v4088_v47 = vpop.permute.xlu0 %1189  ;;  %v1144_v3 = vpop.permute.xlu1 %1143 }
 0x376   :  { %v1152_v4 = vsel %vm437_vm11, %v1142_v29, %v1144_v3 }
 0x377   :  { %1328 = vmatmul.mubr.bf16.vlgmr.msra.gmra.mrb[4].mxu1 %v4086_v2  ;;  %1352 = vmatprep.subr.bf16.mxu0 %v1152_v4 }
 0x378   :  { %1353 = vmatpush1.bf16.msra.mxu0 %v1151_v52  ;;  %3517 = vmatprep.mubr.msk.bf16.mxu1 %vm580_vm3, %v3990_v33 }
 0x379   :  { %v826_v5 = vpop.permute.xlu0 %825  ;;  %v1188_v6 = vpop.permute.xlu1 %1187 }
 0x37a   :  { %v1198_v7 = vsel %vm484_vm12, %v1188_v6, %v4088_v47  ;;  %v1197_v8 = vsel %vm484_vm12, %v1186_v61, %v1188_v6 }
 0x37b   :  { %1354 = vmatprep.subr.bf16.mxu0 %v1198_v7 }
 0x37c   :  { %1355 = vmatpush1.bf16.msra.mxu0 %v1197_v8 }
 0x37d   :  { %v872_v54 = vpop.permute.xlu0 %871  ;;  %v824_v10 = vpop.permute.xlu1 %823 }
 0x37e   :  { %v832_v11 = vsel %vm108_vm4, %v824_v10, %v826_v5  ;;  %v831_v51 = vsel %vm108_vm4, %v4042_v19, %v824_v10 }
 0x37f   :  { %1371 = vmatmul.mubr.bf16.vlgmr.msra.gmra.mrb[8].mxu0 %v4086_v2  ;;  %1381 = vmatprep.subr.bf16.mxu1 %v832_v11 }
 0x380   :  { %1382 = vmatpush1.bf16.msra.mxu1 %v831_v51 }
 0x381   :  { %v918_v33 = vpop.permute.xlu0 %917  ;;  %v870_v13 = vpop.permute.xlu1 %869 }
 0x382   :  { %v878_v56 = vsel %vm155_vm5, %v870_v13, %v872_v54  ;;  %v877_v14 = vsel %vm155_vm5, %v4051_v26, %v870_v13 }
 0x383   :  { %1383 = vmatprep.subr.bf16.mxu1 %v878_v56 }
 0x384   :  { %1384 = vmatpush1.bf16.msra.mxu1 %v877_v14 }
 0x385   :  { %v964_v15 = vpop.permute.xlu0 %963  ;;  %v916_v16 = vpop.permute.xlu1 %915 }
 0x386   :  { %v924_v17 = vsel %vm202_vm6, %v916_v16, %v918_v33  ;;  %v923_v18 = vsel %vm202_vm6, %v4049_v25, %v916_v16 }
 0x387   :  { %1385 = vmatprep.subr.bf16.mxu1 %v924_v17 }
 0x388   :  { %1386 = vmatpush1.bf16.msra.mxu1 %v923_v18 }
 0x389   :  { %v1010_v58 = vpop.permute.xlu0 %1009  ;;  %v962_v19 = vpop.permute.xlu1 %961 }
 0x38a   :  { %v970_v20 = vsel %vm249_vm7, %v962_v19, %v964_v15  ;;  %v969_v21 = vsel %vm249_vm7, %v4062_v39, %v962_v19 }
 0x38b   :  { %1387 = vmatprep.subr.bf16.mxu1 %v970_v20 }
 0x38c   :  { %1388 = vmatpush1.bf16.msra.mxu1 %v969_v21 }
 0x38d   :  { %v1056_v55 = vpop.permute.xlu0 %1055  ;;  %v1008_v60 = vpop.permute.xlu1 %1007 }
 0x38e   :  { %v1016_v22 = vsel %vm296_vm8, %v1008_v60, %v1010_v58  ;;  %v1015_v23 = vsel %vm296_vm8, %v4060_v38, %v1008_v60 }
 0x38f   :  { %1389 = vmatprep.subr.bf16.mxu1 %v1016_v22 }
 0x390   :  { %1390 = vmatpush1.bf16.msra.mxu1 %v1015_v23 }
 0x391   :  { %v1102_v24 = vpop.permute.xlu0 %1101  ;;  %v1054_v25 = vpop.permute.xlu1 %1053 }
 0x392   :  { %v1062_v26 = vsel %vm343_vm9, %v1054_v25, %v1056_v55  ;;  %v1061_v27 = vsel %vm343_vm9, %v4073_v48, %v1054_v25 }
 0x393   :  { %1391 = vmatprep.subr.bf16.mxu1 %v1062_v26 }
 0x394   :  { %1392 = vmatpush1.bf16.msra.mxu1 %v1061_v27 }
 0x395   :  { %v1100_v28 = vpop.permute.xlu1 %1099  ;;  %v1148_v30 = vpop.permute.xlu0 %1147 }
 0x396   :  { %v1108_v59 = vsel %vm390_vm10, %v1100_v28, %v1102_v24  ;;  %v1107_v29 = vsel %vm390_vm10, %v4071_v43, %v1100_v28 }
 0x397   :  { %1393 = vmatprep.subr.bf16.mxu1 %v1108_v59 }
 0x398   :  { %1394 = vmatpush1.bf16.msra.mxu1 %v1107_v29 }
 0x399   :  { %v1146_v35 = vpop.permute.xlu1 %1145  ;;  %v1194_v39 = vpop.permute.xlu0 %1193 }
 0x39a   :  { %v1154_v37 = vsel %vm437_vm11, %v1146_v35, %v1148_v30  ;;  %v1153_v38 = vsel %vm437_vm11, %v1144_v3, %v1146_v35 }
 0x39b   :  { %1395 = vmatprep.subr.bf16.mxu1 %v1154_v37 }
 0x39c   :  { %1396 = vmatpush1.bf16.msra.mxu1 %v1153_v38 }
 0x39d   :  { %v1192_v40 = vpop.permute.xlu1 %1191 }
 0x39e   :  { %v1200_v34 = vsel %vm484_vm12, %v1192_v40, %v1194_v39  ;;  %v1199_v41 = vsel %vm484_vm12, %v4088_v47, %v1192_v40  ;;  %v4183_v40 = vld [vmem:[%s4808_s1 + $0x24] ss:$8 sps:$4 sm:$0xff]  }
 0x39f   :  { %1397 = vmatprep.subr.bf16.mxu1 %v1200_v34  ;;  %3524 = vmatprep.mubr.msk.bf16.mxu0 %vm580_vm3, %v4183_v40 }
 0x3a0   :  { %1398 = vmatpush1.bf16.msra.mxu1 %v1199_v41 }
 0x3a3   :  { %1414 = vmatmul.mubr.bf16.vlgmr.msra.gmra.mrb[8].mxu1 %v4086_v2 }
 0x3a4   :  { %3525 = vmatprep.mubr.msk.bf16.mxu1 %vm580_vm3, %v4183_v40 }
 0x3aa   :  { %v1281_v43 = vpop.permute.xlu0 %1280 }
 0x3ae   :  { %v1276_v42 = vpop.permute.xlu1 %1275 }
 0x44a   :  { %v1329_v44 = vpop.f32.mrb[4].mxu1 }
 0x44b   :  { %v1330_v45 = vadd.f32 %v1329_v44, %v1276_v42  ;;  %v1331_v46 = vpop.f32.mrb[5].mxu1 }
 0x44c   :  { %v1332_v48 = vadd.f32 %v1331_v46, %v1276_v42  ;;  %v1333_v49 = vpop.f32.mrb[6].mxu1 }
 0x44d   :  { %v1334_v53 = vadd.f32 %v1333_v49, %v1281_v43  ;;  %v1335_v31 = vpop.f32.mrb[7].mxu1  ;;  %v1424_v61 = vmul.f32 %v1330_v45, %v3915_v32 }
 0x44e   :  { %v1336_v57 = vadd.f32 %v1335_v31, %v1281_v43  ;;  %v1425_v50 = vmul.f32 %v1332_v48, %v3917_v36 }
 0x44f   :  { %v1430_v63 = vmul.f32 %v1334_v53, %v3915_v32  ;;  %v3521_v53 = vld [vmem:[%s4809_s2 + $0x28] sm:$0xff] }
 0x450   :  { %v1431_v0 = vmul.f32 %v1336_v57, %v3917_v36 }
 0x451   :  { %v1436_v47 = vpack.c.bf16 %v1430_v63, %v1424_v61 }
 0x452   :  { %v1437_v2 = vpack.c.bf16 %v1431_v0, %v1425_v50  ;;  %v1372_v3 = vpop.f32.mrb[8].mxu0 }
 0x453   :  { %v1373_v4 = vadd.f32 %v1372_v3, %v1276_v42  ;;  %v1374_v52 = vpop.f32.mrb[9].mxu0  ;;  %1448 = vrot.lane.b32.xlu1 %v1436_v47, %s3586_s5 }
 0x454   :  { %v1375_v5 = vadd.f32 %v1374_v52, %v1276_v42  ;;  %v1376_v6 = vpop.f32.mrb[10].mxu0  ;;  %1450 = vrot.lane.b32.xlu0 %v1437_v2, %s3586_s5 }
 0x455   :  { %v1377_v7 = vadd.f32 %v1376_v6, %v1281_v43  ;;  %v1378_v8 = vpop.f32.mrb[11].mxu0  ;;  %v1426_v10 = vmul.f32 %v1373_v4, %v3925_v62 }
 0x456   :  { %v1379_v54 = vadd.f32 %v1378_v8, %v1281_v43  ;;  %v1427_v51 = vmul.f32 %v1375_v5, %v3927_v1 }
 0x457   :  { %v1432_v11 = vmul.f32 %v1377_v7, %v3925_v62 }
 0x458   :  { %v1433_v33 = vmul.f32 %v1379_v54, %v3927_v1 }
 0x459   :  { %v1438_v13 = vpack.c.bf16 %v1432_v11, %v1426_v10 }
 0x45a   :  { %v1439_v56 = vpack.c.bf16 %v1433_v33, %v1427_v51 }
 0x45b   :  { %1452 = vrot.lane.b32.xlu1 %v1438_v13, %s3586_s5 }
 0x45c   :  { %1454 = vrot.lane.b32.xlu0 %v1439_v56, %s3586_s5 }
 0x476   :  { %v1415_v14 = vpop.f32.mrb[8].mxu1 }
 0x477   :  { %v1416_v15 = vadd.f32 %v1415_v14, %v1276_v42  ;;  %v1417_v16 = vpop.f32.mrb[9].mxu1 }
 0x478   :  { %v1418_v17 = vadd.f32 %v1417_v16, %v1276_v42  ;;  %v1419_v18 = vpop.f32.mrb[10].mxu1 }
 0x479   :  { %v1420_v58 = vadd.f32 %v1419_v18, %v1281_v43  ;;  %v1421_v19 = vpop.f32.mrb[11].mxu1  ;;  %v1428_v21 = vmul.f32 %v1416_v15, %v3931_v9 }
 0x47a   :  { %v1422_v20 = vadd.f32 %v1421_v19, %v1281_v43  ;;  %v1429_v60 = vmul.f32 %v1418_v17, %v3935_v12  ;;  %v3520_v43 = vld [vmem:[%s4809_s2 + $0x20] sm:$0xff] }
 0x47b   :  { %v1434_v55 = vmul.f32 %v1420_v58, %v3931_v9 }
 0x47c   :  { %v1435_v22 = vmul.f32 %v1422_v20, %v3935_v12 }
 0x47d   :  { %v1440_v23 = vpack.c.bf16 %v1434_v55, %v1428_v21 }
 0x47e   :  { %v1441_v24 = vpack.c.bf16 %v1435_v22, %v1429_v60 }
 0x47f   :  { %1456 = vrot.lane.b32.xlu1 %v1440_v23, %s3586_s5 }
 0x480   :  { %1458 = vrot.lane.b32.xlu0 %v1441_v24, %s3586_s5 }
 0x4c5   :  { %v1449_v25 = vpop.permute.xlu1 %1448 }
 0x4c6   :  { %1472 = vst.msk [vmem:[#allocation2] sm:$0xff] %vm72_vm2, %v1449_v25  ;;  %v1451_v27 = vpop.permute.xlu0 %1450 }
 0x4c7   :  { %v1460_v28 = vsel %vm19_vm0, %v1449_v25, %v1451_v27 }
 0x4cd   :  { %v1525_v26 = vld [vmem:[#allocation2] sm:$0xff]  ;;  %v1453_v59 = vpop.permute.xlu1 %1452 }
 0x4ce   :  { %1539 = vrot.lane.b32.xlu0 %v1525_v26, %s3587_s14  ;;  %1493 = vrot.lane.b32.xlu1 %v1525_v26, %s3588_s15  ;;  %v1461_v29 = vsel %vm19_vm0, %v1451_v27, %v1453_v59  ;;  %v1455_v30 = vpop.permute.xlu0 %1454 }
 0x4cf   :  { %v1462_v37 = vsel %vm19_vm0, %v1453_v59, %v1455_v30 }
 0x4d2   :  { %1631 = vrot.lane.b32.xlu0 %v1525_v26, %s3589_s16  ;;  %1585 = vrot.lane.b32.xlu1 %v1525_v26, %s3590_s17 }
 0x4d6   :  { %1723 = vrot.lane.b32.xlu0 %v1525_v26, %s3591_s18  ;;  %1677 = vrot.lane.b32.xlu1 %v1525_v26, %s3592_s19 }
 0x4da   :  { %1815 = vrot.lane.b32.xlu0 %v1525_v26, %s3593_s20  ;;  %1769 = vrot.lane.b32.xlu1 %v1525_v26, %s3594_s21 }
 0x4de   :  { %1861 = vrot.lane.b32.xlu1 %v1525_v26, %s3595_s22  ;;  %1541 = vrot.lane.b32.xlu0 %v1460_v28, %s3587_s14 }
 0x4e2   :  { %1633 = vrot.lane.b32.xlu0 %v1460_v28, %s3589_s16  ;;  %1495 = vrot.lane.b32.xlu1 %v1460_v28, %s3588_s15 }
 0x4e6   :  { %1725 = vrot.lane.b32.xlu0 %v1460_v28, %s3591_s18  ;;  %1587 = vrot.lane.b32.xlu1 %v1460_v28, %s3590_s17 }
 0x4ea   :  { %1817 = vrot.lane.b32.xlu0 %v1460_v28, %s3593_s20  ;;  %1679 = vrot.lane.b32.xlu1 %v1460_v28, %s3592_s19 }
 0x4ee   :  { %1771 = vrot.lane.b32.xlu1 %v1460_v28, %s3594_s21  ;;  %1497 = vrot.lane.b32.xlu0 %v1461_v29, %s3588_s15 }
 0x4f1   :  { %v1457_v38 = vpop.permute.xlu1 %1456 }
 0x4f2   :  { %v1459_v35 = vpop.permute.xlu0 %1458  ;;  %1863 = vrot.lane.b32.xlu1 %v1460_v28, %s3595_s22  ;;  %1589 = vrot.lane.b32.xlu0 %v1461_v29, %s3590_s17  ;;  %v1463_v39 = vsel %vm19_vm0, %v1455_v30, %v1457_v38 }
 0x4f3   :  { %1478 = vst.msk [vmem:[#allocation2 + $0x30] sm:$0xff] %vm19_vm0, %v1459_v35  ;;  %v1464_v41 = vsel %vm19_vm0, %v1457_v38, %v1459_v35 }
 0x4f6   :  { %1543 = vrot.lane.b32.xlu1 %v1461_v29, %s3587_s14  ;;  %1681 = vrot.lane.b32.xlu0 %v1461_v29, %s3592_s19 }
 0x4fa   :  { %1635 = vrot.lane.b32.xlu1 %v1461_v29, %s3589_s16  ;;  %1773 = vrot.lane.b32.xlu0 %v1461_v29, %s3594_s21  ;;  %v1485_v34 = vld [vmem:[#allocation2 + $0x30] sm:$0xff] }
 0x4fe   :  { %1727 = vrot.lane.b32.xlu1 %v1461_v29, %s3591_s18  ;;  %1865 = vrot.lane.b32.xlu0 %v1461_v29, %s3595_s22 }
 0x502   :  { %1819 = vrot.lane.b32.xlu1 %v1461_v29, %s3593_s20  ;;  %1499 = vrot.lane.b32.xlu0 %v1462_v37, %s3588_s15 }
 0x506   :  { %1545 = vrot.lane.b32.xlu0 %v1462_v37, %s3587_s14  ;;  %1501 = vrot.lane.b32.xlu1 %v1463_v39, %s3588_s15 }
 0x50a   :  { %1591 = vrot.lane.b32.xlu0 %v1462_v37, %s3590_s17  ;;  %1505 = vrot.lane.b32.xlu1 %v1485_v34, %s3588_s15 }
 0x50e   :  { %1637 = vrot.lane.b32.xlu0 %v1462_v37, %s3589_s16  ;;  %1547 = vrot.lane.b32.xlu1 %v1463_v39, %s3587_s14 }
 0x512   :  { %1683 = vrot.lane.b32.xlu0 %v1462_v37, %s3592_s19  ;;  %1551 = vrot.lane.b32.xlu1 %v1485_v34, %s3587_s14 }
 0x516   :  { %1729 = vrot.lane.b32.xlu0 %v1462_v37, %s3591_s18  ;;  %1593 = vrot.lane.b32.xlu1 %v1463_v39, %s3590_s17 }
 0x51a   :  { %1775 = vrot.lane.b32.xlu0 %v1462_v37, %s3594_s21  ;;  %1597 = vrot.lane.b32.xlu1 %v1485_v34, %s3590_s17 }
 0x51e   :  { %1821 = vrot.lane.b32.xlu0 %v1462_v37, %s3593_s20  ;;  %1639 = vrot.lane.b32.xlu1 %v1463_v39, %s3589_s16 }
 0x522   :  { %1867 = vrot.lane.b32.xlu0 %v1462_v37, %s3595_s22  ;;  %1643 = vrot.lane.b32.xlu1 %v1485_v34, %s3589_s16 }
 0x526   :  { %1503 = vrot.lane.b32.xlu0 %v1464_v41, %s3588_s15  ;;  %1685 = vrot.lane.b32.xlu1 %v1463_v39, %s3592_s19 }
 0x52a   :  { %1549 = vrot.lane.b32.xlu0 %v1464_v41, %s3587_s14  ;;  %1689 = vrot.lane.b32.xlu1 %v1485_v34, %s3592_s19 }
 0x52e   :  { %1595 = vrot.lane.b32.xlu0 %v1464_v41, %s3590_s17  ;;  %1731 = vrot.lane.b32.xlu1 %v1463_v39, %s3591_s18 }
 0x532   :  { %1641 = vrot.lane.b32.xlu0 %v1464_v41, %s3589_s16  ;;  %1735 = vrot.lane.b32.xlu1 %v1485_v34, %s3591_s18 }
 0x536   :  { %1687 = vrot.lane.b32.xlu0 %v1464_v41, %s3592_s19  ;;  %1777 = vrot.lane.b32.xlu1 %v1463_v39, %s3594_s21 }
 0x53a   :  { %1733 = vrot.lane.b32.xlu0 %v1464_v41, %s3591_s18  ;;  %1781 = vrot.lane.b32.xlu1 %v1485_v34, %s3594_s21 }
 0x53e   :  { %1779 = vrot.lane.b32.xlu0 %v1464_v41, %s3594_s21  ;;  %1823 = vrot.lane.b32.xlu1 %v1463_v39, %s3593_s20 }
 0x540   :  { %v1540_v42 = vpop.permute.xlu0 %1539  ;;  %v1494_v44 = vpop.permute.xlu1 %1493 }
 0x542   :  { %1825 = vrot.lane.b32.xlu0 %v1464_v41, %s3593_s20  ;;  %1827 = vrot.lane.b32.xlu1 %v1485_v34, %s3593_s20 }
 0x544   :  { %v1632_v45 = vpop.permute.xlu0 %1631  ;;  %v1586_v46 = vpop.permute.xlu1 %1585 }
 0x546   :  { %1871 = vrot.lane.b32.xlu0 %v1464_v41, %s3595_s22  ;;  %1869 = vrot.lane.b32.xlu1 %v1463_v39, %s3595_s22 }
 0x548   :  { %v1724_v48 = vpop.permute.xlu0 %1723  ;;  %v1678_v49 = vpop.permute.xlu1 %1677 }
 0x54a   :  { %1955 = vperm.xlu0 %3557, %v3520_v43   ;;  %1873 = vrot.lane.b32.xlu1 %v1485_v34, %s3595_s22 }
 0x54c   :  { %v4229_v31 = vpop.permute.xlu0 %1815  ;;  %v1770_v57 = vpop.permute.xlu1 %1769 }
 0x54e   :  { %1960 = vperm.xlu1 %3556, %v3521_v53  }
 0x550   :  { %v1542_v61 = vpop.permute.xlu0 %1541  ;;  %v4231_v63 = vpop.permute.xlu1 %1861 }
 0x551   :  { %v1553_v33 = vsel %vm155_vm5, %v1540_v42, %v1542_v61 }
 0x554   :  { %v1634_v50 = vpop.permute.xlu0 %1633  ;;  %v1496_v0 = vpop.permute.xlu1 %1495 }
 0x555   :  { %v1507_v7 = vsel %vm108_vm4, %v1494_v44, %v1496_v0  ;;  %v1645_v58 = vsel %vm249_vm7, %v1632_v45, %v1634_v50 }
 0x558   :  { %v1726_v47 = vpop.permute.xlu0 %1725  ;;  %v1588_v2 = vpop.permute.xlu1 %1587 }
 0x559   :  { %v1599_v15 = vsel %vm202_vm6, %v1586_v46, %v1588_v2  ;;  %v1737_v25 = vsel %vm343_vm9, %v1724_v48, %v1726_v47  ;;  %v4281_v46 = vld [vmem:[%s4808_s1 + $0x20] ss:$8 sps:$4 sm:$0xff]  }
 0x55c   :  { %v1818_v3 = vpop.permute.xlu0 %1817  ;;  %v1680_v4 = vpop.permute.xlu1 %1679 }
 0x55d   :  { %v1691_v55 = vsel %vm296_vm8, %v1678_v49, %v1680_v4  ;;  %v1829_v39 = vsel %vm437_vm11, %v4229_v31, %v1818_v3 }
 0x560   :  { %v1498_v52 = vpop.permute.xlu0 %1497  ;;  %v1772_v5 = vpop.permute.xlu1 %1771 }
 0x561   :  { %v1508_v6 = vsel %vm108_vm4, %v1496_v0, %v1498_v52  ;;  %v1783_v29 = vsel %vm390_vm10, %v1770_v57, %v1772_v5 }
 0x562   :  { %1975 = vmatprep.subr.bf16.mxu0 %v1508_v6 }
 0x563   :  { %1976 = vmatpush1.bf16.msra.mxu0 %v1507_v7 }
 0x564   :  { %v4235_v8 = vpop.permute.xlu0 %1589  ;;  %v1864_v54 = vpop.permute.xlu1 %1863 }
 0x565   :  { %v1600_v13 = vsel %vm202_vm6, %v1588_v2, %v4235_v8  ;;  %v1875_v45 = vsel %vm484_vm12, %v4231_v63, %v1864_v54 }
 0x568   :  { %v4237_v10 = vpop.permute.xlu0 %1681  ;;  %v1544_v11 = vpop.permute.xlu1 %1543 }
 0x569   :  { %v1554_v51 = vsel %vm155_vm5, %v1542_v61, %v1544_v11  ;;  %v1692_v19 = vsel %vm296_vm8, %v1680_v4, %v4237_v10 }
 0x56a   :  { %1977 = vmatprep.subr.bf16.mxu0 %v1554_v51 }
 0x56b   :  { %1978 = vmatpush1.bf16.msra.mxu0 %v1553_v33 }
 0x56c   :  { %v4243_v56 = vpop.permute.xlu0 %1773  ;;  %1979 = vmatprep.subr.bf16.mxu0 %v1600_v13  ;;  %v4245_v14 = vpop.permute.xlu1 %1635 }
 0x56d   :  { %v1646_v16 = vsel %vm249_vm7, %v1634_v50, %v4245_v14  ;;  %v1784_v27 = vsel %vm390_vm10, %v1772_v5, %v4243_v56 }
 0x56f   :  { %1980 = vmatpush1.bf16.msra.mxu0 %v1599_v15 }
 0x570   :  { %v4250_v17 = vpop.permute.xlu0 %1865  ;;  %1981 = vmatprep.subr.bf16.mxu0 %v1646_v16  ;;  %v4252_v18 = vpop.permute.xlu1 %1727 }
 0x571   :  { %v1738_v60 = vsel %vm343_vm9, %v1726_v47, %v4252_v18  ;;  %v1876_v41 = vsel %vm484_vm12, %v1864_v54, %v4250_v17 }
 0x573   :  { %1982 = vmatpush1.bf16.msra.mxu0 %v1645_v58 }
 0x574   :  { %v1500_v20 = vpop.permute.xlu0 %1499  ;;  %1983 = vmatprep.subr.bf16.mxu0 %v1692_v19  ;;  %v4257_v21 = vpop.permute.xlu1 %1819 }
 0x575   :  { %v1509_v26 = vsel %vm108_vm4, %v1498_v52, %v1500_v20  ;;  %v1830_v30 = vsel %vm437_vm11, %v1818_v3, %v4257_v21 }
 0x577   :  { %1984 = vmatpush1.bf16.msra.mxu0 %v1691_v55 }
 0x578   :  { %v1546_v22 = vpop.permute.xlu0 %1545  ;;  %1985 = vmatprep.subr.bf16.mxu0 %v1738_v60  ;;  %v1502_v23 = vpop.permute.xlu1 %1501 }
 0x579   :  { %v1510_v24 = vsel %vm108_vm4, %v1500_v20, %v1502_v23  ;;  %v1555_v34 = vsel %vm155_vm5, %v1544_v11, %v1546_v22 }
 0x57a   :  { %2018 = vmatprep.subr.bf16.mxu1 %v1510_v24 }
 0x57b   :  { %1986 = vmatpush1.bf16.msra.mxu0 %v1737_v25  ;;  %2019 = vmatpush1.bf16.msra.mxu1 %v1509_v26 }
 0x57c   :  { %v1592_v28 = vpop.permute.xlu0 %1591  ;;  %1987 = vmatprep.subr.bf16.mxu0 %v1784_v27  ;;  %v1506_v59 = vpop.permute.xlu1 %1505 }
 0x57d   :  { %v1601_v53 = vsel %vm202_vm6, %v4235_v8, %v1592_v28 }
 0x57f   :  { %1988 = vmatpush1.bf16.msra.mxu0 %v1783_v29 }
 0x580   :  { %v1638_v35 = vpop.permute.xlu0 %1637  ;;  %1989 = vmatprep.subr.bf16.mxu0 %v1830_v30  ;;  %v1548_v37 = vpop.permute.xlu1 %1547 }
 0x581   :  { %v1556_v38 = vsel %vm155_vm5, %v1546_v22, %v1548_v37  ;;  %v1647_v0 = vsel %vm249_vm7, %v4245_v14, %v1638_v35 }
 0x582   :  { %2020 = vmatprep.subr.bf16.mxu1 %v1556_v38 }
 0x583   :  { %1990 = vmatpush1.bf16.msra.mxu0 %v1829_v39  ;;  %2021 = vmatpush1.bf16.msra.mxu1 %v1555_v34 }
 0x584   :  { %v1684_v42 = vpop.permute.xlu0 %1683  ;;  %1991 = vmatprep.subr.bf16.mxu0 %v1876_v41  ;;  %v1552_v44 = vpop.permute.xlu1 %1551 }
 0x585   :  { %v1693_v6 = vsel %vm296_vm8, %v4237_v10, %v1684_v42 }
 0x587   :  { %1992 = vmatpush1.bf16.msra.mxu0 %v1875_v45 }
 0x588   :  { %v1730_v43 = vpop.permute.xlu0 %1729  ;;  %v1594_v48 = vpop.permute.xlu1 %1593 }
 0x589   :  { %v1602_v49 = vsel %vm202_vm6, %v1592_v28, %v1594_v48  ;;  %v1739_v10 = vsel %vm343_vm9, %v4252_v18, %v1730_v43 }
 0x58a   :  { %2008 = vmatmul.mubr.bf16.vlgmr.msra.gmra.mrb[12].mxu0 %v4281_v46  ;;  %2022 = vmatprep.subr.bf16.mxu1 %v1602_v49 }
 0x58b   :  { %2023 = vmatpush1.bf16.msra.mxu1 %v1601_v53  ;;  %3526 = vmatprep.mubr.msk.bf16.mxu0 %vm580_vm3, %v4183_v40 }
 0x58c   :  { %v1776_v31 = vpop.permute.xlu0 %1775  ;;  %v1598_v57 = vpop.permute.xlu1 %1597 }
 0x58d   :  { %v1785_v18 = vsel %vm390_vm10, %v4243_v56, %v1776_v31 }
 0x590   :  { %v4289_v61 = vpop.permute.xlu0 %1821  ;;  %v1640_v63 = vpop.permute.xlu1 %1639 }
 0x591   :  { %v1648_v50 = vsel %vm249_vm7, %v1638_v35, %v1640_v63  ;;  %v1831_v56 = vsel %vm437_vm11, %v4257_v21, %v4289_v61 }
 0x592   :  { %2024 = vmatprep.subr.bf16.mxu1 %v1648_v50 }
 0x593   :  { %2025 = vmatpush1.bf16.msra.mxu1 %v1647_v0 }
 0x594   :  { %v4294_v47 = vpop.permute.xlu0 %1867  ;;  %v1644_v2 = vpop.permute.xlu1 %1643 }
 0x595   :  { %v1877_v45 = vsel %vm484_vm12, %v4250_v17, %v4294_v47 }
 0x598   :  { %v1504_v3 = vpop.permute.xlu0 %1503  ;;  %v1686_v4 = vpop.permute.xlu1 %1685 }
 0x599   :  { %v1694_v52 = vsel %vm296_vm8, %v1684_v42, %v1686_v4  ;;  %v1512_v40 = vsel %vm108_vm4, %v1504_v3, %v1506_v59  ;;  %v1511_v5 = vsel %vm108_vm4, %v1502_v23, %v1504_v3 }
 0x59a   :  { %2026 = vmatprep.subr.bf16.mxu1 %v1694_v52  ;;  %2061 = vmatprep.subr.bf16.mxu0 %v1512_v40 }
 0x59b   :  { %2027 = vmatpush1.bf16.msra.mxu1 %v1693_v6  ;;  %2062 = vmatpush1.bf16.msra.mxu0 %v1511_v5 }
 0x59c   :  { %v1550_v7 = vpop.permute.xlu0 %1549  ;;  %v1690_v8 = vpop.permute.xlu1 %1689 }
 0x59d   :  { %v1558_v54 = vsel %vm155_vm5, %v1550_v7, %v1552_v44  ;;  %v1557_v11 = vsel %vm155_vm5, %v1548_v37, %v1550_v7 }
 0x59e   :  { %2063 = vmatprep.subr.bf16.mxu0 %v1558_v54 }
 0x59f   :  { %2064 = vmatpush1.bf16.msra.mxu0 %v1557_v11 }
 0x5a0   :  { %v1596_v51 = vpop.permute.xlu0 %1595  ;;  %v1732_v33 = vpop.permute.xlu1 %1731 }
 0x5a1   :  { %v1740_v13 = vsel %vm343_vm9, %v1730_v43, %v1732_v33  ;;  %v1604_v14 = vsel %vm202_vm6, %v1596_v51, %v1598_v57  ;;  %v1603_v15 = vsel %vm202_vm6, %v1594_v48, %v1596_v51 }
 0x5a2   :  { %2028 = vmatprep.subr.bf16.mxu1 %v1740_v13  ;;  %2065 = vmatprep.subr.bf16.mxu0 %v1604_v14 }
 0x5a3   :  { %2029 = vmatpush1.bf16.msra.mxu1 %v1739_v10  ;;  %2066 = vmatpush1.bf16.msra.mxu0 %v1603_v15 }
 0x5a4   :  { %v1642_v16 = vpop.permute.xlu0 %1641  ;;  %v1736_v58 = vpop.permute.xlu1 %1735 }
 0x5a5   :  { %v1650_v19 = vsel %vm249_vm7, %v1642_v16, %v1644_v2  ;;  %v1649_v20 = vsel %vm249_vm7, %v1640_v63, %v1642_v16 }
 0x5a6   :  { %2067 = vmatprep.subr.bf16.mxu0 %v1650_v19 }
 0x5a7   :  { %2068 = vmatpush1.bf16.msra.mxu0 %v1649_v20 }
 0x5a8   :  { %v1688_v55 = vpop.permute.xlu0 %1687  ;;  %v1778_v60 = vpop.permute.xlu1 %1777 }
 0x5a9   :  { %v1786_v22 = vsel %vm390_vm10, %v1776_v31, %v1778_v60  ;;  %v1696_v23 = vsel %vm296_vm8, %v1688_v55, %v1690_v8  ;;  %v1695_v24 = vsel %vm296_vm8, %v1686_v4, %v1688_v55 }
 0x5aa   :  { %2030 = vmatprep.subr.bf16.mxu1 %v1786_v22  ;;  %2069 = vmatprep.subr.bf16.mxu0 %v1696_v23 }
 0x5ab   :  { %2031 = vmatpush1.bf16.msra.mxu1 %v1785_v18  ;;  %2070 = vmatpush1.bf16.msra.mxu0 %v1695_v24 }
 0x5ac   :  { %v1734_v25 = vpop.permute.xlu0 %1733  ;;  %v1782_v26 = vpop.permute.xlu1 %1781 }
 0x5ad   :  { %v1742_v27 = vsel %vm343_vm9, %v1734_v25, %v1736_v58  ;;  %v1741_v28 = vsel %vm343_vm9, %v1732_v33, %v1734_v25 }
 0x5ae   :  { %2071 = vmatprep.subr.bf16.mxu0 %v1742_v27 }
 0x5af   :  { %2072 = vmatpush1.bf16.msra.mxu0 %v1741_v28 }
 0x5b0   :  { %v1780_v59 = vpop.permute.xlu0 %1779  ;;  %v1824_v29 = vpop.permute.xlu1 %1823 }
 0x5b1   :  { %v1832_v30 = vsel %vm437_vm11, %v4289_v61, %v1824_v29  ;;  %v1788_v35 = vsel %vm390_vm10, %v1780_v59, %v1782_v26  ;;  %v1787_v37 = vsel %vm390_vm10, %v1778_v60, %v1780_v59 }
 0x5b2   :  { %2032 = vmatprep.subr.bf16.mxu1 %v1832_v30  ;;  %2073 = vmatprep.subr.bf16.mxu0 %v1788_v35 }
 0x5b3   :  { %2033 = vmatpush1.bf16.msra.mxu1 %v1831_v56  ;;  %2074 = vmatpush1.bf16.msra.mxu0 %v1787_v37 }
 0x5b4   :  { %v1826_v38 = vpop.permute.xlu0 %1825  ;;  %v1828_v39 = vpop.permute.xlu1 %1827 }
 0x5b5   :  { %v1834_v34 = vsel %vm437_vm11, %v1826_v38, %v1828_v39  ;;  %v1833_v41 = vsel %vm437_vm11, %v1824_v29, %v1826_v38 }
 0x5b6   :  { %2075 = vmatprep.subr.bf16.mxu0 %v1834_v34 }
 0x5b7   :  { %2076 = vmatpush1.bf16.msra.mxu0 %v1833_v41 }
 0x5b8   :  { %v1870_v42 = vpop.permute.xlu1 %1869  ;;  %v1872_v21 = vpop.permute.xlu0 %1871 }
 0x5b9   :  { %v1878_v44 = vsel %vm484_vm12, %v4294_v47, %v1870_v42  ;;  %v1879_v49 = vsel %vm484_vm12, %v1870_v42, %v1872_v21 }
 0x5ba   :  { %2034 = vmatprep.subr.bf16.mxu1 %v1878_v44 }
 0x5bb   :  { %2035 = vmatpush1.bf16.msra.mxu1 %v1877_v45 }
 0x5bc   :  { %v1874_v43 = vpop.permute.xlu1 %1873 }
 0x5bd   :  { %v1880_v48 = vsel %vm484_vm12, %v1872_v21, %v1874_v43  ;;  %v4398_v43 = vld [vmem:[%s4808_s1 + $0x34] ss:$8 sps:$4 sm:$0xff]  }
 0x5be   :  { %2051 = vmatmul.mubr.bf16.vlgmr.msra.gmra.mrb[12].mxu1 %v4281_v46  ;;  %2077 = vmatprep.subr.bf16.mxu0 %v1880_v48 }
 0x5bf   :  { %2078 = vmatpush1.bf16.msra.mxu0 %v1879_v49  ;;  %3533 = vmatprep.mubr.msk.bf16.mxu1 %vm580_vm3, %v4398_v43 }
 0x5c2   :  { %2094 = vmatmul.mubr.bf16.vlgmr.msra.gmra.mrb[16].mxu0 %v4281_v46 }
 0x5c3   :  { %3534 = vmatprep.mubr.msk.bf16.mxu0 %vm580_vm3, %v4398_v43 }
 0x5c9   :  { %v1956_v53 = vpop.permute.xlu0 %1955 }
 0x5cd   :  { %v1961_v63 = vpop.permute.xlu1 %1960 }
 0x65d   :  { %v2009_v31 = vpop.f32.mrb[12].mxu0 }
 0x65e   :  { %v2010_v57 = vadd.f32 %v2009_v31, %v1956_v53  ;;  %v2011_v61 = vpop.f32.mrb[13].mxu0 }
 0x65f   :  { %v2012_v50 = vadd.f32 %v2011_v61, %v1956_v53  ;;  %v2013_v17 = vpop.f32.mrb[14].mxu0 }
 0x660   :  { %v2014_v0 = vadd.f32 %v2013_v17, %v1961_v63  ;;  %v2015_v47 = vpop.f32.mrb[15].mxu0  ;;  %v2104_v3 = vmul.f32 %v2010_v57, %v3915_v32  ;;  %v3530_v17 = vld [vmem:[%s4809_s2 + $0x38] sm:$0xff] }
 0x661   :  { %v2016_v2 = vadd.f32 %v2015_v47, %v1961_v63  ;;  %v2105_v52 = vmul.f32 %v2012_v50, %v3917_v36 }
 0x662   :  { %v2110_v4 = vmul.f32 %v2014_v0, %v3915_v32  ;;  %v3529_v0 = vld [vmem:[%s4809_s2 + $0x30] sm:$0xff] }
 0x663   :  { %v2111_v40 = vmul.f32 %v2016_v2, %v3917_v36 }
 0x664   :  { %v2116_v5 = vpack.c.bf16 %v2110_v4, %v2104_v3 }
 0x665   :  { %v2117_v46 = vpack.c.bf16 %v2111_v40, %v2105_v52 }
 0x666   :  { %2128 = vrot.lane.b32.xlu0 %v2116_v5, %s3586_s5 }
 0x667   :  { %2130 = vrot.lane.b32.xlu1 %v2117_v46, %s3586_s5 }
 0x691   :  { %v2052_v6 = vpop.f32.mrb[12].mxu1 }
 0x692   :  { %v2053_v7 = vadd.f32 %v2052_v6, %v1956_v53  ;;  %v2054_v8 = vpop.f32.mrb[13].mxu1 }
 0x693   :  { %v2055_v54 = vadd.f32 %v2054_v8, %v1956_v53  ;;  %v2056_v11 = vpop.f32.mrb[14].mxu1 }
 0x694   :  { %v2057_v51 = vadd.f32 %v2056_v11, %v1961_v63  ;;  %v2058_v33 = vpop.f32.mrb[15].mxu1  ;;  %v2106_v15 = vmul.f32 %v2053_v7, %v3925_v62 }
 0x695   :  { %v2059_v13 = vadd.f32 %v2058_v33, %v1961_v63  ;;  %v2095_v14 = vpop.f32.mrb[16].mxu0  ;;  %v2107_v19 = vmul.f32 %v2055_v54, %v3927_v1 }
 0x696   :  { %v2112_v10 = vmul.f32 %v2057_v51, %v3925_v62  ;;  %v2096_v16 = vadd.f32 %v2095_v14, %v1956_v53  ;;  %v2097_v58 = vpop.f32.mrb[17].mxu0 }
 0x697   :  { %v2113_v20 = vmul.f32 %v2059_v13, %v3927_v1  ;;  %v2098_v55 = vadd.f32 %v2097_v58, %v1956_v53  ;;  %v2099_v60 = vpop.f32.mrb[18].mxu0 }
 0x698   :  { %v2118_v22 = vpack.c.bf16 %v2112_v10, %v2106_v15  ;;  %v2100_v23 = vadd.f32 %v2099_v60, %v1961_v63  ;;  %v2101_v24 = vpop.f32.mrb[19].mxu0  ;;  %v2108_v26 = vmul.f32 %v2096_v16, %v3931_v9 }
 0x699   :  { %v2119_v18 = vpack.c.bf16 %v2113_v20, %v2107_v19  ;;  %v2102_v25 = vadd.f32 %v2101_v24, %v1961_v63  ;;  %v2109_v28 = vmul.f32 %v2098_v55, %v3935_v12 }
 0x69a   :  { %v2114_v27 = vmul.f32 %v2100_v23, %v3931_v9  ;;  %2132 = vrot.lane.b32.xlu0 %v2118_v22, %s3586_s5 }
 0x69b   :  { %v2115_v59 = vmul.f32 %v2102_v25, %v3935_v12  ;;  %2134 = vrot.lane.b32.xlu1 %v2119_v18, %s3586_s5 }
 0x69c   :  { %v2120_v29 = vpack.c.bf16 %v2114_v27, %v2108_v26 }
 0x69d   :  { %v2121_v30 = vpack.c.bf16 %v2115_v59, %v2109_v28 }
 0x69e   :  { %2136 = vrot.lane.b32.xlu0 %v2120_v29, %s3586_s5 }
 0x69f   :  { %2138 = vrot.lane.b32.xlu1 %v2121_v30, %s3586_s5 }
 0x6d8   :  { %v2129_v35 = vpop.permute.xlu0 %2128 }
 0x6d9   :  { %2152 = vst.msk [vmem:[#allocation2] sm:$0xff] %vm72_vm2, %v2129_v35  ;;  %v2131_v56 = vpop.permute.xlu1 %2130 }
 0x6da   :  { %v2140_v38 = vsel %vm19_vm0, %v2129_v35, %v2131_v56 }
 0x6e0   :  { %v2205_v37 = vld [vmem:[#allocation2] sm:$0xff] }
 0x6e1   :  { %2219 = vrot.lane.b32.xlu1 %v2205_v37, %s3587_s14  ;;  %2173 = vrot.lane.b32.xlu0 %v2205_v37, %s3588_s15 }
 0x6e5   :  { %2311 = vrot.lane.b32.xlu1 %v2205_v37, %s3589_s16  ;;  %2265 = vrot.lane.b32.xlu0 %v2205_v37, %s3590_s17 }
 0x6e9   :  { %2403 = vrot.lane.b32.xlu1 %v2205_v37, %s3591_s18  ;;  %2357 = vrot.lane.b32.xlu0 %v2205_v37, %s3592_s19 }
 0x6ed   :  { %2449 = vrot.lane.b32.xlu0 %v2205_v37, %s3594_s21 }
 0x6f1   :  { %2175 = vrot.lane.b32.xlu0 %v2140_v38, %s3588_s15 }
 0x70c   :  { %v2133_v39 = vpop.permute.xlu0 %2132 }
 0x70d   :  { %v2141_v34 = vsel %vm19_vm0, %v2131_v56, %v2133_v39  ;;  %v2135_v41 = vpop.permute.xlu1 %2134 }
 0x70e   :  { %2223 = vrot.lane.b32.xlu0 %v2141_v34, %s3587_s14  ;;  %2177 = vrot.lane.b32.xlu1 %v2141_v34, %s3588_s15  ;;  %v2142_v44 = vsel %vm19_vm0, %v2133_v39, %v2135_v41 }
 0x710   :  { %v2137_v45 = vpop.permute.xlu0 %2136 }
 0x711   :  { %v2139_v42 = vpop.permute.xlu1 %2138  ;;  %v2143_v21 = vsel %vm19_vm0, %v2135_v41, %v2137_v45 }
 0x712   :  { %2158 = vst.msk [vmem:[#allocation2 + $0x30] sm:$0xff] %vm19_vm0, %v2139_v42  ;;  %2267 = vrot.lane.b32.xlu0 %v2140_v38, %s3590_s17  ;;  %2221 = vrot.lane.b32.xlu1 %v2140_v38, %s3587_s14  ;;  %v2144_v49 = vsel %vm19_vm0, %v2137_v45, %v2139_v42 }
 0x716   :  { %2315 = vrot.lane.b32.xlu0 %v2141_v34, %s3589_s16  ;;  %2269 = vrot.lane.b32.xlu1 %v2141_v34, %s3590_s17 }
 0x719   :  { %v2165_v48 = vld [vmem:[#allocation2 + $0x30] sm:$0xff] }
 0x71a   :  { %2359 = vrot.lane.b32.xlu0 %v2140_v38, %s3592_s19  ;;  %2313 = vrot.lane.b32.xlu1 %v2140_v38, %s3589_s16 }
 0x71e   :  { %2407 = vrot.lane.b32.xlu0 %v2141_v34, %s3591_s18  ;;  %2361 = vrot.lane.b32.xlu1 %v2141_v34, %s3592_s19 }
 0x722   :  { %2451 = vrot.lane.b32.xlu0 %v2140_v38, %s3594_s21  ;;  %2405 = vrot.lane.b32.xlu1 %v2140_v38, %s3591_s18 }
 0x726   :  { %2225 = vrot.lane.b32.xlu0 %v2142_v44, %s3587_s14  ;;  %2453 = vrot.lane.b32.xlu1 %v2141_v34, %s3594_s21 }
 0x72a   :  { %2317 = vrot.lane.b32.xlu0 %v2142_v44, %s3589_s16  ;;  %2179 = vrot.lane.b32.xlu1 %v2142_v44, %s3588_s15 }
 0x72e   :  { %2409 = vrot.lane.b32.xlu0 %v2142_v44, %s3591_s18  ;;  %2271 = vrot.lane.b32.xlu1 %v2142_v44, %s3590_s17 }
 0x732   :  { %2363 = vrot.lane.b32.xlu1 %v2142_v44, %s3592_s19  ;;  %2181 = vrot.lane.b32.xlu0 %v2143_v21, %s3588_s15 }
 0x736   :  { %2455 = vrot.lane.b32.xlu1 %v2142_v44, %s3594_s21  ;;  %2499 = vrot.lane.b32.xlu0 %v2141_v34, %s3593_s20 }
 0x73a   :  { %2227 = vrot.lane.b32.xlu1 %v2143_v21, %s3587_s14  ;;  %2273 = vrot.lane.b32.xlu0 %v2143_v21, %s3590_s17 }
 0x73e   :  { %2497 = vrot.lane.b32.xlu1 %v2140_v38, %s3593_s20  ;;  %2501 = vrot.lane.b32.xlu0 %v2142_v44, %s3593_s20 }
 0x742   :  { %2319 = vrot.lane.b32.xlu1 %v2143_v21, %s3589_s16  ;;  %2365 = vrot.lane.b32.xlu0 %v2143_v21, %s3592_s19 }
 0x746   :  { %2495 = vrot.lane.b32.xlu1 %v2205_v37, %s3593_s20  ;;  %2543 = vrot.lane.b32.xlu0 %v2140_v38, %s3595_s22 }
 0x74a   :  { %2411 = vrot.lane.b32.xlu1 %v2143_v21, %s3591_s18  ;;  %2457 = vrot.lane.b32.xlu0 %v2143_v21, %s3594_s21 }
 0x74e   :  { %2545 = vrot.lane.b32.xlu1 %v2141_v34, %s3595_s22  ;;  %2541 = vrot.lane.b32.xlu0 %v2205_v37, %s3595_s22 }
 0x752   :  { %2503 = vrot.lane.b32.xlu1 %v2143_v21, %s3593_s20  ;;  %2549 = vrot.lane.b32.xlu0 %v2143_v21, %s3595_s22 }
 0x753   :  { %v2174_v53 = vpop.permute.xlu0 %2173  ;;  %v2220_v57 = vpop.permute.xlu1 %2219 }
 0x756   :  { %2547 = vrot.lane.b32.xlu1 %v2142_v44, %s3595_s22  ;;  %2185 = vrot.lane.b32.xlu0 %v2165_v48, %s3588_s15 }
 0x757   :  { %v2266_v31 = vpop.permute.xlu0 %2265  ;;  %v2312_v63 = vpop.permute.xlu1 %2311 }
 0x75a   :  { %2183 = vrot.lane.b32.xlu1 %v2144_v49, %s3588_s15  ;;  %2231 = vrot.lane.b32.xlu0 %v2165_v48, %s3587_s14 }
 0x75b   :  { %v2358_v61 = vpop.permute.xlu0 %2357  ;;  %v2404_v47 = vpop.permute.xlu1 %2403 }
 0x75e   :  { %2229 = vrot.lane.b32.xlu1 %v2144_v49, %s3587_s14  ;;  %2277 = vrot.lane.b32.xlu0 %v2165_v48, %s3590_s17 }
 0x75f   :  { %v2450_v50 = vpop.permute.xlu0 %2449 }
 0x762   :  { %2275 = vrot.lane.b32.xlu1 %v2144_v49, %s3590_s17  ;;  %2323 = vrot.lane.b32.xlu0 %v2165_v48, %s3589_s16 }
 0x763   :  { %v2176_v2 = vpop.permute.xlu0 %2175 }
 0x764   :  { %v2187_v40 = vsel %vm108_vm4, %v2174_v53, %v2176_v2 }
 0x766   :  { %2321 = vrot.lane.b32.xlu1 %v2144_v49, %s3589_s16  ;;  %2369 = vrot.lane.b32.xlu0 %v2165_v48, %s3592_s19 }
 0x76a   :  { %2367 = vrot.lane.b32.xlu1 %v2144_v49, %s3592_s19  ;;  %2415 = vrot.lane.b32.xlu0 %v2165_v48, %s3591_s18 }
 0x76e   :  { %2413 = vrot.lane.b32.xlu1 %v2144_v49, %s3591_s18  ;;  %2461 = vrot.lane.b32.xlu0 %v2165_v48, %s3594_s21 }
 0x772   :  { %2459 = vrot.lane.b32.xlu1 %v2144_v49, %s3594_s21  ;;  %2507 = vrot.lane.b32.xlu0 %v2165_v48, %s3593_s20 }
 0x776   :  { %2505 = vrot.lane.b32.xlu1 %v2144_v49, %s3593_s20  ;;  %2553 = vrot.lane.b32.xlu0 %v2165_v48, %s3595_s22 }
 0x77a   :  { %2551 = vrot.lane.b32.xlu1 %v2144_v49, %s3595_s22  ;;  %2640 = vperm.xlu0 %3557, %v3530_v17  }
 0x77e   :  { %2635 = vperm.xlu1 %3556, %v3529_v0  }
 0x780   :  { %v2178_v3 = vpop.permute.xlu1 %2177  ;;  %v2224_v4 = vpop.permute.xlu0 %2223 }
 0x781   :  { %v2188_v52 = vsel %vm108_vm4, %v2176_v2, %v2178_v3 }
 0x782   :  { %2655 = vmatprep.subr.bf16.mxu1 %v2188_v52 }
 0x783   :  { %2656 = vmatpush1.bf16.msra.mxu1 %v2187_v40 }
 0x784   :  { %v2222_v5 = vpop.permute.xlu1 %2221  ;;  %v2268_v46 = vpop.permute.xlu0 %2267 }
 0x785   :  { %v2234_v6 = vsel %vm155_vm5, %v2222_v5, %v2224_v4  ;;  %v2233_v7 = vsel %vm155_vm5, %v2220_v57, %v2222_v5  ;;  %v2279_v51 = vsel %vm202_vm6, %v2266_v31, %v2268_v46 }
 0x786   :  { %2657 = vmatprep.subr.bf16.mxu1 %v2234_v6 }
 0x787   :  { %2658 = vmatpush1.bf16.msra.mxu1 %v2233_v7 }
 0x788   :  { %v2270_v8 = vpop.permute.xlu1 %2269  ;;  %v2316_v54 = vpop.permute.xlu0 %2315 }
 0x789   :  { %v2280_v11 = vsel %vm202_vm6, %v2268_v46, %v2270_v8 }
 0x78a   :  { %2659 = vmatprep.subr.bf16.mxu1 %v2280_v11 }
 0x78b   :  { %2660 = vmatpush1.bf16.msra.mxu1 %v2279_v51 }
 0x78c   :  { %v2314_v33 = vpop.permute.xlu1 %2313  ;;  %v2360_v13 = vpop.permute.xlu0 %2359 }
 0x78d   :  { %v2326_v14 = vsel %vm249_vm7, %v2314_v33, %v2316_v54  ;;  %v2325_v15 = vsel %vm249_vm7, %v2312_v63, %v2314_v33  ;;  %v2371_v19 = vsel %vm296_vm8, %v2358_v61, %v2360_v13 }
 0x78e   :  { %2661 = vmatprep.subr.bf16.mxu1 %v2326_v14 }
 0x78f   :  { %2662 = vmatpush1.bf16.msra.mxu1 %v2325_v15 }
 0x790   :  { %v2362_v10 = vpop.permute.xlu1 %2361  ;;  %v2408_v16 = vpop.permute.xlu0 %2407 }
 0x791   :  { %v2372_v58 = vsel %vm296_vm8, %v2360_v13, %v2362_v10 }
 0x792   :  { %2663 = vmatprep.subr.bf16.mxu1 %v2372_v58 }
 0x793   :  { %2664 = vmatpush1.bf16.msra.mxu1 %v2371_v19 }
 0x794   :  { %v2406_v20 = vpop.permute.xlu1 %2405  ;;  %v2452_v55 = vpop.permute.xlu0 %2451 }
 0x795   :  { %v2418_v60 = vsel %vm343_vm9, %v2406_v20, %v2408_v16  ;;  %v2417_v22 = vsel %vm343_vm9, %v2404_v47, %v2406_v20  ;;  %v2463_v25 = vsel %vm390_vm10, %v2450_v50, %v2452_v55 }
 0x796   :  { %2665 = vmatprep.subr.bf16.mxu1 %v2418_v60 }
 0x797   :  { %2666 = vmatpush1.bf16.msra.mxu1 %v2417_v22 }
 0x798   :  { %v2454_v23 = vpop.permute.xlu1 %2453  ;;  %v2226_v24 = vpop.permute.xlu0 %2225 }
 0x799   :  { %v2464_v18 = vsel %vm390_vm10, %v2452_v55, %v2454_v23  ;;  %v2235_v42 = vsel %vm155_vm5, %v2224_v4, %v2226_v24 }
 0x79a   :  { %2667 = vmatprep.subr.bf16.mxu1 %v2464_v18 }
 0x79b   :  { %2668 = vmatpush1.bf16.msra.mxu1 %v2463_v25 }
 0x79c   :  { %v2180_v26 = vpop.permute.xlu1 %2179  ;;  %v2318_v27 = vpop.permute.xlu0 %2317 }
 0x79d   :  { %v2189_v37 = vsel %vm108_vm4, %v2178_v3, %v2180_v26  ;;  %v2327_v61 = vsel %vm249_vm7, %v2316_v54, %v2318_v27  ;;  %v4494_v54 = vld [vmem:[%s4808_s1 + $0x30] ss:$8 sps:$4 sm:$0xff]  }
 0x7a0   :  { %v2272_v28 = vpop.permute.xlu1 %2271  ;;  %v2410_v59 = vpop.permute.xlu0 %2409 }
 0x7a1   :  { %v2281_v49 = vsel %vm202_vm6, %v2270_v8, %v2272_v28  ;;  %v2419_v52 = vsel %vm343_vm9, %v2408_v16, %v2410_v59 }
 0x7a4   :  { %v2364_v29 = vpop.permute.xlu1 %2363  ;;  %v4452_v30 = vpop.permute.xlu0 %2181 }
 0x7a5   :  { %v2190_v35 = vsel %vm108_vm4, %v2180_v26, %v4452_v30  ;;  %v2373_v47 = vsel %vm296_vm8, %v2362_v10, %v2364_v29 }
 0x7a6   :  { %2698 = vmatprep.subr.bf16.mxu0 %v2190_v35 }
 0x7a7   :  { %2699 = vmatpush1.bf16.msra.mxu0 %v2189_v37 }
 0x7a8   :  { %v2456_v56 = vpop.permute.xlu1 %2455  ;;  %v2500_v38 = vpop.permute.xlu0 %2499 }
 0x7a9   :  { %v2465_v8 = vsel %vm390_vm10, %v2454_v23, %v2456_v56 }
 0x7ac   :  { %v4457_v39 = vpop.permute.xlu1 %2227  ;;  %v4459_v34 = vpop.permute.xlu0 %2273 }
 0x7ad   :  { %v2236_v41 = vsel %vm155_vm5, %v2226_v24, %v4457_v39  ;;  %v2282_v44 = vsel %vm202_vm6, %v2272_v28, %v4459_v34 }
 0x7ae   :  { %2700 = vmatprep.subr.bf16.mxu0 %v2236_v41 }
 0x7af   :  { %2701 = vmatpush1.bf16.msra.mxu0 %v2235_v42 }
 0x7b0   :  { %v2498_v45 = vpop.permute.xlu1 %2497  ;;  %2702 = vmatprep.subr.bf16.mxu0 %v2282_v44  ;;  %v2502_v21 = vpop.permute.xlu0 %2501 }
 0x7b1   :  { %v2510_v48 = vsel %vm437_vm11, %v2498_v45, %v2500_v38  ;;  %v2511_v13 = vsel %vm437_vm11, %v2500_v38, %v2502_v21 }
 0x7b2   :  { %2669 = vmatprep.subr.bf16.mxu1 %v2510_v48 }
 0x7b3   :  { %2703 = vmatpush1.bf16.msra.mxu0 %v2281_v49 }
 0x7b4   :  { %v4468_v53 = vpop.permute.xlu1 %2319  ;;  %v4470_v31 = vpop.permute.xlu0 %2365 }
 0x7b5   :  { %v2328_v57 = vsel %vm249_vm7, %v2318_v27, %v4468_v53  ;;  %v2374_v63 = vsel %vm296_vm8, %v2364_v29, %v4470_v31 }
 0x7b6   :  { %2704 = vmatprep.subr.bf16.mxu0 %v2328_v57 }
 0x7b7   :  { %2705 = vmatpush1.bf16.msra.mxu0 %v2327_v61 }
 0x7b8   :  { %v2496_v50 = vpop.permute.xlu1 %2495  ;;  %2706 = vmatprep.subr.bf16.mxu0 %v2374_v63  ;;  %v2544_v17 = vpop.permute.xlu0 %2543 }
 0x7b9   :  { %v2509_v0 = vsel %vm437_vm11, %v2496_v50, %v2498_v45 }
 0x7ba   :  { %2670 = vmatpush1.bf16.msra.mxu1 %v2509_v0 }
 0x7bb   :  { %2707 = vmatpush1.bf16.msra.mxu0 %v2373_v47 }
 0x7bc   :  { %v4479_v2 = vpop.permute.xlu1 %2411  ;;  %v4481_v3 = vpop.permute.xlu0 %2457 }
 0x7bd   :  { %v2420_v4 = vsel %vm343_vm9, %v2410_v59, %v4479_v2  ;;  %v2466_v40 = vsel %vm390_vm10, %v2456_v56, %v4481_v3 }
 0x7be   :  { %2708 = vmatprep.subr.bf16.mxu0 %v2420_v4 }
 0x7bf   :  { %2709 = vmatpush1.bf16.msra.mxu0 %v2419_v52 }
 0x7c0   :  { %v2546_v5 = vpop.permute.xlu1 %2545  ;;  %2710 = vmatprep.subr.bf16.mxu0 %v2466_v40  ;;  %v2542_v46 = vpop.permute.xlu0 %2541 }
 0x7c1   :  { %v2555_v6 = vsel %vm484_vm12, %v2542_v46, %v2544_v17  ;;  %v2556_v7 = vsel %vm484_vm12, %v2544_v17, %v2546_v5 }
 0x7c2   :  { %2671 = vmatprep.subr.bf16.mxu1 %v2556_v7 }
 0x7c3   :  { %2672 = vmatpush1.bf16.msra.mxu1 %v2555_v6  ;;  %2711 = vmatpush1.bf16.msra.mxu0 %v2465_v8 }
 0x7c4   :  { %v2504_v11 = vpop.permute.xlu1 %2503  ;;  %v4496_v51 = vpop.permute.xlu0 %2549 }
 0x7c5   :  { %v2512_v33 = vsel %vm437_vm11, %v2502_v21, %v2504_v11 }
 0x7c6   :  { %2688 = vmatmul.mubr.bf16.vlgmr.msra.gmra.mrb[16].mxu1 %v4494_v54  ;;  %2712 = vmatprep.subr.bf16.mxu0 %v2512_v33 }
 0x7c7   :  { %2713 = vmatpush1.bf16.msra.mxu0 %v2511_v13  ;;  %3535 = vmatprep.mubr.msk.bf16.mxu1 %vm580_vm3, %v4398_v43 }
 0x7c8   :  { %v2548_v14 = vpop.permute.xlu1 %2547  ;;  %v2186_v15 = vpop.permute.xlu0 %2185 }
 0x7c9   :  { %v2557_v10 = vsel %vm484_vm12, %v2546_v5, %v2548_v14  ;;  %v2558_v16 = vsel %vm484_vm12, %v2548_v14, %v4496_v51 }
 0x7ca   :  { %2714 = vmatprep.subr.bf16.mxu0 %v2558_v16 }
 0x7cb   :  { %2715 = vmatpush1.bf16.msra.mxu0 %v2557_v10 }
 0x7cc   :  { %v2184_v58 = vpop.permute.xlu1 %2183  ;;  %v2232_v19 = vpop.permute.xlu0 %2231 }
 0x7cd   :  { %v2191_v20 = vsel %vm108_vm4, %v4452_v30, %v2184_v58  ;;  %v2192_v55 = vsel %vm108_vm4, %v2184_v58, %v2186_v15 }
 0x7ce   :  { %2731 = vmatmul.mubr.bf16.vlgmr.msra.gmra.mrb[20].mxu0 %v4494_v54  ;;  %2741 = vmatprep.subr.bf16.mxu1 %v2192_v55 }
 0x7cf   :  { %2742 = vmatpush1.bf16.msra.mxu1 %v2191_v20 }
 0x7d0   :  { %v2230_v43 = vpop.permute.xlu1 %2229  ;;  %v2278_v60 = vpop.permute.xlu0 %2277 }
 0x7d1   :  { %v2237_v22 = vsel %vm155_vm5, %v4457_v39, %v2230_v43  ;;  %v2238_v23 = vsel %vm155_vm5, %v2230_v43, %v2232_v19 }
 0x7d2   :  { %2743 = vmatprep.subr.bf16.mxu1 %v2238_v23 }
 0x7d3   :  { %2744 = vmatpush1.bf16.msra.mxu1 %v2237_v22 }
 0x7d4   :  { %v2276_v24 = vpop.permute.xlu1 %2275  ;;  %v2324_v18 = vpop.permute.xlu0 %2323 }
 0x7d5   :  { %v2283_v25 = vsel %vm202_vm6, %v4459_v34, %v2276_v24  ;;  %v2284_v26 = vsel %vm202_vm6, %v2276_v24, %v2278_v60 }
 0x7d6   :  { %2745 = vmatprep.subr.bf16.mxu1 %v2284_v26 }
 0x7d7   :  { %2746 = vmatpush1.bf16.msra.mxu1 %v2283_v25 }
 0x7d8   :  { %v2322_v27 = vpop.permute.xlu1 %2321  ;;  %v2370_v28 = vpop.permute.xlu0 %2369 }
 0x7d9   :  { %v2329_v59 = vsel %vm249_vm7, %v4468_v53, %v2322_v27  ;;  %v2330_v29 = vsel %vm249_vm7, %v2322_v27, %v2324_v18 }
 0x7da   :  { %2747 = vmatprep.subr.bf16.mxu1 %v2330_v29 }
 0x7db   :  { %2748 = vmatpush1.bf16.msra.mxu1 %v2329_v59 }
 0x7dc   :  { %v2368_v30 = vpop.permute.xlu1 %2367  ;;  %v2416_v35 = vpop.permute.xlu0 %2415 }
 0x7dd   :  { %v2375_v37 = vsel %vm296_vm8, %v4470_v31, %v2368_v30  ;;  %v2376_v56 = vsel %vm296_vm8, %v2368_v30, %v2370_v28 }
 0x7de   :  { %2749 = vmatprep.subr.bf16.mxu1 %v2376_v56 }
 0x7df   :  { %2750 = vmatpush1.bf16.msra.mxu1 %v2375_v37 }
 0x7e0   :  { %v2414_v38 = vpop.permute.xlu1 %2413  ;;  %v2462_v39 = vpop.permute.xlu0 %2461 }
 0x7e1   :  { %v2421_v34 = vsel %vm343_vm9, %v4479_v2, %v2414_v38  ;;  %v2422_v41 = vsel %vm343_vm9, %v2414_v38, %v2416_v35 }
 0x7e2   :  { %2751 = vmatprep.subr.bf16.mxu1 %v2422_v41 }
 0x7e3   :  { %2752 = vmatpush1.bf16.msra.mxu1 %v2421_v34 }
 0x7e4   :  { %v2460_v42 = vpop.permute.xlu1 %2459  ;;  %v2508_v21 = vpop.permute.xlu0 %2507 }
 0x7e5   :  { %v2467_v44 = vsel %vm390_vm10, %v4481_v3, %v2460_v42  ;;  %v2468_v45 = vsel %vm390_vm10, %v2460_v42, %v2462_v39 }
 0x7e6   :  { %2753 = vmatprep.subr.bf16.mxu1 %v2468_v45 }
 0x7e7   :  { %2754 = vmatpush1.bf16.msra.mxu1 %v2467_v44 }
 0x7e8   :  { %v2506_v48 = vpop.permute.xlu1 %2505  ;;  %v2554_v31 = vpop.permute.xlu0 %2553 }
 0x7e9   :  { %v2513_v49 = vsel %vm437_vm11, %v2504_v11, %v2506_v48  ;;  %v2514_v53 = vsel %vm437_vm11, %v2506_v48, %v2508_v21  ;;  %v4592_v21 = vld [vmem:[%s4808_s1 + $0x44] ss:$8 sps:$4 sm:$0xff]  }
 0x7ea   :  { %2755 = vmatprep.subr.bf16.mxu1 %v2514_v53  ;;  %3542 = vmatprep.mubr.msk.bf16.mxu0 %vm580_vm3, %v4592_v21 }
 0x7eb   :  { %2756 = vmatpush1.bf16.msra.mxu1 %v2513_v49 }
 0x7ec   :  { %v2552_v57 = vpop.permute.xlu1 %2551 }
 0x7ed   :  { %v2559_v61 = vsel %vm484_vm12, %v4496_v51, %v2552_v57  ;;  %v2560_v63 = vsel %vm484_vm12, %v2552_v57, %v2554_v31 }
 0x7ee   :  { %2757 = vmatprep.subr.bf16.mxu1 %v2560_v63 }
 0x7ef   :  { %2758 = vmatpush1.bf16.msra.mxu1 %v2559_v61  ;;  %v3538_v61 = vld [vmem:[%s4809_s2 + $0x40] sm:$0xff] }
 0x7f2   :  { %2774 = vmatmul.mubr.bf16.vlgmr.msra.gmra.mrb[20].mxu1 %v4494_v54 }
 0x7f3   :  { %3543 = vmatprep.mubr.msk.bf16.mxu1 %vm580_vm3, %v4592_v21 }
 0x7f9   :  { %v2641_v2 = vpop.permute.xlu0 %2640 }
 0x7fd   :  { %v2636_v50 = vpop.permute.xlu1 %2635 }
 0x899   :  { %v2689_v17 = vpop.f32.mrb[16].mxu1 }
 0x89a   :  { %v2690_v0 = vadd.f32 %v2689_v17, %v2636_v50  ;;  %v2691_v47 = vpop.f32.mrb[17].mxu1  ;;  %v3539_v17 = vld [vmem:[%s4809_s2 + $0x48] sm:$0xff] }
 0x89b   :  { %v2692_v3 = vadd.f32 %v2691_v47, %v2636_v50  ;;  %v2693_v4 = vpop.f32.mrb[18].mxu1 }
 0x89c   :  { %v2694_v52 = vadd.f32 %v2693_v4, %v2641_v2  ;;  %v2695_v40 = vpop.f32.mrb[19].mxu1  ;;  %v2784_v46 = vmul.f32 %v2690_v0, %v3915_v32 }
 0x89d   :  { %v2696_v5 = vadd.f32 %v2695_v40, %v2641_v2  ;;  %v2785_v7 = vmul.f32 %v2692_v3, %v3917_v36 }
 0x89e   :  { %v2790_v6 = vmul.f32 %v2694_v52, %v3915_v32 }
 0x89f   :  { %v2791_v8 = vmul.f32 %v2696_v5, %v3917_v36 }
 0x8a0   :  { %v2796_v11 = vpack.c.bf16 %v2790_v6, %v2784_v46 }
 0x8a1   :  { %v2797_v54 = vpack.c.bf16 %v2791_v8, %v2785_v7  ;;  %v2732_v51 = vpop.f32.mrb[20].mxu0 }
 0x8a2   :  { %v2733_v33 = vadd.f32 %v2732_v51, %v2636_v50  ;;  %v2734_v13 = vpop.f32.mrb[21].mxu0  ;;  %2808 = vrot.lane.b32.xlu1 %v2796_v11, %s3586_s5 }
 0x8a3   :  { %v2735_v14 = vadd.f32 %v2734_v13, %v2636_v50  ;;  %v2736_v15 = vpop.f32.mrb[22].mxu0  ;;  %2810 = vrot.lane.b32.xlu0 %v2797_v54, %s3586_s5 }
 0x8a4   :  { %v2737_v10 = vadd.f32 %v2736_v15, %v2641_v2  ;;  %v2738_v16 = vpop.f32.mrb[23].mxu0  ;;  %v2786_v32 = vmul.f32 %v2733_v33, %v3925_v62 }
 0x8a5   :  { %v2739_v58 = vadd.f32 %v2738_v16, %v2641_v2  ;;  %v2787_v36 = vmul.f32 %v2735_v14, %v3927_v1 }
 0x8a6   :  { %v2792_v19 = vmul.f32 %v2737_v10, %v3925_v62 }
 0x8a7   :  { %v2793_v20 = vmul.f32 %v2739_v58, %v3927_v1 }
 0x8a8   :  { %v2798_v55 = vpack.c.bf16 %v2792_v19, %v2786_v32 }
 0x8a9   :  { %v2799_v43 = vpack.c.bf16 %v2793_v20, %v2787_v36 }
 0x8aa   :  { %2812 = vrot.lane.b32.xlu1 %v2798_v55, %s3586_s5 }
 0x8ab   :  { %2814 = vrot.lane.b32.xlu0 %v2799_v43, %s3586_s5 }
 0x8c5   :  { %v2775_v60 = vpop.f32.mrb[20].mxu1 }
 0x8c6   :  { %v2776_v22 = vadd.f32 %v2775_v60, %v2636_v50  ;;  %v2777_v23 = vpop.f32.mrb[21].mxu1 }
 0x8c7   :  { %v2778_v24 = vadd.f32 %v2777_v23, %v2636_v50  ;;  %v2779_v18 = vpop.f32.mrb[22].mxu1 }
 0x8c8   :  { %v2780_v25 = vadd.f32 %v2779_v18, %v2641_v2  ;;  %v2781_v26 = vpop.f32.mrb[23].mxu1  ;;  %v2788_v62 = vmul.f32 %v2776_v22, %v3931_v9 }
 0x8c9   :  { %v2782_v27 = vadd.f32 %v2781_v26, %v2641_v2  ;;  %v2789_v1 = vmul.f32 %v2778_v24, %v3935_v12 }
 0x8ca   :  { %v2794_v28 = vmul.f32 %v2780_v25, %v3931_v9 }
 0x8cb   :  { %v2795_v59 = vmul.f32 %v2782_v27, %v3935_v12 }
 0x8cc   :  { %v2800_v29 = vpack.c.bf16 %v2794_v28, %v2788_v62 }
 0x8cd   :  { %v2801_v30 = vpack.c.bf16 %v2795_v59, %v2789_v1 }
 0x8ce   :  { %2816 = vrot.lane.b32.xlu1 %v2800_v29, %s3586_s5 }
 0x8cf   :  { %2818 = vrot.lane.b32.xlu0 %v2801_v30, %s3586_s5 }
 0x914   :  { %v2809_v35 = vpop.permute.xlu1 %2808 }
 0x915   :  { %2832 = vst.msk [vmem:[#allocation2] sm:$0xff] %vm72_vm2, %v2809_v35  ;;  %v2811_v37 = vpop.permute.xlu0 %2810 }
 0x916   :  { %v2820_v56 = vsel %vm19_vm0, %v2809_v35, %v2811_v37 }
 0x91c   :  { %v2813_v38 = vpop.permute.xlu1 %2812  ;;  %v2885_v39 = vld [vmem:[#allocation2] sm:$0xff] }
 0x91d   :  { %v2821_v9 = vsel %vm19_vm0, %v2811_v37, %v2813_v38  ;;  %v2815_v34 = vpop.permute.xlu0 %2814  ;;  %2899 = vrot.lane.b32.xlu0 %v2885_v39, %s3587_s14  ;;  %2853 = vrot.lane.b32.xlu1 %v2885_v39, %s3588_s15 }
 0x91e   :  { %v2822_v12 = vsel %vm19_vm0, %v2813_v38, %v2815_v34 }
 0x921   :  { %2991 = vrot.lane.b32.xlu0 %v2885_v39, %s3589_s16  ;;  %2945 = vrot.lane.b32.xlu1 %v2885_v39, %s3590_s17 }
 0x925   :  { %3083 = vrot.lane.b32.xlu0 %v2885_v39, %s3591_s18  ;;  %3037 = vrot.lane.b32.xlu1 %v2885_v39, %s3592_s19 }
 0x929   :  { %3175 = vrot.lane.b32.xlu0 %v2885_v39, %s3593_s20  ;;  %3129 = vrot.lane.b32.xlu1 %v2885_v39, %s3594_s21 }
 0x92d   :  { %3221 = vrot.lane.b32.xlu1 %v2885_v39, %s3595_s22  ;;  %2901 = vrot.lane.b32.xlu0 %v2820_v56, %s3587_s14 }
 0x931   :  { %2993 = vrot.lane.b32.xlu0 %v2820_v56, %s3589_s16  ;;  %2855 = vrot.lane.b32.xlu1 %v2820_v56, %s3588_s15 }
 0x935   :  { %3085 = vrot.lane.b32.xlu0 %v2820_v56, %s3591_s18  ;;  %2947 = vrot.lane.b32.xlu1 %v2820_v56, %s3590_s17 }
 0x939   :  { %3177 = vrot.lane.b32.xlu0 %v2820_v56, %s3593_s20  ;;  %3039 = vrot.lane.b32.xlu1 %v2820_v56, %s3592_s19 }
 0x93d   :  { %3131 = vrot.lane.b32.xlu1 %v2820_v56, %s3594_s21  ;;  %2857 = vrot.lane.b32.xlu0 %v2821_v9, %s3588_s15 }
 0x940   :  { %v2817_v41 = vpop.permute.xlu1 %2816 }
 0x941   :  { %v2823_v42 = vsel %vm19_vm0, %v2815_v34, %v2817_v41  ;;  %v2819_v44 = vpop.permute.xlu0 %2818  ;;  %3223 = vrot.lane.b32.xlu1 %v2820_v56, %s3595_s22  ;;  %2949 = vrot.lane.b32.xlu0 %v2821_v9, %s3590_s17 }
 0x942   :  { %v2824_v45 = vsel %vm19_vm0, %v2817_v41, %v2819_v44  ;;  %2838 = vst.msk [vmem:[#allocation2 + $0x30] sm:$0xff] %vm19_vm0, %v2819_v44  ;;  %v4686_v44 = vld [vmem:[%s4808_s1 + $0x40] ss:$8 sps:$4 sm:$0xff]  }
 0x945   :  { %2903 = vrot.lane.b32.xlu1 %v2821_v9, %s3587_s14  ;;  %3041 = vrot.lane.b32.xlu0 %v2821_v9, %s3592_s19 }
 0x949   :  { %2995 = vrot.lane.b32.xlu1 %v2821_v9, %s3589_s16  ;;  %3133 = vrot.lane.b32.xlu0 %v2821_v9, %s3594_s21  ;;  %v2845_v48 = vld [vmem:[#allocation2 + $0x30] sm:$0xff] }
 0x94d   :  { %3087 = vrot.lane.b32.xlu1 %v2821_v9, %s3591_s18  ;;  %3225 = vrot.lane.b32.xlu0 %v2821_v9, %s3595_s22 }
 0x951   :  { %3179 = vrot.lane.b32.xlu1 %v2821_v9, %s3593_s20  ;;  %2859 = vrot.lane.b32.xlu0 %v2822_v12, %s3588_s15 }
 0x955   :  { %2905 = vrot.lane.b32.xlu0 %v2822_v12, %s3587_s14  ;;  %2861 = vrot.lane.b32.xlu1 %v2823_v42, %s3588_s15 }
 0x959   :  { %2951 = vrot.lane.b32.xlu0 %v2822_v12, %s3590_s17  ;;  %2865 = vrot.lane.b32.xlu1 %v2845_v48, %s3588_s15 }
 0x95d   :  { %2997 = vrot.lane.b32.xlu0 %v2822_v12, %s3589_s16  ;;  %2907 = vrot.lane.b32.xlu1 %v2823_v42, %s3587_s14 }
 0x961   :  { %3043 = vrot.lane.b32.xlu0 %v2822_v12, %s3592_s19  ;;  %2911 = vrot.lane.b32.xlu1 %v2845_v48, %s3587_s14 }
 0x965   :  { %3089 = vrot.lane.b32.xlu0 %v2822_v12, %s3591_s18  ;;  %2953 = vrot.lane.b32.xlu1 %v2823_v42, %s3590_s17 }
 0x969   :  { %3135 = vrot.lane.b32.xlu0 %v2822_v12, %s3594_s21  ;;  %2957 = vrot.lane.b32.xlu1 %v2845_v48, %s3590_s17 }
 0x96d   :  { %3181 = vrot.lane.b32.xlu0 %v2822_v12, %s3593_s20  ;;  %2999 = vrot.lane.b32.xlu1 %v2823_v42, %s3589_s16 }
 0x971   :  { %3227 = vrot.lane.b32.xlu0 %v2822_v12, %s3595_s22  ;;  %3003 = vrot.lane.b32.xlu1 %v2845_v48, %s3589_s16 }
 0x975   :  { %2863 = vrot.lane.b32.xlu0 %v2824_v45, %s3588_s15  ;;  %3045 = vrot.lane.b32.xlu1 %v2823_v42, %s3592_s19 }
 0x979   :  { %2909 = vrot.lane.b32.xlu0 %v2824_v45, %s3587_s14  ;;  %3049 = vrot.lane.b32.xlu1 %v2845_v48, %s3592_s19 }
 0x97d   :  { %2955 = vrot.lane.b32.xlu0 %v2824_v45, %s3590_s17  ;;  %3091 = vrot.lane.b32.xlu1 %v2823_v42, %s3591_s18 }
 0x981   :  { %3001 = vrot.lane.b32.xlu0 %v2824_v45, %s3589_s16  ;;  %3095 = vrot.lane.b32.xlu1 %v2845_v48, %s3591_s18 }
 0x985   :  { %3047 = vrot.lane.b32.xlu0 %v2824_v45, %s3592_s19  ;;  %3137 = vrot.lane.b32.xlu1 %v2823_v42, %s3594_s21 }
 0x989   :  { %3093 = vrot.lane.b32.xlu0 %v2824_v45, %s3591_s18  ;;  %3141 = vrot.lane.b32.xlu1 %v2845_v48, %s3594_s21 }
 0x98d   :  { %3139 = vrot.lane.b32.xlu0 %v2824_v45, %s3594_s21  ;;  %3183 = vrot.lane.b32.xlu1 %v2823_v42, %s3593_s20 }
 0x98f   :  { %v2900_v49 = vpop.permute.xlu0 %2899  ;;  %v2854_v53 = vpop.permute.xlu1 %2853 }
 0x991   :  { %3185 = vrot.lane.b32.xlu0 %v2824_v45, %s3593_s20  ;;  %3187 = vrot.lane.b32.xlu1 %v2845_v48, %s3593_s20 }
 0x993   :  { %v2992_v31 = vpop.permute.xlu0 %2991  ;;  %v2946_v57 = vpop.permute.xlu1 %2945 }
 0x995   :  { %3231 = vrot.lane.b32.xlu0 %v2824_v45, %s3595_s22  ;;  %3229 = vrot.lane.b32.xlu1 %v2823_v42, %s3595_s22 }
 0x997   :  { %v3084_v63 = vpop.permute.xlu0 %3083  ;;  %v3038_v50 = vpop.permute.xlu1 %3037 }
 0x999   :  { %3315 = vperm.xlu0 %3557, %v3538_v61   ;;  %3233 = vrot.lane.b32.xlu1 %v2845_v48, %s3595_s22 }
 0x99b   :  { %v4637_v0 = vpop.permute.xlu0 %3175  ;;  %v3130_v47 = vpop.permute.xlu1 %3129 }
 0x99d   :  { %3320 = vperm.xlu1 %3556, %v3539_v17  }
 0x99f   :  { %v2902_v2 = vpop.permute.xlu0 %2901  ;;  %v4639_v3 = vpop.permute.xlu1 %3221 }
 0x9a0   :  { %v2913_v10 = vsel %vm155_vm5, %v2900_v49, %v2902_v2 }
 0x9a3   :  { %v2994_v4 = vpop.permute.xlu0 %2993  ;;  %v2856_v52 = vpop.permute.xlu1 %2855 }
 0x9a4   :  { %v2867_v54 = vsel %vm108_vm4, %v2854_v53, %v2856_v52  ;;  %v3005_v43 = vsel %vm249_vm7, %v2992_v31, %v2994_v4 }
 0x9a7   :  { %v3086_v40 = vpop.permute.xlu0 %3085  ;;  %v2948_v5 = vpop.permute.xlu1 %2947 }
 0x9a8   :  { %v2959_v19 = vsel %vm202_vm6, %v2946_v57, %v2948_v5  ;;  %v3097_v62 = vsel %vm343_vm9, %v3084_v63, %v3086_v40 }
 0x9ab   :  { %v3178_v46 = vpop.permute.xlu0 %3177  ;;  %v3040_v6 = vpop.permute.xlu1 %3039 }
 0x9ac   :  { %v3051_v24 = vsel %vm296_vm8, %v3038_v50, %v3040_v6  ;;  %v3189_v39 = vsel %vm437_vm11, %v4637_v0, %v3178_v46 }
 0x9af   :  { %v2858_v7 = vpop.permute.xlu0 %2857  ;;  %v3132_v8 = vpop.permute.xlu1 %3131 }
 0x9b0   :  { %v2868_v11 = vsel %vm108_vm4, %v2856_v52, %v2858_v7  ;;  %v3143_v30 = vsel %vm390_vm10, %v3130_v47, %v3132_v8 }
 0x9b1   :  { %3335 = vmatprep.subr.bf16.mxu0 %v2868_v11 }
 0x9b2   :  { %3336 = vmatpush1.bf16.msra.mxu0 %v2867_v54 }
 0x9b3   :  { %v4643_v51 = vpop.permute.xlu0 %2949  ;;  %v3224_v33 = vpop.permute.xlu1 %3223 }
 0x9b4   :  { %v2960_v16 = vsel %vm202_vm6, %v2948_v5, %v4643_v51  ;;  %v3235_v42 = vsel %vm484_vm12, %v4639_v3, %v3224_v33 }
 0x9b7   :  { %v4645_v13 = vpop.permute.xlu0 %3041  ;;  %v2904_v14 = vpop.permute.xlu1 %2903 }
 0x9b8   :  { %v2914_v15 = vsel %vm155_vm5, %v2902_v2, %v2904_v14  ;;  %v3052_v60 = vsel %vm296_vm8, %v3040_v6, %v4645_v13 }
 0x9b9   :  { %3337 = vmatprep.subr.bf16.mxu0 %v2914_v15 }
 0x9ba   :  { %3338 = vmatpush1.bf16.msra.mxu0 %v2913_v10 }
 0x9bb   :  { %v4651_v58 = vpop.permute.xlu0 %3133  ;;  %3339 = vmatprep.subr.bf16.mxu0 %v2960_v16  ;;  %v2996_v32 = vpop.permute.xlu1 %2995 }
 0x9bc   :  { %v3006_v36 = vsel %vm249_vm7, %v2994_v4, %v2996_v32  ;;  %v3144_v1 = vsel %vm390_vm10, %v3132_v8, %v4651_v58 }
 0x9be   :  { %3340 = vmatpush1.bf16.msra.mxu0 %v2959_v19 }
 0x9bf   :  { %v4655_v20 = vpop.permute.xlu0 %3225  ;;  %3341 = vmatprep.subr.bf16.mxu0 %v3006_v36  ;;  %v4657_v55 = vpop.permute.xlu1 %3087 }
 0x9c0   :  { %v3098_v18 = vsel %vm343_vm9, %v3086_v40, %v4657_v55  ;;  %v3236_v34 = vsel %vm484_vm12, %v3224_v33, %v4655_v20 }
 0x9c2   :  { %3342 = vmatpush1.bf16.msra.mxu0 %v3005_v43 }
 0x9c3   :  { %v2860_v22 = vpop.permute.xlu0 %2859  ;;  %3343 = vmatprep.subr.bf16.mxu0 %v3052_v60  ;;  %v4662_v23 = vpop.permute.xlu1 %3179 }
 0x9c4   :  { %v2869_v28 = vsel %vm108_vm4, %v2858_v7, %v2860_v22  ;;  %v3190_v35 = vsel %vm437_vm11, %v3178_v46, %v4662_v23 }
 0x9c6   :  { %3344 = vmatpush1.bf16.msra.mxu0 %v3051_v24 }
 0x9c7   :  { %v2906_v25 = vpop.permute.xlu0 %2905  ;;  %3345 = vmatprep.subr.bf16.mxu0 %v3098_v18  ;;  %v2862_v26 = vpop.permute.xlu1 %2861 }
 0x9c8   :  { %v2870_v27 = vsel %vm108_vm4, %v2860_v22, %v2862_v26  ;;  %v2915_v9 = vsel %vm155_vm5, %v2904_v14, %v2906_v25 }
 0x9c9   :  { %3378 = vmatprep.subr.bf16.mxu1 %v2870_v27 }
 0x9ca   :  { %3346 = vmatpush1.bf16.msra.mxu0 %v3097_v62  ;;  %3379 = vmatpush1.bf16.msra.mxu1 %v2869_v28 }
 0x9cb   :  { %v2952_v59 = vpop.permute.xlu0 %2951  ;;  %3347 = vmatprep.subr.bf16.mxu0 %v3144_v1  ;;  %v2866_v29 = vpop.permute.xlu1 %2865 }
 0x9cc   :  { %v2961_v53 = vsel %vm202_vm6, %v4643_v51, %v2952_v59 }
 0x9ce   :  { %3348 = vmatpush1.bf16.msra.mxu0 %v3143_v30 }
 0x9cf   :  { %v2998_v37 = vpop.permute.xlu0 %2997  ;;  %3349 = vmatprep.subr.bf16.mxu0 %v3190_v35  ;;  %v2908_v56 = vpop.permute.xlu1 %2907 }
 0x9d0   :  { %v2916_v38 = vsel %vm155_vm5, %v2906_v25, %v2908_v56  ;;  %v3007_v17 = vsel %vm249_vm7, %v2996_v32, %v2998_v37 }
 0x9d1   :  { %3380 = vmatprep.subr.bf16.mxu1 %v2916_v38 }
 0x9d2   :  { %3350 = vmatpush1.bf16.msra.mxu0 %v3189_v39  ;;  %3381 = vmatpush1.bf16.msra.mxu1 %v2915_v9 }
 0x9d3   :  { %v3044_v12 = vpop.permute.xlu0 %3043  ;;  %3351 = vmatprep.subr.bf16.mxu0 %v3236_v34  ;;  %v2912_v41 = vpop.permute.xlu1 %2911 }
 0x9d4   :  { %v3053_v40 = vsel %vm296_vm8, %v4645_v13, %v3044_v12 }
 0x9d6   :  { %3352 = vmatpush1.bf16.msra.mxu0 %v3235_v42 }
 0x9d7   :  { %v3090_v45 = vpop.permute.xlu0 %3089  ;;  %v2954_v48 = vpop.permute.xlu1 %2953 }
 0x9d8   :  { %v2962_v49 = vsel %vm202_vm6, %v2952_v59, %v2954_v48  ;;  %v3099_v13 = vsel %vm343_vm9, %v4657_v55, %v3090_v45 }
 0x9d9   :  { %3368 = vmatmul.mubr.bf16.vlgmr.msra.gmra.mrb[24].mxu0 %v4686_v44  ;;  %3382 = vmatprep.subr.bf16.mxu1 %v2962_v49 }
 0x9da   :  { %3383 = vmatpush1.bf16.msra.mxu1 %v2961_v53  ;;  %3544 = vmatprep.mubr.msk.bf16.mxu0 %vm580_vm3, %v4592_v21  ;;  %v3573_v53 = vld [vmem:[%s4807_s0] sm:$0xff] }
 0x9db   :  { %v3136_v31 = vpop.permute.xlu0 %3135  ;;  %v2958_v57 = vpop.permute.xlu1 %2957 }
 0x9dc   :  { %v3145_v60 = vsel %vm390_vm10, %v4651_v58, %v3136_v31 }
 0x9df   :  { %v3182_v61 = vpop.permute.xlu0 %3181  ;;  %v3000_v63 = vpop.permute.xlu1 %2999 }
 0x9e0   :  { %v3008_v50 = vsel %vm249_vm7, %v2998_v37, %v3000_v63  ;;  %v3191_v1 = vsel %vm437_vm11, %v4662_v23, %v3182_v61 }
 0x9e1   :  { %3384 = vmatprep.subr.bf16.mxu1 %v3008_v50 }
 0x9e2   :  { %3385 = vmatpush1.bf16.msra.mxu1 %v3007_v17 }
 0x9e3   :  { %v4696_v0 = vpop.permute.xlu0 %3227  ;;  %v3004_v47 = vpop.permute.xlu1 %3003 }
 0x9e4   :  { %v3237_v23 = vsel %vm484_vm12, %v4655_v20, %v4696_v0 }
 0x9e7   :  { %v2864_v2 = vpop.permute.xlu0 %2863  ;;  %v3046_v3 = vpop.permute.xlu1 %3045 }
 0x9e8   :  { %v2871_v4 = vsel %vm108_vm4, %v2862_v26, %v2864_v2  ;;  %v3054_v52 = vsel %vm296_vm8, %v3044_v12, %v3046_v3  ;;  %v2872_v21 = vsel %vm108_vm4, %v2864_v2, %v2866_v29 }
 0x9e9   :  { %3386 = vmatprep.subr.bf16.mxu1 %v3054_v52  ;;  %3421 = vmatprep.subr.bf16.mxu0 %v2872_v21 }
 0x9ea   :  { %3387 = vmatpush1.bf16.msra.mxu1 %v3053_v40  ;;  %3422 = vmatpush1.bf16.msra.mxu0 %v2871_v4 }
 0x9eb   :  { %v2910_v5 = vpop.permute.xlu0 %2909  ;;  %v3050_v46 = vpop.permute.xlu1 %3049 }
 0x9ec   :  { %v2917_v6 = vsel %vm155_vm5, %v2908_v56, %v2910_v5  ;;  %v2918_v7 = vsel %vm155_vm5, %v2910_v5, %v2912_v41 }
 0x9ed   :  { %3423 = vmatprep.subr.bf16.mxu0 %v2918_v7 }
 0x9ee   :  { %3424 = vmatpush1.bf16.msra.mxu0 %v2917_v6 }
 0x9ef   :  { %v2956_v8 = vpop.permute.xlu0 %2955  ;;  %v3092_v11 = vpop.permute.xlu1 %3091 }
 0x9f0   :  { %v2963_v54 = vsel %vm202_vm6, %v2954_v48, %v2956_v8  ;;  %v3100_v51 = vsel %vm343_vm9, %v3090_v45, %v3092_v11  ;;  %v2964_v33 = vsel %vm202_vm6, %v2956_v8, %v2958_v57  ;;  %v3577_v8 = vld [vmem:[%s4807_s0 + $0x10] sm:$0xff] }
 0x9f1   :  { %3388 = vmatprep.subr.bf16.mxu1 %v3100_v51  ;;  %3425 = vmatprep.subr.bf16.mxu0 %v2964_v33  ;;  %v3578_v33 = vld [vmem:[%s4807_s0 + $0x18] sm:$0xff] }
 0x9f2   :  { %3389 = vmatpush1.bf16.msra.mxu1 %v3099_v13  ;;  %3426 = vmatpush1.bf16.msra.mxu0 %v2963_v54 }
 0x9f3   :  { %v3002_v14 = vpop.permute.xlu0 %3001  ;;  %v3096_v15 = vpop.permute.xlu1 %3095 }
 0x9f4   :  { %v3009_v10 = vsel %vm249_vm7, %v3000_v63, %v3002_v14  ;;  %v3010_v16 = vsel %vm249_vm7, %v3002_v14, %v3004_v47  ;;  %v3574_v63 = vld [vmem:[%s4807_s0 + $0x8] sm:$0xff] }
 0x9f5   :  { %3427 = vmatprep.subr.bf16.mxu0 %v3010_v16  ;;  %v3579_v16 = vld [vmem:[%s4807_s0 + $0x40] sm:$0xff] }
 0x9f6   :  { %3428 = vmatpush1.bf16.msra.mxu0 %v3009_v10 }
 0x9f7   :  { %v3048_v32 = vpop.permute.xlu0 %3047  ;;  %v3138_v19 = vpop.permute.xlu1 %3137 }
 0x9f8   :  { %v3055_v36 = vsel %vm296_vm8, %v3046_v3, %v3048_v32  ;;  %v3146_v43 = vsel %vm390_vm10, %v3136_v31, %v3138_v19  ;;  %v3056_v55 = vsel %vm296_vm8, %v3048_v32, %v3050_v46  ;;  %v3576_v3 = vld [vmem:[%s4807_s0 + $0x38] sm:$0xff] }
 0x9f9   :  { %3390 = vmatprep.subr.bf16.mxu1 %v3146_v43  ;;  %3429 = vmatprep.subr.bf16.mxu0 %v3056_v55  ;;  %v3580_v55 = vld [vmem:[%s4807_s0 + $0x48] sm:$0xff] }
 0x9fa   :  { %3391 = vmatpush1.bf16.msra.mxu1 %v3145_v60  ;;  %3430 = vmatpush1.bf16.msra.mxu0 %v3055_v36 }
 0x9fb   :  { %v3094_v22 = vpop.permute.xlu0 %3093  ;;  %v3142_v24 = vpop.permute.xlu1 %3141 }
 0x9fc   :  { %v3101_v18 = vsel %vm343_vm9, %v3092_v11, %v3094_v22  ;;  %v3102_v25 = vsel %vm343_vm9, %v3094_v22, %v3096_v15 }
 0x9fd   :  { %3431 = vmatprep.subr.bf16.mxu0 %v3102_v25  ;;  %v3581_v25 = vld [vmem:[%s4807_s0 + $0x20] sm:$0xff] }
 0x9fe   :  { %3432 = vmatpush1.bf16.msra.mxu0 %v3101_v18 }
 0x9ff   :  { %v3140_v26 = vpop.permute.xlu0 %3139  ;;  %v3184_v27 = vpop.permute.xlu1 %3183 }
 0xa00   :  { %v3147_v62 = vsel %vm390_vm10, %v3138_v19, %v3140_v26  ;;  %v3192_v28 = vsel %vm437_vm11, %v3182_v61, %v3184_v27  ;;  %v3148_v58 = vsel %vm390_vm10, %v3140_v26, %v3142_v24 }
 0xa01   :  { %3392 = vmatprep.subr.bf16.mxu1 %v3192_v28  ;;  %3433 = vmatprep.subr.bf16.mxu0 %v3148_v58  ;;  %v3582_v58 = vld [vmem:[%s4807_s0 + $0x28] sm:$0xff] }
 0xa02   :  { %3393 = vmatpush1.bf16.msra.mxu1 %v3191_v1  ;;  %3434 = vmatpush1.bf16.msra.mxu0 %v3147_v62 }
 0xa03   :  { %v3186_v59 = vpop.permute.xlu0 %3185  ;;  %v3188_v29 = vpop.permute.xlu1 %3187 }
 0xa04   :  { %v3193_v30 = vsel %vm437_vm11, %v3184_v27, %v3186_v59  ;;  %v3194_v35 = vsel %vm437_vm11, %v3186_v59, %v3188_v29 }
 0xa05   :  { %3435 = vmatprep.subr.bf16.mxu0 %v3194_v35 }
 0xa06   :  { %3436 = vmatpush1.bf16.msra.mxu0 %v3193_v30  ;;  %v3583_v30 = vld [vmem:[%s4807_s0 + $0x50] sm:$0xff] }
 0xa07   :  { %v3230_v37 = vpop.permute.xlu1 %3229  ;;  %v3232_v38 = vpop.permute.xlu0 %3231 }
 0xa08   :  { %v3238_v56 = vsel %vm484_vm12, %v4696_v0, %v3230_v37  ;;  %v3239_v34 = vsel %vm484_vm12, %v3230_v37, %v3232_v38  ;;  %v3575_v0 = vld [vmem:[%s4807_s0 + $0x30] sm:$0xff] }
 0xa09   :  { %3394 = vmatprep.subr.bf16.mxu1 %v3238_v56  ;;  %v3584_v56 = vld [vmem:[%s4807_s0 + $0x58] sm:$0xff] }
 0xa0a   :  { %3395 = vmatpush1.bf16.msra.mxu1 %v3237_v23 }
 0xa0b   :  { %v3234_v39 = vpop.permute.xlu1 %3233 }
 0xa0c   :  { %v3240_v9 = vsel %vm484_vm12, %v3232_v38, %v3234_v39 }
 0xa0d   :  { %3411 = vmatmul.mubr.bf16.vlgmr.msra.gmra.mrb[24].mxu1 %v4686_v44  ;;  %3437 = vmatprep.subr.bf16.mxu0 %v3240_v9 }
 0xa0e   :  { %3438 = vmatpush1.bf16.msra.mxu0 %v3239_v34 }
 0xa11   :  { %3454 = vmatmul.mubr.bf16.vlgmr.msra.gmra.mrb[28].mxu0 %v4686_v44 }
 0xa18   :  { %v3316_v12 = vpop.permute.xlu0 %3315 }
 0xa1c   :  { %v3321_v48 = vpop.permute.xlu1 %3320 }
 0xaac   :  { %v3369_v41 = vpop.f32.mrb[24].mxu0 }
 0xaad   :  { %v3370_v42 = vadd.f32 %v3369_v41, %v3316_v12  ;;  %v3371_v45 = vpop.f32.mrb[25].mxu0 }
 0xaae   :  { %v3372_v20 = vadd.f32 %v3371_v45, %v3316_v12  ;;  %v3373_v49 = vpop.f32.mrb[26].mxu0 }
 0xaaf   :  { %v3464_v31 = vadd.f32 %v3573_v53, %v3370_v42  ;;  %v3374_v57 = vadd.f32 %v3373_v49, %v3321_v48  ;;  %v3375_v61 = vpop.f32.mrb[27].mxu0 }
 0xab0   :  { %v3465_v50 = vadd.f32 %v3574_v63, %v3372_v20  ;;  %v3376_v44 = vadd.f32 %v3375_v61, %v3321_v48 }
 0xab1   :  { %v3476_v17 = vmax.f32 %v3464_v31, 0.0  ;;  %v3470_v47 = vadd.f32 %v3575_v0, %v3374_v57 }
 0xab2   :  { %v3477_v2 = vmax.f32 %v3465_v50, 0.0  ;;  %v3471_v4 = vadd.f32 %v3576_v3, %v3376_v44 }
 0xab3   :  { %3488 = vst [vmem:[%s4811_s4] sm:$0xff] %v3476_v17  ;;  %v3482_v52 = vmax.f32 %v3470_v47, 0.0 }
 0xab4   :  { %3489 = vst [vmem:[%s4811_s4 + $0x8] sm:$0xff] %v3477_v2  ;;  %v3483_v21 = vmax.f32 %v3471_v4, 0.0 }
 0xab5   :  { %3494 = vst [vmem:[%s4811_s4 + $0x30] sm:$0xff] %v3482_v52 }
 0xab6   :  { %3495 = vst [vmem:[%s4811_s4 + $0x38] sm:$0xff] %v3483_v21 }
 0xae0   :  { %v3412_v40 = vpop.f32.mrb[24].mxu1 }
 0xae1   :  { %v3413_v5 = vadd.f32 %v3412_v40, %v3316_v12  ;;  %v3414_v46 = vpop.f32.mrb[25].mxu1 }
 0xae2   :  { %v3415_v6 = vadd.f32 %v3414_v46, %v3316_v12  ;;  %v3416_v7 = vpop.f32.mrb[26].mxu1 }
 0xae3   :  { %v3466_v11 = vadd.f32 %v3577_v8, %v3413_v5  ;;  %v3417_v54 = vadd.f32 %v3416_v7, %v3321_v48  ;;  %v3418_v51 = vpop.f32.mrb[27].mxu1 }
 0xae4   :  { %v3467_v13 = vadd.f32 %v3578_v33, %v3415_v6  ;;  %v3419_v14 = vadd.f32 %v3418_v51, %v3321_v48  ;;  %v3455_v15 = vpop.f32.mrb[28].mxu0 }
 0xae5   :  { %v3478_v10 = vmax.f32 %v3466_v11, 0.0  ;;  %v3472_v32 = vadd.f32 %v3579_v16, %v3417_v54  ;;  %v3456_v19 = vadd.f32 %v3455_v15, %v3316_v12  ;;  %v3457_v36 = vpop.f32.mrb[29].mxu0 }
 0xae6   :  { %v3479_v43 = vmax.f32 %v3467_v13, 0.0  ;;  %v3473_v60 = vadd.f32 %v3580_v55, %v3419_v14  ;;  %v3458_v22 = vadd.f32 %v3457_v36, %v3316_v12  ;;  %v3459_v24 = vpop.f32.mrb[30].mxu0 }
 0xae7   :  { %3490 = vst [vmem:[%s4811_s4 + $0x10] sm:$0xff] %v3478_v10  ;;  %v3484_v18 = vmax.f32 %v3472_v32, 0.0  ;;  %v3468_v26 = vadd.f32 %v3581_v25, %v3456_v19  ;;  %v3460_v27 = vadd.f32 %v3459_v24, %v3321_v48  ;;  %v3461_v62 = vpop.f32.mrb[31].mxu0 }
 0xae8   :  { %3491 = vst [vmem:[%s4811_s4 + $0x18] sm:$0xff] %v3479_v43  ;;  %v3485_v28 = vmax.f32 %v3473_v60, 0.0  ;;  %v3469_v1 = vadd.f32 %v3582_v58, %v3458_v22  ;;  %v3462_v59 = vadd.f32 %v3461_v62, %v3321_v48 }
 0xae9   :  { %3496 = vst [vmem:[%s4811_s4 + $0x40] sm:$0xff] %v3484_v18  ;;  %v3480_v29 = vmax.f32 %v3468_v26, 0.0  ;;  %v3474_v35 = vadd.f32 %v3583_v30, %v3460_v27 }
 0xaea   :  { %3497 = vst [vmem:[%s4811_s4 + $0x48] sm:$0xff] %v3485_v28  ;;  %v3481_v37 = vmax.f32 %v3469_v1, 0.0  ;;  %v3475_v23 = vadd.f32 %v3584_v56, %v3462_v59 }
 0xaeb   :  { %3492 = vst [vmem:[%s4811_s4 + $0x20] sm:$0xff] %v3480_v29  ;;  %v3486_v38 = vmax.f32 %v3474_v35, 0.0 }
 0xaec   :  { %3493 = vst [vmem:[%s4811_s4 + $0x28] sm:$0xff] %v3481_v37  ;;  %v3487_v39 = vmax.f32 %v3475_v23, 0.0 }
 0xaed   :  { %3498 = vst [vmem:[%s4811_s4 + $0x50] sm:$0xff] %v3486_v38 }
 0xaee   :  { %3499 = vst [vmem:[%s4811_s4 + $0x58] sm:$0xff] %v3487_v39 }

</bundles_post_ra>
